<compile_context>
chip_gen: v5e
topology: v5e:2x2
jax: 0.10.0
libtpu: 0.0.40
codegen_flags: <defaults>
</compile_context>

<pallas_src>
import functools
import math

import jax
import jax.numpy as jnp
from jax.experimental import pallas as pl
from jax.experimental.pallas import tpu as pltpu


def _round_up(x, m):
    return (x + m - 1) // m * m


def lstm_layer_kernel(x_ref, h0_ref, c0_ref, wih_ref, whh_ref, b_ref,
                      gam_ref, bet_ref,
                      out_ref, hn_ref, cn_ref,
                      h_sc, c_sc, xg_sc,
                      *, seq_len, time_block, matmul_dtype, unroll):
    """One LayerNormLSTM layer.  grid = (batch_tiles, time_blocks)."""
    t_blk = pl.program_id(1)
    Tb, bt, Din = x_ref.shape
    H = h_sc.shape[-1]
    eps = 1e-5
    # Static (Python) constants: which grid step / local step holds t == seq_len-1.
    last_block = (seq_len - 1) // time_block
    last_local = (seq_len - 1) % time_block

    # (Re)load the initial state at the start of each batch tile's time sweep.
    @pl.when(t_blk == 0)
    def _():
        h_sc[...] = h0_ref[...]
        c_sc[...] = c0_ref[...]

    # ---- hoisted invariant loads (never re-issued inside the time loop) ----
    w_hh = whh_ref[...]                       # (H, 4H), pre-transposed, matmul dtype
    gam = gam_ref[...]                        # (5, H): layernorm_{i,f,cx,o,cy} gammas
    bet = bet_ref[...]                        # (5, H)
    g_i, b_i = gam[0:1], bet[0:1]
    g_f, b_f = gam[1:2], bet[1:2]
    g_g, b_g = gam[2:3], bet[2:3]
    g_o, b_o = gam[3:4], bet[3:4]
    g_c, b_c = gam[4:5], bet[4:5]

    # ---- hoisted input projection: one big MXU matmul per grid step ----
    # (M = time_block*bt rows instead of time_block small matmuls with M = bt;
    #  bias is folded in here, removing one (bt,4H) add per recurrent step.)
    x2d = x_ref[...].reshape(Tb * bt, Din).astype(matmul_dtype)
    xg = jnp.dot(x2d, wih_ref[...], preferred_element_type=jnp.float32)
    xg = xg + b_ref[...]                      # (Tb*bt, 4H) f32
    xg_sc[...] = xg.reshape(Tb, bt, 4 * H)

    def layer_norm(v, g, b):
        # nn.LayerNorm: biased variance, eps=1e-5.  One-pass variance with a clamp
        # to guard against E[x^2] - mu^2 cancellation going slightly negative.
        mu = jnp.mean(v, axis=-1, keepdims=True)
        var = jnp.mean(v * v, axis=-1, keepdims=True) - mu * mu
        var = jnp.maximum(var, 0.0)
        return (v - mu) * jax.lax.rsqrt(var + eps) * g + b

    def step(i, carry):
        h, c, h_fin, c_fin = carry
        # Serial critical path: only the recurrent matmul + elementwise math.
        gates = xg_sc[i] + jnp.dot(h.astype(matmul_dtype), w_hh,
                                   preferred_element_type=jnp.float32)  # (bt, 4H)

        in_gate     = jax.nn.sigmoid(layer_norm(gates[:, 0 * H:1 * H], g_i, b_i))
        forget_gate = jax.nn.sigmoid(layer_norm(gates[:, 1 * H:2 * H], g_f, b_f))
        cell_gate   = jnp.tanh(layer_norm(gates[:, 2 * H:3 * H], g_g, b_g))
        out_gate    = jax.nn.sigmoid(layer_norm(gates[:, 3 * H:4 * H], g_o, b_o))

        cy = layer_norm(forget_gate * c + in_gate * cell_gate, g_c, b_c)
        hy = out_gate * jnp.tanh(cy)

        out_ref[i] = hy.astype(out_ref.dtype)

        # Capture the state at the true last timestep with a cheap select in the
        # carry (no per-step pl.when / basic-block boundary).  Padded tail steps
        # (T rounded up to time_block) leave h_fin/c_fin untouched.
        take = i == last_local
        h_fin = jnp.where(take, hy, h_fin)
        c_fin = jnp.where(take, cy, c_fin)
        return hy, cy, h_fin, c_fin

    h0v = h_sc[...]
    c0v = c_sc[...]
    h, c, h_fin, c_fin = jax.lax.fori_loop(
        0, time_block, step, (h0v, c0v, h0v, c0v), unroll=unroll)
    h_sc[...] = h
    c_sc[...] = c

    # Single write of (h_n, c_n), only in the grid step that contains t = seq_len-1.
    @pl.when(t_blk == last_block)
    def _():
        hn_ref[...] = h_fin
        cn_ref[...] = c_fin


def _estimate_vmem_limit(time_block, bt, Din, H, *, x_itemsize, out_itemsize,
                         w_itemsize, invariant_buffers=2):
    """Rough VMEM budget from the actual block shapes (conservatively assumes
    double-buffered invariants), clamped to a sane range."""
    f32 = 4
    x_blk = 2 * time_block * bt * Din * x_itemsize            # double-buffered
    out_blk = 2 * time_block * bt * H * out_itemsize
    state_io = 2 * 4 * bt * H * f32                           # h0, c0, hn, cn
    weights = invariant_buffers * (Din + H) * 4 * H * w_itemsize
    small = invariant_buffers * (4 * H + 10 * H) * f32        # bias + LN params
    scratch = (2 * bt * H + time_block * bt * 4 * H) * f32    # h, c, xg
    need = x_blk + out_blk + state_io + weights + small + scratch
    limit = int(need * 1.25) + (4 << 20)
    return max(16 << 20, min(limit, 100 << 20))


def run_layer(x_tbd, h0, c0, w_ih, w_hh, bias, gamma, beta, *,
              seq_len, time_block=8, batch_block=None,
              matmul_dtype=jnp.float32, out_dtype=jnp.float32,
              unroll=4, vmem_limit_bytes=None):
    """x_tbd: (T_pad, B_pad, Din) time-major, T_pad % time_block == 0,
    B_pad % 8 == 0.  Returns ((T_pad, B_pad, H) out, (B_pad, H) hn, (B_pad, H) cn)."""
    T_pad, B_pad, Din = x_tbd.shape
    H = h0.shape[-1]
    if batch_block is None:
        # >= 2 batch tiles when possible so the "parallel" grid axis feeds both
        # v7x TensorCores.  (For MXU fill on real workloads pass batch_block>=128.)
        bt = B_pad // 2 if (B_pad >= 16 and (B_pad // 2) % 8 == 0) else B_pad
    else:
        bt = batch_block
    assert T_pad % time_block == 0
    assert B_pad % 8 == 0 and bt % 8 == 0 and B_pad % bt == 0

    f32 = jnp.float32
    # One-time parameter prep in the wrapper (layout plumbing stays out of the
    # kernel).  Weights are pre-transposed and stored in the matmul dtype.
    w_ih_t = jnp.asarray(w_ih, f32).T.astype(matmul_dtype)     # (Din, 4H)
    w_hh_t = jnp.asarray(w_hh, f32).T.astype(matmul_dtype)     # (H,   4H)
    bias2d = jnp.asarray(bias, f32).reshape(1, 4 * H)          # (1,   4H)
    gamma = jnp.asarray(gamma, f32)                            # (5, H)
    beta = jnp.asarray(beta, f32)                              # (5, H)

    unroll = max(1, min(int(unroll), time_block))
    grid = (B_pad // bt, T_pad // time_block)

    if vmem_limit_bytes is None:
        vmem_limit_bytes = _estimate_vmem_limit(
            time_block, bt, Din, H,
            x_itemsize=x_tbd.dtype.itemsize,
            out_itemsize=jnp.dtype(out_dtype).itemsize,
            w_itemsize=jnp.dtype(matmul_dtype).itemsize)

    kernel = functools.partial(lstm_layer_kernel,
                               seq_len=seq_len, time_block=time_block,
                               matmul_dtype=matmul_dtype, unroll=unroll)

    out_shape = (
        jax.ShapeDtypeStruct((T_pad, B_pad, H), out_dtype),
        jax.ShapeDtypeStruct((B_pad, H), f32),
        jax.ShapeDtypeStruct((B_pad, H), f32),
    )

    def build(single_buffer_invariants):
        if single_buffer_invariants:
            # Constant index map => the operand is fetched once; double-buffering
            # it only doubles its VMEM footprint (critical for f32 weights on v7x).
            def inv_spec(shape):
                return pl.BlockSpec(shape, lambda b, t: (0, 0),
                                    pipeline_mode=pl.Buffered(1))
        else:
            def inv_spec(shape):
                return pl.BlockSpec(shape, lambda b, t: (0, 0))

        grid_spec = pltpu.PrefetchScalarGridSpec(
            num_scalar_prefetch=0,
            grid=grid,
            in_specs=[
                pl.BlockSpec((time_block, bt, Din), lambda b, t: (t, b, 0)),  # x
                pl.BlockSpec((bt, H), lambda b, t: (b, 0)),                   # h0
                pl.BlockSpec((bt, H), lambda b, t: (b, 0)),                   # c0
                inv_spec((Din, 4 * H)),                                       # W_ih^T
                inv_spec((H, 4 * H)),                                         # W_hh^T
                inv_spec((1, 4 * H)),                                         # bias
                inv_spec((5, H)),                                             # LN gamma
                inv_spec((5, H)),                                             # LN beta
            ],
            out_specs=[
                pl.BlockSpec((time_block, bt, H), lambda b, t: (t, b, 0)),    # out
                pl.BlockSpec((bt, H), lambda b, t: (b, 0)),                   # h_n
                pl.BlockSpec((bt, H), lambda b, t: (b, 0)),                   # c_n
            ],
            scratch_shapes=[
                pltpu.VMEM((bt, H), f32),                    # h state
                pltpu.VMEM((bt, H), f32),                    # c state
                pltpu.VMEM((time_block, bt, 4 * H), f32),    # hoisted x-projection
            ],
        )
        return pl.pallas_call(
            kernel,
            grid_spec=grid_spec,
            out_shape=out_shape,
            compiler_params=pltpu.CompilerParams(
                dimension_semantics=("parallel", "arbitrary"),
                vmem_limit_bytes=vmem_limit_bytes,
            ),
        )

    args = (x_tbd, h0, c0, w_ih_t, w_hh_t, bias2d, gamma, beta)
    try:
        return build(True)(*args)
    except Exception:
        # pl.Buffered(1) single-buffering unsupported on this jax/libtpu combo;
        # fall back to default (double-buffered) invariant operands.
        return build(False)(*args)


def layer_norm_lstm_forward(x, states, params, *, time_block=8, batch_block=None,
                            matmul_dtype=jnp.float32, unroll=4):
    """x: (B, T, input_size) batch-first (like the PyTorch module).
    states: list of (h0, c0) per layer, each (B, H).
    params: list of per-layer tuples (w_ih, w_hh, bias, gamma, beta).
    matmul_dtype=jnp.bfloat16 enables the fast MXU path (bf16 weights/operands,
    f32 accumulation, bf16 inter-layer activations); accuracy ~1e-2 vs f32."""
    B, T, _ = x.shape
    # Pad B so the default batch split yields >= 2 tiles when B > 8 (v7x megacore).
    B_pad = _round_up(B, 16) if B > 8 else 8
    T_pad = _round_up(T, time_block)
    use_bf16_act = jnp.dtype(matmul_dtype) == jnp.dtype(jnp.bfloat16)

    out = jnp.transpose(x, (1, 0, 2))                                  # (T, B, Din)
    out = jnp.pad(out, ((0, T_pad - T), (0, B_pad - B), (0, 0)))

    num_layers = len(params)
    new_states = []
    for li, ((w_ih, w_hh, bias, gamma, beta), (h0, c0)) in enumerate(zip(params, states)):
        h0p = jnp.pad(h0, ((0, B_pad - B), (0, 0)))
        c0p = jnp.pad(c0, ((0, B_pad - B), (0, 0)))
        is_last = li == num_layers - 1
        # Intermediate-layer activations in bf16 halve the per-layer HBM round trip.
        out_dtype = jnp.bfloat16 if (use_bf16_act and not is_last) else jnp.float32
        out, hn, cn = run_layer(out, h0p, c0p, w_ih, w_hh, bias, gamma, beta,
                                seq_len=T, time_block=time_block,
                                batch_block=batch_block,
                                matmul_dtype=matmul_dtype, out_dtype=out_dtype,
                                unroll=unroll)
        new_states.append((hn[:B], cn[:B]))
        # Padded (T_pad, B_pad, H) activations feed the next layer directly; padded
        # rows/steps are finite garbage, sliced away at the end.
    out = out[:T, :B]
    return jnp.transpose(out, (1, 0, 2)).astype(jnp.float32), new_states


def init_params(key, input_size, hidden_size, num_layers):
    """Deterministic init mimicking reset_parameters(): U(-stdv, stdv), LN = (1, 0)."""
    stdv = 1.0 / math.sqrt(hidden_size)
    params = []
    in_sz = input_size
    for _ in range(num_layers):
        key, k1, k2, k3, k4 = jax.random.split(key, 5)
        w_ih = jax.random.uniform(k1, (4 * hidden_size, in_sz),
                                  minval=-stdv, maxval=stdv, dtype=jnp.float32)
        w_hh = jax.random.uniform(k2, (4 * hidden_size, hidden_size),
                                  minval=-stdv, maxval=stdv, dtype=jnp.float32)
        b_ih = jax.random.uniform(k3, (4 * hidden_size,),
                                  minval=-stdv, maxval=stdv, dtype=jnp.float32)
        b_hh = jax.random.uniform(k4, (4 * hidden_size,),
                                  minval=-stdv, maxval=stdv, dtype=jnp.float32)
        bias = (b_ih + b_hh).reshape(1, 4 * hidden_size)
        gamma = jnp.ones((5, hidden_size), jnp.float32)
        beta = jnp.zeros((5, hidden_size), jnp.float32)
        params.append((w_ih, w_hh, bias, gamma, beta))
        in_sz = hidden_size
    return params, key


# ----------------------------- pure-JAX reference -----------------------------
def _ref_layer_norm(v, g, b, eps=1e-5):
    mu = jnp.mean(v, axis=-1, keepdims=True)
    var = jnp.mean(jnp.square(v - mu), axis=-1, keepdims=True)
    return (v - mu) / jnp.sqrt(var + eps) * g + b


def _ref_forward(x, states, params):
    out = x
    new_states = []
    for (w_ih, w_hh, bias, gamma, beta), (h, c) in zip(params, states):
        H = h.shape[-1]
        outs = []
        for t in range(out.shape[1]):
            xt = out[:, t, :]
            gates = xt @ w_ih.T + h @ w_hh.T + bias
            i_g = jax.nn.sigmoid(_ref_layer_norm(gates[:, 0 * H:1 * H], gamma[0], beta[0]))
            f_g = jax.nn.sigmoid(_ref_layer_norm(gates[:, 1 * H:2 * H], gamma[1], beta[1]))
            g_g = jnp.tanh(_ref_layer_norm(gates[:, 2 * H:3 * H], gamma[2], beta[2]))
            o_g = jax.nn.sigmoid(_ref_layer_norm(gates[:, 3 * H:4 * H], gamma[3], beta[3]))
            c = _ref_layer_norm(f_g * c + i_g * g_g, gamma[4], beta[4])
            h = o_g * jnp.tanh(c)
            outs.append(h)
        out = jnp.stack(outs, axis=1)
        new_states.append((h, c))
    return out, new_states


if __name__ == "__main__":
    def run_case(*, B, T, INPUT, HIDDEN, NUM_LAYERS, time_block,
                 matmul_dtype, atol, rtol, seed):
        key = jax.random.PRNGKey(seed)
        params, key = init_params(key, INPUT, HIDDEN, NUM_LAYERS)
        key, kx, kh, kc = jax.random.split(key, 4)
        x = jax.random.uniform(kx, (B, T, INPUT), dtype=jnp.float32)
        h0 = jax.random.uniform(kh, (NUM_LAYERS, B, HIDDEN), dtype=jnp.float32)
        c0 = jax.random.uniform(kc, (NUM_LAYERS, B, HIDDEN), dtype=jnp.float32)
        states = [(h0[i], c0[i]) for i in range(NUM_LAYERS)]

        out, out_states = layer_norm_lstm_forward(
            x, states, params, time_block=time_block, matmul_dtype=matmul_dtype)
        out = jax.block_until_ready(out)
        hn = jax.block_until_ready(jnp.stack([s[0] for s in out_states]))
        cn = jax.block_until_ready(jnp.stack([s[1] for s in out_states]))

        assert out.shape == (B, T, HIDDEN)
        assert hn.shape == (NUM_LAYERS, B, HIDDEN)
        assert cn.shape == (NUM_LAYERS, B, HIDDEN)

        ref_out, ref_states = _ref_forward(x, states, params)
        ref_hn = jnp.stack([s[0] for s in ref_states])
        ref_cn = jnp.stack([s[1] for s in ref_states])
        err = float(jnp.max(jnp.abs(out - ref_out)))
        assert jnp.allclose(out, ref_out, atol=atol, rtol=rtol), err
        assert jnp.allclose(hn, ref_hn, atol=atol, rtol=rtol)
        assert jnp.allclose(cn, ref_cn, atol=atol, rtol=rtol)

    # Case 1: exact f32 path; T=10 with time_block=4 exercises the padded time
    # tail (T_pad=12); B=2 is padded to 8 batch rows.
    run_case(B=2, T=10, INPUT=16, HIDDEN=32, NUM_LAYERS=3, time_block=4,
             matmul_dtype=jnp.float32, atol=2e-4, rtol=2e-4, seed=0)

    # Case 2: two batch tiles (B=12 -> B_pad=16, batch_block=8) exercise the
    # per-tile state re-initialisation and the "parallel" batch axis.
    run_case(B=12, T=8, INPUT=16, HIDDEN=32, NUM_LAYERS=2, time_block=4,
             matmul_dtype=jnp.float32, atol=2e-4, rtol=2e-4, seed=1)

    # Case 3: bf16 MXU / bf16 inter-layer activation fast path.  Accuracy contract
    # is loose (~1e-2 relative) vs the f32 reference — checked at 1e-1 tolerance.
    run_case(B=2, T=10, INPUT=16, HIDDEN=32, NUM_LAYERS=3, time_block=4,
             matmul_dtype=jnp.bfloat16, atol=1e-1, rtol=1e-1, seed=0)

    print("KERNEL_OK")
</pallas_src>

<mosaic_0001>
module attributes {stable_mosaic.version = 11 : i64} {
  func.func @lstm_layer_kernel(%arg0: i32, %arg1: i32, %arg2: memref<4x8x16xf32, #tpu.memory_space<vmem>>, %arg3: memref<8x32xf32, #tpu.memory_space<vmem>>, %arg4: memref<8x32xf32, #tpu.memory_space<vmem>>, %arg5: memref<16x128xf32, #tpu.memory_space<vmem>>, %arg6: memref<32x128xf32, #tpu.memory_space<vmem>>, %arg7: memref<1x128xf32, #tpu.memory_space<vmem>>, %arg8: memref<5x32xf32, #tpu.memory_space<vmem>>, %arg9: memref<5x32xf32, #tpu.memory_space<vmem>>, %arg10: memref<4x8x32xf32, #tpu.memory_space<vmem>>, %arg11: memref<8x32xf32, #tpu.memory_space<vmem>>, %arg12: memref<8x32xf32, #tpu.memory_space<vmem>>, %arg13: memref<8x32xf32, #tpu.memory_space<vmem>>, %arg14: memref<8x32xf32, #tpu.memory_space<vmem>>, %arg15: memref<4x8x128xf32, #tpu.memory_space<vmem>>) attributes {dimension_semantics = [#tpu.dimension_semantics<parallel>, #tpu.dimension_semantics<arbitrary>], iteration_bounds = array<i64: 1, 3>, scalar_prefetch = 0 : i64, scratch_operands = 3 : i64, tpu.core_type = #tpu.core_type<tc>, window_params = [{transform_indices = @transform_0, window_bounds = array<i64: 4, 8, 16>}, {transform_indices = @transform_1, window_bounds = array<i64: 8, 32>}, {transform_indices = @transform_2, window_bounds = array<i64: 8, 32>}, {pipeline_mode = #tpu.pipeline_mode<synchronous>, transform_indices = @transform_3, window_bounds = array<i64: 16, 128>}, {pipeline_mode = #tpu.pipeline_mode<synchronous>, transform_indices = @transform_4, window_bounds = array<i64: 32, 128>}, {pipeline_mode = #tpu.pipeline_mode<synchronous>, transform_indices = @transform_5, window_bounds = array<i64: 1, 128>}, {pipeline_mode = #tpu.pipeline_mode<synchronous>, transform_indices = @transform_6, window_bounds = array<i64: 5, 32>}, {pipeline_mode = #tpu.pipeline_mode<synchronous>, transform_indices = @transform_7, window_bounds = array<i64: 5, 32>}, {transform_indices = @transform_8, window_bounds = array<i64: 4, 8, 32>}, {transform_indices = @transform_9, window_bounds = array<i64: 8, 32>}, {transform_indices = @transform_10, window_bounds = array<i64: 8, 32>}]} {
    %c0_i32 = arith.constant 0 : i32
    %0 = arith.cmpi eq, %arg1, %c0_i32 : i32
    %1 = arith.extui %0 : i1 to i32
    %c0_i32_0 = arith.constant 0 : i32
    %2 = arith.cmpi ne, %1, %c0_i32_0 : i32
    scf.if %2 {
      %c0_183 = arith.constant 0 : index
      %c0_184 = arith.constant 0 : index
      %660 = vector.load %arg3[%c0_183, %c0_184] : memref<8x32xf32, #tpu.memory_space<vmem>>, vector<8x32xf32>
      %c0_185 = arith.constant 0 : index
      %c0_186 = arith.constant 0 : index
      %661 = vector.load %arg13[%c0_185, %c0_186] : memref<8x32xf32, #tpu.memory_space<vmem>>, vector<8x32xf32>
      tpu.vector_store %arg13[%c0_185, %c0_186], %660 {strides = array<i32>} : memref<8x32xf32, #tpu.memory_space<vmem>>, vector<8x32xf32>,
      %c0_187 = arith.constant 0 : index
      %c0_188 = arith.constant 0 : index
      %662 = vector.load %arg4[%c0_187, %c0_188] : memref<8x32xf32, #tpu.memory_space<vmem>>, vector<8x32xf32>
      %c0_189 = arith.constant 0 : index
      %c0_190 = arith.constant 0 : index
      %663 = vector.load %arg14[%c0_189, %c0_190] : memref<8x32xf32, #tpu.memory_space<vmem>>, vector<8x32xf32>
      tpu.vector_store %arg14[%c0_189, %c0_190], %662 {strides = array<i32>} : memref<8x32xf32, #tpu.memory_space<vmem>>, vector<8x32xf32>,
    } else {
    }
    %c0 = arith.constant 0 : index
    %c0_1 = arith.constant 0 : index
    %3 = vector.load %arg6[%c0, %c0_1] : memref<32x128xf32, #tpu.memory_space<vmem>>, vector<32x128xf32>
    %c0_2 = arith.constant 0 : index
    %c0_3 = arith.constant 0 : index
    %4 = vector.load %arg8[%c0_2, %c0_3] : memref<5x32xf32, #tpu.memory_space<vmem>>, vector<5x32xf32>
    %c0_4 = arith.constant 0 : index
    %c0_5 = arith.constant 0 : index
    %5 = vector.load %arg9[%c0_4, %c0_5] : memref<5x32xf32, #tpu.memory_space<vmem>>, vector<5x32xf32>
    %6 = vector.extract_strided_slice %4 {offsets = [0, 0], sizes = [1, 32], strides = [1, 1]} : vector<5x32xf32> to vector<1x32xf32>
    %7 = vector.extract_strided_slice %5 {offsets = [0, 0], sizes = [1, 32], strides = [1, 1]} : vector<5x32xf32> to vector<1x32xf32>
    %8 = vector.extract_strided_slice %4 {offsets = [1, 0], sizes = [1, 32], strides = [1, 1]} : vector<5x32xf32> to vector<1x32xf32>
    %9 = vector.extract_strided_slice %5 {offsets = [1, 0], sizes = [1, 32], strides = [1, 1]} : vector<5x32xf32> to vector<1x32xf32>
    %10 = vector.extract_strided_slice %4 {offsets = [2, 0], sizes = [1, 32], strides = [1, 1]} : vector<5x32xf32> to vector<1x32xf32>
    %11 = vector.extract_strided_slice %5 {offsets = [2, 0], sizes = [1, 32], strides = [1, 1]} : vector<5x32xf32> to vector<1x32xf32>
    %12 = vector.extract_strided_slice %4 {offsets = [3, 0], sizes = [1, 32], strides = [1, 1]} : vector<5x32xf32> to vector<1x32xf32>
    %13 = vector.extract_strided_slice %5 {offsets = [3, 0], sizes = [1, 32], strides = [1, 1]} : vector<5x32xf32> to vector<1x32xf32>
    %14 = vector.extract_strided_slice %4 {offsets = [4, 0], sizes = [1, 32], strides = [1, 1]} : vector<5x32xf32> to vector<1x32xf32>
    %15 = vector.extract_strided_slice %5 {offsets = [4, 0], sizes = [1, 32], strides = [1, 1]} : vector<5x32xf32> to vector<1x32xf32>
    %c0_6 = arith.constant 0 : index
    %c0_7 = arith.constant 0 : index
    %c0_8 = arith.constant 0 : index
    %16 = vector.load %arg2[%c0_6, %c0_7, %c0_8] : memref<4x8x16xf32, #tpu.memory_space<vmem>>, vector<4x8x16xf32>
    %17 = vector.shape_cast %16 : vector<4x8x16xf32> to vector<32x16xf32>
    %c0_9 = arith.constant 0 : index
    %c0_10 = arith.constant 0 : index
    %18 = vector.load %arg5[%c0_9, %c0_10] : memref<16x128xf32, #tpu.memory_space<vmem>>, vector<16x128xf32>
    %cst = arith.constant dense<0.000000e+00> : vector<32x128xf32>
    %19 = tpu.matmul %17, %18, %cst {dimension_numbers = #tpu.dot_dimension_numbers<[1], [0], [0], [1], [0, 0, 1, 1], [], []>} : vector<32x16xf32>, vector<16x128xf32>, vector<32x128xf32> -> vector<32x128xf32>
    %c0_11 = arith.constant 0 : index
    %c0_12 = arith.constant 0 : index
    %20 = vector.load %arg7[%c0_11, %c0_12] : memref<1x128xf32, #tpu.memory_space<vmem>>, vector<1x128xf32>
    %21 = vector.broadcast %20 : vector<1x128xf32> to vector<32x128xf32>
    %22 = arith.addf %19, %21 : vector<32x128xf32>
    %23 = vector.shape_cast %22 : vector<32x128xf32> to vector<4x8x128xf32>
    %c0_13 = arith.constant 0 : index
    %c0_14 = arith.constant 0 : index
    %c0_15 = arith.constant 0 : index
    %24 = vector.load %arg15[%c0_13, %c0_14, %c0_15] : memref<4x8x128xf32, #tpu.memory_space<vmem>>, vector<4x8x128xf32>
    tpu.vector_store %arg15[%c0_13, %c0_14, %c0_15], %23 {strides = array<i32>} : memref<4x8x128xf32, #tpu.memory_space<vmem>>, vector<4x8x128xf32>,
    %c0_16 = arith.constant 0 : index
    %c0_17 = arith.constant 0 : index
    %25 = vector.load %arg13[%c0_16, %c0_17] : memref<8x32xf32, #tpu.memory_space<vmem>>, vector<8x32xf32>
    %c0_18 = arith.constant 0 : index
    %c0_19 = arith.constant 0 : index
    %26 = vector.load %arg14[%c0_18, %c0_19] : memref<8x32xf32, #tpu.memory_space<vmem>>, vector<8x32xf32>
    %c0_i32_20 = arith.constant 0 : i32
    %27 = arith.index_cast %c0_i32_20 : i32 to index
    %c0_21 = arith.constant 0 : index
    %c0_22 = arith.constant 0 : index
    %28 = vector.load %arg15[%27, %c0_21, %c0_22] : memref<4x8x128xf32, #tpu.memory_space<vmem>>, vector<1x8x128xf32>
    %29 = vector.shape_cast %28 : vector<1x8x128xf32> to vector<8x128xf32>
    %cst_23 = arith.constant dense<0.000000e+00> : vector<8x128xf32>
    %30 = tpu.matmul %25, %3, %cst_23 {dimension_numbers = #tpu.dot_dimension_numbers<[1], [0], [0], [1], [0, 0, 1, 1], [], []>} : vector<8x32xf32>, vector<32x128xf32>, vector<8x128xf32> -> vector<8x128xf32>
    %31 = arith.addf %29, %30 : vector<8x128xf32>
    %32 = vector.extract_strided_slice %31 {offsets = [0, 0], sizes = [8, 32], strides = [1, 1]} : vector<8x128xf32> to vector<8x32xf32>
    %cst_24 = arith.constant dense<0.000000e+00> : vector<8xf32>
    %33 = vector.multi_reduction <add>, %32, %cst_24 [1] : vector<8x32xf32> to vector<8xf32>
    %34 = vector.shape_cast %33 : vector<8xf32> to vector<8x1xf32>
    %cst_25 = arith.constant 3.200000e+01 : f32
    %35 = vector.broadcast %cst_25 : f32 to vector<8x1xf32>
    %36 = arith.divf %34, %35 : vector<8x1xf32>
    %37 = arith.mulf %32, %32 : vector<8x32xf32>
    %cst_26 = arith.constant dense<0.000000e+00> : vector<8xf32>
    %38 = vector.multi_reduction <add>, %37, %cst_26 [1] : vector<8x32xf32> to vector<8xf32>
    %39 = vector.shape_cast %38 : vector<8xf32> to vector<8x1xf32>
    %cst_27 = arith.constant 3.200000e+01 : f32
    %40 = vector.broadcast %cst_27 : f32 to vector<8x1xf32>
    %41 = arith.divf %39, %40 : vector<8x1xf32>
    %42 = arith.mulf %36, %36 : vector<8x1xf32>
    %43 = arith.subf %41, %42 : vector<8x1xf32>
    %cst_28 = arith.constant 0.000000e+00 : f32
    %44 = vector.broadcast %cst_28 : f32 to vector<8x1xf32>
    %45 = arith.maximumf %43, %44 : vector<8x1xf32>
    %46 = vector.broadcast %36 : vector<8x1xf32> to vector<8x32xf32>
    %47 = arith.subf %32, %46 : vector<8x32xf32>
    %cst_29 = arith.constant 9.99999974E-6 : f32
    %48 = vector.broadcast %cst_29 : f32 to vector<8x1xf32>
    %49 = arith.addf %45, %48 : vector<8x1xf32>
    %50 = math.rsqrt %49 : vector<8x1xf32>
    %51 = vector.broadcast %50 : vector<8x1xf32> to vector<8x32xf32>
    %52 = arith.mulf %47, %51 : vector<8x32xf32>
    %53 = vector.broadcast %6 : vector<1x32xf32> to vector<8x32xf32>
    %54 = arith.mulf %52, %53 : vector<8x32xf32>
    %55 = vector.broadcast %7 : vector<1x32xf32> to vector<8x32xf32>
    %56 = arith.addf %54, %55 : vector<8x32xf32>
    %57 = arith.negf %56 : vector<8x32xf32>
    %58 = math.exp %57 : vector<8x32xf32>
    %cst_30 = arith.constant 1.000000e+00 : f32
    %59 = vector.broadcast %cst_30 : f32 to vector<8x32xf32>
    %60 = arith.addf %59, %58 : vector<8x32xf32>
    %61 = arith.divf %59, %60 : vector<8x32xf32>
    %62 = vector.extract_strided_slice %31 {offsets = [0, 32], sizes = [8, 32], strides = [1, 1]} : vector<8x128xf32> to vector<8x32xf32>
    %cst_31 = arith.constant dense<0.000000e+00> : vector<8xf32>
    %63 = vector.multi_reduction <add>, %62, %cst_31 [1] : vector<8x32xf32> to vector<8xf32>
    %64 = vector.shape_cast %63 : vector<8xf32> to vector<8x1xf32>
    %cst_32 = arith.constant 3.200000e+01 : f32
    %65 = vector.broadcast %cst_32 : f32 to vector<8x1xf32>
    %66 = arith.divf %64, %65 : vector<8x1xf32>
    %67 = arith.mulf %62, %62 : vector<8x32xf32>
    %cst_33 = arith.constant dense<0.000000e+00> : vector<8xf32>
    %68 = vector.multi_reduction <add>, %67, %cst_33 [1] : vector<8x32xf32> to vector<8xf32>
    %69 = vector.shape_cast %68 : vector<8xf32> to vector<8x1xf32>
    %cst_34 = arith.constant 3.200000e+01 : f32
    %70 = vector.broadcast %cst_34 : f32 to vector<8x1xf32>
    %71 = arith.divf %69, %70 : vector<8x1xf32>
    %72 = arith.mulf %66, %66 : vector<8x1xf32>
    %73 = arith.subf %71, %72 : vector<8x1xf32>
    %cst_35 = arith.constant 0.000000e+00 : f32
    %74 = vector.broadcast %cst_35 : f32 to vector<8x1xf32>
    %75 = arith.maximumf %73, %74 : vector<8x1xf32>
    %76 = vector.broadcast %66 : vector<8x1xf32> to vector<8x32xf32>
    %77 = arith.subf %62, %76 : vector<8x32xf32>
    %cst_36 = arith.constant 9.99999974E-6 : f32
    %78 = vector.broadcast %cst_36 : f32 to vector<8x1xf32>
    %79 = arith.addf %75, %78 : vector<8x1xf32>
    %80 = math.rsqrt %79 : vector<8x1xf32>
    %81 = vector.broadcast %80 : vector<8x1xf32> to vector<8x32xf32>
    %82 = arith.mulf %77, %81 : vector<8x32xf32>
    %83 = vector.broadcast %8 : vector<1x32xf32> to vector<8x32xf32>
    %84 = arith.mulf %82, %83 : vector<8x32xf32>
    %85 = vector.broadcast %9 : vector<1x32xf32> to vector<8x32xf32>
    %86 = arith.addf %84, %85 : vector<8x32xf32>
    %87 = arith.negf %86 : vector<8x32xf32>
    %88 = math.exp %87 : vector<8x32xf32>
    %cst_37 = arith.constant 1.000000e+00 : f32
    %89 = vector.broadcast %cst_37 : f32 to vector<8x32xf32>
    %90 = arith.addf %89, %88 : vector<8x32xf32>
    %91 = arith.divf %89, %90 : vector<8x32xf32>
    %92 = vector.extract_strided_slice %31 {offsets = [0, 64], sizes = [8, 32], strides = [1, 1]} : vector<8x128xf32> to vector<8x32xf32>
    %cst_38 = arith.constant dense<0.000000e+00> : vector<8xf32>
    %93 = vector.multi_reduction <add>, %92, %cst_38 [1] : vector<8x32xf32> to vector<8xf32>
    %94 = vector.shape_cast %93 : vector<8xf32> to vector<8x1xf32>
    %cst_39 = arith.constant 3.200000e+01 : f32
    %95 = vector.broadcast %cst_39 : f32 to vector<8x1xf32>
    %96 = arith.divf %94, %95 : vector<8x1xf32>
    %97 = arith.mulf %92, %92 : vector<8x32xf32>
    %cst_40 = arith.constant dense<0.000000e+00> : vector<8xf32>
    %98 = vector.multi_reduction <add>, %97, %cst_40 [1] : vector<8x32xf32> to vector<8xf32>
    %99 = vector.shape_cast %98 : vector<8xf32> to vector<8x1xf32>
    %cst_41 = arith.constant 3.200000e+01 : f32
    %100 = vector.broadcast %cst_41 : f32 to vector<8x1xf32>
    %101 = arith.divf %99, %100 : vector<8x1xf32>
    %102 = arith.mulf %96, %96 : vector<8x1xf32>
    %103 = arith.subf %101, %102 : vector<8x1xf32>
    %cst_42 = arith.constant 0.000000e+00 : f32
    %104 = vector.broadcast %cst_42 : f32 to vector<8x1xf32>
    %105 = arith.maximumf %103, %104 : vector<8x1xf32>
    %106 = vector.broadcast %96 : vector<8x1xf32> to vector<8x32xf32>
    %107 = arith.subf %92, %106 : vector<8x32xf32>
    %cst_43 = arith.constant 9.99999974E-6 : f32
    %108 = vector.broadcast %cst_43 : f32 to vector<8x1xf32>
    %109 = arith.addf %105, %108 : vector<8x1xf32>
    %110 = math.rsqrt %109 : vector<8x1xf32>
    %111 = vector.broadcast %110 : vector<8x1xf32> to vector<8x32xf32>
    %112 = arith.mulf %107, %111 : vector<8x32xf32>
    %113 = vector.broadcast %10 : vector<1x32xf32> to vector<8x32xf32>
    %114 = arith.mulf %112, %113 : vector<8x32xf32>
    %115 = vector.broadcast %11 : vector<1x32xf32> to vector<8x32xf32>
    %116 = arith.addf %114, %115 : vector<8x32xf32>
    %117 = math.tanh %116 : vector<8x32xf32>
    %118 = vector.extract_strided_slice %31 {offsets = [0, 96], sizes = [8, 32], strides = [1, 1]} : vector<8x128xf32> to vector<8x32xf32>
    %cst_44 = arith.constant dense<0.000000e+00> : vector<8xf32>
    %119 = vector.multi_reduction <add>, %118, %cst_44 [1] : vector<8x32xf32> to vector<8xf32>
    %120 = vector.shape_cast %119 : vector<8xf32> to vector<8x1xf32>
    %cst_45 = arith.constant 3.200000e+01 : f32
    %121 = vector.broadcast %cst_45 : f32 to vector<8x1xf32>
    %122 = arith.divf %120, %121 : vector<8x1xf32>
    %123 = arith.mulf %118, %118 : vector<8x32xf32>
    %cst_46 = arith.constant dense<0.000000e+00> : vector<8xf32>
    %124 = vector.multi_reduction <add>, %123, %cst_46 [1] : vector<8x32xf32> to vector<8xf32>
    %125 = vector.shape_cast %124 : vector<8xf32> to vector<8x1xf32>
    %cst_47 = arith.constant 3.200000e+01 : f32
    %126 = vector.broadcast %cst_47 : f32 to vector<8x1xf32>
    %127 = arith.divf %125, %126 : vector<8x1xf32>
    %128 = arith.mulf %122, %122 : vector<8x1xf32>
    %129 = arith.subf %127, %128 : vector<8x1xf32>
    %cst_48 = arith.constant 0.000000e+00 : f32
    %130 = vector.broadcast %cst_48 : f32 to vector<8x1xf32>
    %131 = arith.maximumf %129, %130 : vector<8x1xf32>
    %132 = vector.broadcast %122 : vector<8x1xf32> to vector<8x32xf32>
    %133 = arith.subf %118, %132 : vector<8x32xf32>
    %cst_49 = arith.constant 9.99999974E-6 : f32
    %134 = vector.broadcast %cst_49 : f32 to vector<8x1xf32>
    %135 = arith.addf %131, %134 : vector<8x1xf32>
    %136 = math.rsqrt %135 : vector<8x1xf32>
    %137 = vector.broadcast %136 : vector<8x1xf32> to vector<8x32xf32>
    %138 = arith.mulf %133, %137 : vector<8x32xf32>
    %139 = vector.broadcast %12 : vector<1x32xf32> to vector<8x32xf32>
    %140 = arith.mulf %138, %139 : vector<8x32xf32>
    %141 = vector.broadcast %13 : vector<1x32xf32> to vector<8x32xf32>
    %142 = arith.addf %140, %141 : vector<8x32xf32>
    %143 = arith.negf %142 : vector<8x32xf32>
    %144 = math.exp %143 : vector<8x32xf32>
    %cst_50 = arith.constant 1.000000e+00 : f32
    %145 = vector.broadcast %cst_50 : f32 to vector<8x32xf32>
    %146 = arith.addf %145, %144 : vector<8x32xf32>
    %147 = arith.divf %145, %146 : vector<8x32xf32>
    %148 = arith.mulf %91, %26 : vector<8x32xf32>
    %149 = arith.mulf %61, %117 : vector<8x32xf32>
    %150 = arith.addf %148, %149 : vector<8x32xf32>
    %cst_51 = arith.constant dense<0.000000e+00> : vector<8xf32>
    %151 = vector.multi_reduction <add>, %150, %cst_51 [1] : vector<8x32xf32> to vector<8xf32>
    %152 = vector.shape_cast %151 : vector<8xf32> to vector<8x1xf32>
    %cst_52 = arith.constant 3.200000e+01 : f32
    %153 = vector.broadcast %cst_52 : f32 to vector<8x1xf32>
    %154 = arith.divf %152, %153 : vector<8x1xf32>
    %155 = arith.mulf %150, %150 : vector<8x32xf32>
    %cst_53 = arith.constant dense<0.000000e+00> : vector<8xf32>
    %156 = vector.multi_reduction <add>, %155, %cst_53 [1] : vector<8x32xf32> to vector<8xf32>
    %157 = vector.shape_cast %156 : vector<8xf32> to vector<8x1xf32>
    %cst_54 = arith.constant 3.200000e+01 : f32
    %158 = vector.broadcast %cst_54 : f32 to vector<8x1xf32>
    %159 = arith.divf %157, %158 : vector<8x1xf32>
    %160 = arith.mulf %154, %154 : vector<8x1xf32>
    %161 = arith.subf %159, %160 : vector<8x1xf32>
    %cst_55 = arith.constant 0.000000e+00 : f32
    %162 = vector.broadcast %cst_55 : f32 to vector<8x1xf32>
    %163 = arith.maximumf %161, %162 : vector<8x1xf32>
    %164 = vector.broadcast %154 : vector<8x1xf32> to vector<8x32xf32>
    %165 = arith.subf %150, %164 : vector<8x32xf32>
    %cst_56 = arith.constant 9.99999974E-6 : f32
    %166 = vector.broadcast %cst_56 : f32 to vector<8x1xf32>
    %167 = arith.addf %163, %166 : vector<8x1xf32>
    %168 = math.rsqrt %167 : vector<8x1xf32>
    %169 = vector.broadcast %168 : vector<8x1xf32> to vector<8x32xf32>
    %170 = arith.mulf %165, %169 : vector<8x32xf32>
    %171 = vector.broadcast %14 : vector<1x32xf32> to vector<8x32xf32>
    %172 = arith.mulf %170, %171 : vector<8x32xf32>
    %173 = vector.broadcast %15 : vector<1x32xf32> to vector<8x32xf32>
    %174 = arith.addf %172, %173 : vector<8x32xf32>
    %175 = math.tanh %174 : vector<8x32xf32>
    %176 = arith.mulf %147, %175 : vector<8x32xf32>
    %177 = arith.index_cast %c0_i32_20 : i32 to index
    %c0_57 = arith.constant 0 : index
    %c0_58 = arith.constant 0 : index
    %178 = vector.load %arg10[%177, %c0_57, %c0_58] : memref<4x8x32xf32, #tpu.memory_space<vmem>>, vector<1x8x32xf32>
    %179 = vector.shape_cast %178 : vector<1x8x32xf32> to vector<8x32xf32>
    %180 = vector.shape_cast %176 : vector<8x32xf32> to vector<1x8x32xf32>
    tpu.vector_store %arg10[%177, %c0_57, %c0_58], %180 {strides = array<i32>} : memref<4x8x32xf32, #tpu.memory_space<vmem>>, vector<1x8x32xf32>,
    %c1_i32 = arith.constant 1 : i32
    %181 = arith.cmpi eq, %c0_i32_20, %c1_i32 : i32
    %182 = arith.select %181, %176, %25 : vector<8x32xf32>
    %183 = arith.select %181, %174, %26 : vector<8x32xf32>
    %c1_i32_59 = arith.constant 1 : i32
    %184 = arith.index_cast %c1_i32_59 : i32 to index
    %c0_60 = arith.constant 0 : index
    %c0_61 = arith.constant 0 : index
    %185 = vector.load %arg15[%184, %c0_60, %c0_61] : memref<4x8x128xf32, #tpu.memory_space<vmem>>, vector<1x8x128xf32>
    %186 = vector.shape_cast %185 : vector<1x8x128xf32> to vector<8x128xf32>
    %cst_62 = arith.constant dense<0.000000e+00> : vector<8x128xf32>
    %187 = tpu.matmul %176, %3, %cst_62 {dimension_numbers = #tpu.dot_dimension_numbers<[1], [0], [0], [1], [0, 0, 1, 1], [], []>} : vector<8x32xf32>, vector<32x128xf32>, vector<8x128xf32> -> vector<8x128xf32>
    %188 = arith.addf %186, %187 : vector<8x128xf32>
    %189 = vector.extract_strided_slice %188 {offsets = [0, 0], sizes = [8, 32], strides = [1, 1]} : vector<8x128xf32> to vector<8x32xf32>
    %cst_63 = arith.constant dense<0.000000e+00> : vector<8xf32>
    %190 = vector.multi_reduction <add>, %189, %cst_63 [1] : vector<8x32xf32> to vector<8xf32>
    %191 = vector.shape_cast %190 : vector<8xf32> to vector<8x1xf32>
    %cst_64 = arith.constant 3.200000e+01 : f32
    %192 = vector.broadcast %cst_64 : f32 to vector<8x1xf32>
    %193 = arith.divf %191, %192 : vector<8x1xf32>
    %194 = arith.mulf %189, %189 : vector<8x32xf32>
    %cst_65 = arith.constant dense<0.000000e+00> : vector<8xf32>
    %195 = vector.multi_reduction <add>, %194, %cst_65 [1] : vector<8x32xf32> to vector<8xf32>
    %196 = vector.shape_cast %195 : vector<8xf32> to vector<8x1xf32>
    %cst_66 = arith.constant 3.200000e+01 : f32
    %197 = vector.broadcast %cst_66 : f32 to vector<8x1xf32>
    %198 = arith.divf %196, %197 : vector<8x1xf32>
    %199 = arith.mulf %193, %193 : vector<8x1xf32>
    %200 = arith.subf %198, %199 : vector<8x1xf32>
    %cst_67 = arith.constant 0.000000e+00 : f32
    %201 = vector.broadcast %cst_67 : f32 to vector<8x1xf32>
    %202 = arith.maximumf %200, %201 : vector<8x1xf32>
    %203 = vector.broadcast %193 : vector<8x1xf32> to vector<8x32xf32>
    %204 = arith.subf %189, %203 : vector<8x32xf32>
    %cst_68 = arith.constant 9.99999974E-6 : f32
    %205 = vector.broadcast %cst_68 : f32 to vector<8x1xf32>
    %206 = arith.addf %202, %205 : vector<8x1xf32>
    %207 = math.rsqrt %206 : vector<8x1xf32>
    %208 = vector.broadcast %207 : vector<8x1xf32> to vector<8x32xf32>
    %209 = arith.mulf %204, %208 : vector<8x32xf32>
    %210 = vector.broadcast %6 : vector<1x32xf32> to vector<8x32xf32>
    %211 = arith.mulf %209, %210 : vector<8x32xf32>
    %212 = vector.broadcast %7 : vector<1x32xf32> to vector<8x32xf32>
    %213 = arith.addf %211, %212 : vector<8x32xf32>
    %214 = arith.negf %213 : vector<8x32xf32>
    %215 = math.exp %214 : vector<8x32xf32>
    %cst_69 = arith.constant 1.000000e+00 : f32
    %216 = vector.broadcast %cst_69 : f32 to vector<8x32xf32>
    %217 = arith.addf %216, %215 : vector<8x32xf32>
    %218 = arith.divf %216, %217 : vector<8x32xf32>
    %219 = vector.extract_strided_slice %188 {offsets = [0, 32], sizes = [8, 32], strides = [1, 1]} : vector<8x128xf32> to vector<8x32xf32>
    %cst_70 = arith.constant dense<0.000000e+00> : vector<8xf32>
    %220 = vector.multi_reduction <add>, %219, %cst_70 [1] : vector<8x32xf32> to vector<8xf32>
    %221 = vector.shape_cast %220 : vector<8xf32> to vector<8x1xf32>
    %cst_71 = arith.constant 3.200000e+01 : f32
    %222 = vector.broadcast %cst_71 : f32 to vector<8x1xf32>
    %223 = arith.divf %221, %222 : vector<8x1xf32>
    %224 = arith.mulf %219, %219 : vector<8x32xf32>
    %cst_72 = arith.constant dense<0.000000e+00> : vector<8xf32>
    %225 = vector.multi_reduction <add>, %224, %cst_72 [1] : vector<8x32xf32> to vector<8xf32>
    %226 = vector.shape_cast %225 : vector<8xf32> to vector<8x1xf32>
    %cst_73 = arith.constant 3.200000e+01 : f32
    %227 = vector.broadcast %cst_73 : f32 to vector<8x1xf32>
    %228 = arith.divf %226, %227 : vector<8x1xf32>
    %229 = arith.mulf %223, %223 : vector<8x1xf32>
    %230 = arith.subf %228, %229 : vector<8x1xf32>
    %cst_74 = arith.constant 0.000000e+00 : f32
    %231 = vector.broadcast %cst_74 : f32 to vector<8x1xf32>
    %232 = arith.maximumf %230, %231 : vector<8x1xf32>
    %233 = vector.broadcast %223 : vector<8x1xf32> to vector<8x32xf32>
    %234 = arith.subf %219, %233 : vector<8x32xf32>
    %cst_75 = arith.constant 9.99999974E-6 : f32
    %235 = vector.broadcast %cst_75 : f32 to vector<8x1xf32>
    %236 = arith.addf %232, %235 : vector<8x1xf32>
    %237 = math.rsqrt %236 : vector<8x1xf32>
    %238 = vector.broadcast %237 : vector<8x1xf32> to vector<8x32xf32>
    %239 = arith.mulf %234, %238 : vector<8x32xf32>
    %240 = vector.broadcast %8 : vector<1x32xf32> to vector<8x32xf32>
    %241 = arith.mulf %239, %240 : vector<8x32xf32>
    %242 = vector.broadcast %9 : vector<1x32xf32> to vector<8x32xf32>
    %243 = arith.addf %241, %242 : vector<8x32xf32>
    %244 = arith.negf %243 : vector<8x32xf32>
    %245 = math.exp %244 : vector<8x32xf32>
    %cst_76 = arith.constant 1.000000e+00 : f32
    %246 = vector.broadcast %cst_76 : f32 to vector<8x32xf32>
    %247 = arith.addf %246, %245 : vector<8x32xf32>
    %248 = arith.divf %246, %247 : vector<8x32xf32>
    %249 = vector.extract_strided_slice %188 {offsets = [0, 64], sizes = [8, 32], strides = [1, 1]} : vector<8x128xf32> to vector<8x32xf32>
    %cst_77 = arith.constant dense<0.000000e+00> : vector<8xf32>
    %250 = vector.multi_reduction <add>, %249, %cst_77 [1] : vector<8x32xf32> to vector<8xf32>
    %251 = vector.shape_cast %250 : vector<8xf32> to vector<8x1xf32>
    %cst_78 = arith.constant 3.200000e+01 : f32
    %252 = vector.broadcast %cst_78 : f32 to vector<8x1xf32>
    %253 = arith.divf %251, %252 : vector<8x1xf32>
    %254 = arith.mulf %249, %249 : vector<8x32xf32>
    %cst_79 = arith.constant dense<0.000000e+00> : vector<8xf32>
    %255 = vector.multi_reduction <add>, %254, %cst_79 [1] : vector<8x32xf32> to vector<8xf32>
    %256 = vector.shape_cast %255 : vector<8xf32> to vector<8x1xf32>
    %cst_80 = arith.constant 3.200000e+01 : f32
    %257 = vector.broadcast %cst_80 : f32 to vector<8x1xf32>
    %258 = arith.divf %256, %257 : vector<8x1xf32>
    %259 = arith.mulf %253, %253 : vector<8x1xf32>
    %260 = arith.subf %258, %259 : vector<8x1xf32>
    %cst_81 = arith.constant 0.000000e+00 : f32
    %261 = vector.broadcast %cst_81 : f32 to vector<8x1xf32>
    %262 = arith.maximumf %260, %261 : vector<8x1xf32>
    %263 = vector.broadcast %253 : vector<8x1xf32> to vector<8x32xf32>
    %264 = arith.subf %249, %263 : vector<8x32xf32>
    %cst_82 = arith.constant 9.99999974E-6 : f32
    %265 = vector.broadcast %cst_82 : f32 to vector<8x1xf32>
    %266 = arith.addf %262, %265 : vector<8x1xf32>
    %267 = math.rsqrt %266 : vector<8x1xf32>
    %268 = vector.broadcast %267 : vector<8x1xf32> to vector<8x32xf32>
    %269 = arith.mulf %264, %268 : vector<8x32xf32>
    %270 = vector.broadcast %10 : vector<1x32xf32> to vector<8x32xf32>
    %271 = arith.mulf %269, %270 : vector<8x32xf32>
    %272 = vector.broadcast %11 : vector<1x32xf32> to vector<8x32xf32>
    %273 = arith.addf %271, %272 : vector<8x32xf32>
    %274 = math.tanh %273 : vector<8x32xf32>
    %275 = vector.extract_strided_slice %188 {offsets = [0, 96], sizes = [8, 32], strides = [1, 1]} : vector<8x128xf32> to vector<8x32xf32>
    %cst_83 = arith.constant dense<0.000000e+00> : vector<8xf32>
    %276 = vector.multi_reduction <add>, %275, %cst_83 [1] : vector<8x32xf32> to vector<8xf32>
    %277 = vector.shape_cast %276 : vector<8xf32> to vector<8x1xf32>
    %cst_84 = arith.constant 3.200000e+01 : f32
    %278 = vector.broadcast %cst_84 : f32 to vector<8x1xf32>
    %279 = arith.divf %277, %278 : vector<8x1xf32>
    %280 = arith.mulf %275, %275 : vector<8x32xf32>
    %cst_85 = arith.constant dense<0.000000e+00> : vector<8xf32>
    %281 = vector.multi_reduction <add>, %280, %cst_85 [1] : vector<8x32xf32> to vector<8xf32>
    %282 = vector.shape_cast %281 : vector<8xf32> to vector<8x1xf32>
    %cst_86 = arith.constant 3.200000e+01 : f32
    %283 = vector.broadcast %cst_86 : f32 to vector<8x1xf32>
    %284 = arith.divf %282, %283 : vector<8x1xf32>
    %285 = arith.mulf %279, %279 : vector<8x1xf32>
    %286 = arith.subf %284, %285 : vector<8x1xf32>
    %cst_87 = arith.constant 0.000000e+00 : f32
    %287 = vector.broadcast %cst_87 : f32 to vector<8x1xf32>
    %288 = arith.maximumf %286, %287 : vector<8x1xf32>
    %289 = vector.broadcast %279 : vector<8x1xf32> to vector<8x32xf32>
    %290 = arith.subf %275, %289 : vector<8x32xf32>
    %cst_88 = arith.constant 9.99999974E-6 : f32
    %291 = vector.broadcast %cst_88 : f32 to vector<8x1xf32>
    %292 = arith.addf %288, %291 : vector<8x1xf32>
    %293 = math.rsqrt %292 : vector<8x1xf32>
    %294 = vector.broadcast %293 : vector<8x1xf32> to vector<8x32xf32>
    %295 = arith.mulf %290, %294 : vector<8x32xf32>
    %296 = vector.broadcast %12 : vector<1x32xf32> to vector<8x32xf32>
    %297 = arith.mulf %295, %296 : vector<8x32xf32>
    %298 = vector.broadcast %13 : vector<1x32xf32> to vector<8x32xf32>
    %299 = arith.addf %297, %298 : vector<8x32xf32>
    %300 = arith.negf %299 : vector<8x32xf32>
    %301 = math.exp %300 : vector<8x32xf32>
    %cst_89 = arith.constant 1.000000e+00 : f32
    %302 = vector.broadcast %cst_89 : f32 to vector<8x32xf32>
    %303 = arith.addf %302, %301 : vector<8x32xf32>
    %304 = arith.divf %302, %303 : vector<8x32xf32>
    %305 = arith.mulf %248, %174 : vector<8x32xf32>
    %306 = arith.mulf %218, %274 : vector<8x32xf32>
    %307 = arith.addf %305, %306 : vector<8x32xf32>
    %cst_90 = arith.constant dense<0.000000e+00> : vector<8xf32>
    %308 = vector.multi_reduction <add>, %307, %cst_90 [1] : vector<8x32xf32> to vector<8xf32>
    %309 = vector.shape_cast %308 : vector<8xf32> to vector<8x1xf32>
    %cst_91 = arith.constant 3.200000e+01 : f32
    %310 = vector.broadcast %cst_91 : f32 to vector<8x1xf32>
    %311 = arith.divf %309, %310 : vector<8x1xf32>
    %312 = arith.mulf %307, %307 : vector<8x32xf32>
    %cst_92 = arith.constant dense<0.000000e+00> : vector<8xf32>
    %313 = vector.multi_reduction <add>, %312, %cst_92 [1] : vector<8x32xf32> to vector<8xf32>
    %314 = vector.shape_cast %313 : vector<8xf32> to vector<8x1xf32>
    %cst_93 = arith.constant 3.200000e+01 : f32
    %315 = vector.broadcast %cst_93 : f32 to vector<8x1xf32>
    %316 = arith.divf %314, %315 : vector<8x1xf32>
    %317 = arith.mulf %311, %311 : vector<8x1xf32>
    %318 = arith.subf %316, %317 : vector<8x1xf32>
    %cst_94 = arith.constant 0.000000e+00 : f32
    %319 = vector.broadcast %cst_94 : f32 to vector<8x1xf32>
    %320 = arith.maximumf %318, %319 : vector<8x1xf32>
    %321 = vector.broadcast %311 : vector<8x1xf32> to vector<8x32xf32>
    %322 = arith.subf %307, %321 : vector<8x32xf32>
    %cst_95 = arith.constant 9.99999974E-6 : f32
    %323 = vector.broadcast %cst_95 : f32 to vector<8x1xf32>
    %324 = arith.addf %320, %323 : vector<8x1xf32>
    %325 = math.rsqrt %324 : vector<8x1xf32>
    %326 = vector.broadcast %325 : vector<8x1xf32> to vector<8x32xf32>
    %327 = arith.mulf %322, %326 : vector<8x32xf32>
    %328 = vector.broadcast %14 : vector<1x32xf32> to vector<8x32xf32>
    %329 = arith.mulf %327, %328 : vector<8x32xf32>
    %330 = vector.broadcast %15 : vector<1x32xf32> to vector<8x32xf32>
    %331 = arith.addf %329, %330 : vector<8x32xf32>
    %332 = math.tanh %331 : vector<8x32xf32>
    %333 = arith.mulf %304, %332 : vector<8x32xf32>
    %334 = arith.index_cast %c1_i32_59 : i32 to index
    %c0_96 = arith.constant 0 : index
    %c0_97 = arith.constant 0 : index
    %335 = vector.load %arg10[%334, %c0_96, %c0_97] : memref<4x8x32xf32, #tpu.memory_space<vmem>>, vector<1x8x32xf32>
    %336 = vector.shape_cast %335 : vector<1x8x32xf32> to vector<8x32xf32>
    %337 = vector.shape_cast %333 : vector<8x32xf32> to vector<1x8x32xf32>
    tpu.vector_store %arg10[%334, %c0_96, %c0_97], %337 {strides = array<i32>} : memref<4x8x32xf32, #tpu.memory_space<vmem>>, vector<1x8x32xf32>,
    %c1_i32_98 = arith.constant 1 : i32
    %338 = arith.cmpi eq, %c1_i32_59, %c1_i32_98 : i32
    %339 = arith.select %338, %333, %182 : vector<8x32xf32>
    %340 = arith.select %338, %331, %183 : vector<8x32xf32>
    %c2_i32 = arith.constant 2 : i32
    %341 = arith.index_cast %c2_i32 : i32 to index
    %c0_99 = arith.constant 0 : index
    %c0_100 = arith.constant 0 : index
    %342 = vector.load %arg15[%341, %c0_99, %c0_100] : memref<4x8x128xf32, #tpu.memory_space<vmem>>, vector<1x8x128xf32>
    %343 = vector.shape_cast %342 : vector<1x8x128xf32> to vector<8x128xf32>
    %cst_101 = arith.constant dense<0.000000e+00> : vector<8x128xf32>
    %344 = tpu.matmul %333, %3, %cst_101 {dimension_numbers = #tpu.dot_dimension_numbers<[1], [0], [0], [1], [0, 0, 1, 1], [], []>} : vector<8x32xf32>, vector<32x128xf32>, vector<8x128xf32> -> vector<8x128xf32>
    %345 = arith.addf %343, %344 : vector<8x128xf32>
    %346 = vector.extract_strided_slice %345 {offsets = [0, 0], sizes = [8, 32], strides = [1, 1]} : vector<8x128xf32> to vector<8x32xf32>
    %cst_102 = arith.constant dense<0.000000e+00> : vector<8xf32>
    %347 = vector.multi_reduction <add>, %346, %cst_102 [1] : vector<8x32xf32> to vector<8xf32>
    %348 = vector.shape_cast %347 : vector<8xf32> to vector<8x1xf32>
    %cst_103 = arith.constant 3.200000e+01 : f32
    %349 = vector.broadcast %cst_103 : f32 to vector<8x1xf32>
    %350 = arith.divf %348, %349 : vector<8x1xf32>
    %351 = arith.mulf %346, %346 : vector<8x32xf32>
    %cst_104 = arith.constant dense<0.000000e+00> : vector<8xf32>
    %352 = vector.multi_reduction <add>, %351, %cst_104 [1] : vector<8x32xf32> to vector<8xf32>
    %353 = vector.shape_cast %352 : vector<8xf32> to vector<8x1xf32>
    %cst_105 = arith.constant 3.200000e+01 : f32
    %354 = vector.broadcast %cst_105 : f32 to vector<8x1xf32>
    %355 = arith.divf %353, %354 : vector<8x1xf32>
    %356 = arith.mulf %350, %350 : vector<8x1xf32>
    %357 = arith.subf %355, %356 : vector<8x1xf32>
    %cst_106 = arith.constant 0.000000e+00 : f32
    %358 = vector.broadcast %cst_106 : f32 to vector<8x1xf32>
    %359 = arith.maximumf %357, %358 : vector<8x1xf32>
    %360 = vector.broadcast %350 : vector<8x1xf32> to vector<8x32xf32>
    %361 = arith.subf %346, %360 : vector<8x32xf32>
    %cst_107 = arith.constant 9.99999974E-6 : f32
    %362 = vector.broadcast %cst_107 : f32 to vector<8x1xf32>
    %363 = arith.addf %359, %362 : vector<8x1xf32>
    %364 = math.rsqrt %363 : vector<8x1xf32>
    %365 = vector.broadcast %364 : vector<8x1xf32> to vector<8x32xf32>
    %366 = arith.mulf %361, %365 : vector<8x32xf32>
    %367 = vector.broadcast %6 : vector<1x32xf32> to vector<8x32xf32>
    %368 = arith.mulf %366, %367 : vector<8x32xf32>
    %369 = vector.broadcast %7 : vector<1x32xf32> to vector<8x32xf32>
    %370 = arith.addf %368, %369 : vector<8x32xf32>
    %371 = arith.negf %370 : vector<8x32xf32>
    %372 = math.exp %371 : vector<8x32xf32>
    %cst_108 = arith.constant 1.000000e+00 : f32
    %373 = vector.broadcast %cst_108 : f32 to vector<8x32xf32>
    %374 = arith.addf %373, %372 : vector<8x32xf32>
    %375 = arith.divf %373, %374 : vector<8x32xf32>
    %376 = vector.extract_strided_slice %345 {offsets = [0, 32], sizes = [8, 32], strides = [1, 1]} : vector<8x128xf32> to vector<8x32xf32>
    %cst_109 = arith.constant dense<0.000000e+00> : vector<8xf32>
    %377 = vector.multi_reduction <add>, %376, %cst_109 [1] : vector<8x32xf32> to vector<8xf32>
    %378 = vector.shape_cast %377 : vector<8xf32> to vector<8x1xf32>
    %cst_110 = arith.constant 3.200000e+01 : f32
    %379 = vector.broadcast %cst_110 : f32 to vector<8x1xf32>
    %380 = arith.divf %378, %379 : vector<8x1xf32>
    %381 = arith.mulf %376, %376 : vector<8x32xf32>
    %cst_111 = arith.constant dense<0.000000e+00> : vector<8xf32>
    %382 = vector.multi_reduction <add>, %381, %cst_111 [1] : vector<8x32xf32> to vector<8xf32>
    %383 = vector.shape_cast %382 : vector<8xf32> to vector<8x1xf32>
    %cst_112 = arith.constant 3.200000e+01 : f32
    %384 = vector.broadcast %cst_112 : f32 to vector<8x1xf32>
    %385 = arith.divf %383, %384 : vector<8x1xf32>
    %386 = arith.mulf %380, %380 : vector<8x1xf32>
    %387 = arith.subf %385, %386 : vector<8x1xf32>
    %cst_113 = arith.constant 0.000000e+00 : f32
    %388 = vector.broadcast %cst_113 : f32 to vector<8x1xf32>
    %389 = arith.maximumf %387, %388 : vector<8x1xf32>
    %390 = vector.broadcast %380 : vector<8x1xf32> to vector<8x32xf32>
    %391 = arith.subf %376, %390 : vector<8x32xf32>
    %cst_114 = arith.constant 9.99999974E-6 : f32
    %392 = vector.broadcast %cst_114 : f32 to vector<8x1xf32>
    %393 = arith.addf %389, %392 : vector<8x1xf32>
    %394 = math.rsqrt %393 : vector<8x1xf32>
    %395 = vector.broadcast %394 : vector<8x1xf32> to vector<8x32xf32>
    %396 = arith.mulf %391, %395 : vector<8x32xf32>
    %397 = vector.broadcast %8 : vector<1x32xf32> to vector<8x32xf32>
    %398 = arith.mulf %396, %397 : vector<8x32xf32>
    %399 = vector.broadcast %9 : vector<1x32xf32> to vector<8x32xf32>
    %400 = arith.addf %398, %399 : vector<8x32xf32>
    %401 = arith.negf %400 : vector<8x32xf32>
    %402 = math.exp %401 : vector<8x32xf32>
    %cst_115 = arith.constant 1.000000e+00 : f32
    %403 = vector.broadcast %cst_115 : f32 to vector<8x32xf32>
    %404 = arith.addf %403, %402 : vector<8x32xf32>
    %405 = arith.divf %403, %404 : vector<8x32xf32>
    %406 = vector.extract_strided_slice %345 {offsets = [0, 64], sizes = [8, 32], strides = [1, 1]} : vector<8x128xf32> to vector<8x32xf32>
    %cst_116 = arith.constant dense<0.000000e+00> : vector<8xf32>
    %407 = vector.multi_reduction <add>, %406, %cst_116 [1] : vector<8x32xf32> to vector<8xf32>
    %408 = vector.shape_cast %407 : vector<8xf32> to vector<8x1xf32>
    %cst_117 = arith.constant 3.200000e+01 : f32
    %409 = vector.broadcast %cst_117 : f32 to vector<8x1xf32>
    %410 = arith.divf %408, %409 : vector<8x1xf32>
    %411 = arith.mulf %406, %406 : vector<8x32xf32>
    %cst_118 = arith.constant dense<0.000000e+00> : vector<8xf32>
    %412 = vector.multi_reduction <add>, %411, %cst_118 [1] : vector<8x32xf32> to vector<8xf32>
    %413 = vector.shape_cast %412 : vector<8xf32> to vector<8x1xf32>
    %cst_119 = arith.constant 3.200000e+01 : f32
    %414 = vector.broadcast %cst_119 : f32 to vector<8x1xf32>
    %415 = arith.divf %413, %414 : vector<8x1xf32>
    %416 = arith.mulf %410, %410 : vector<8x1xf32>
    %417 = arith.subf %415, %416 : vector<8x1xf32>
    %cst_120 = arith.constant 0.000000e+00 : f32
    %418 = vector.broadcast %cst_120 : f32 to vector<8x1xf32>
    %419 = arith.maximumf %417, %418 : vector<8x1xf32>
    %420 = vector.broadcast %410 : vector<8x1xf32> to vector<8x32xf32>
    %421 = arith.subf %406, %420 : vector<8x32xf32>
    %cst_121 = arith.constant 9.99999974E-6 : f32
    %422 = vector.broadcast %cst_121 : f32 to vector<8x1xf32>
    %423 = arith.addf %419, %422 : vector<8x1xf32>
    %424 = math.rsqrt %423 : vector<8x1xf32>
    %425 = vector.broadcast %424 : vector<8x1xf32> to vector<8x32xf32>
    %426 = arith.mulf %421, %425 : vector<8x32xf32>
    %427 = vector.broadcast %10 : vector<1x32xf32> to vector<8x32xf32>
    %428 = arith.mulf %426, %427 : vector<8x32xf32>
    %429 = vector.broadcast %11 : vector<1x32xf32> to vector<8x32xf32>
    %430 = arith.addf %428, %429 : vector<8x32xf32>
    %431 = math.tanh %430 : vector<8x32xf32>
    %432 = vector.extract_strided_slice %345 {offsets = [0, 96], sizes = [8, 32], strides = [1, 1]} : vector<8x128xf32> to vector<8x32xf32>
    %cst_122 = arith.constant dense<0.000000e+00> : vector<8xf32>
    %433 = vector.multi_reduction <add>, %432, %cst_122 [1] : vector<8x32xf32> to vector<8xf32>
    %434 = vector.shape_cast %433 : vector<8xf32> to vector<8x1xf32>
    %cst_123 = arith.constant 3.200000e+01 : f32
    %435 = vector.broadcast %cst_123 : f32 to vector<8x1xf32>
    %436 = arith.divf %434, %435 : vector<8x1xf32>
    %437 = arith.mulf %432, %432 : vector<8x32xf32>
    %cst_124 = arith.constant dense<0.000000e+00> : vector<8xf32>
    %438 = vector.multi_reduction <add>, %437, %cst_124 [1] : vector<8x32xf32> to vector<8xf32>
    %439 = vector.shape_cast %438 : vector<8xf32> to vector<8x1xf32>
    %cst_125 = arith.constant 3.200000e+01 : f32
    %440 = vector.broadcast %cst_125 : f32 to vector<8x1xf32>
    %441 = arith.divf %439, %440 : vector<8x1xf32>
    %442 = arith.mulf %436, %436 : vector<8x1xf32>
    %443 = arith.subf %441, %442 : vector<8x1xf32>
    %cst_126 = arith.constant 0.000000e+00 : f32
    %444 = vector.broadcast %cst_126 : f32 to vector<8x1xf32>
    %445 = arith.maximumf %443, %444 : vector<8x1xf32>
    %446 = vector.broadcast %436 : vector<8x1xf32> to vector<8x32xf32>
    %447 = arith.subf %432, %446 : vector<8x32xf32>
    %cst_127 = arith.constant 9.99999974E-6 : f32
    %448 = vector.broadcast %cst_127 : f32 to vector<8x1xf32>
    %449 = arith.addf %445, %448 : vector<8x1xf32>
    %450 = math.rsqrt %449 : vector<8x1xf32>
    %451 = vector.broadcast %450 : vector<8x1xf32> to vector<8x32xf32>
    %452 = arith.mulf %447, %451 : vector<8x32xf32>
    %453 = vector.broadcast %12 : vector<1x32xf32> to vector<8x32xf32>
    %454 = arith.mulf %452, %453 : vector<8x32xf32>
    %455 = vector.broadcast %13 : vector<1x32xf32> to vector<8x32xf32>
    %456 = arith.addf %454, %455 : vector<8x32xf32>
    %457 = arith.negf %456 : vector<8x32xf32>
    %458 = math.exp %457 : vector<8x32xf32>
    %cst_128 = arith.constant 1.000000e+00 : f32
    %459 = vector.broadcast %cst_128 : f32 to vector<8x32xf32>
    %460 = arith.addf %459, %458 : vector<8x32xf32>
    %461 = arith.divf %459, %460 : vector<8x32xf32>
    %462 = arith.mulf %405, %331 : vector<8x32xf32>
    %463 = arith.mulf %375, %431 : vector<8x32xf32>
    %464 = arith.addf %462, %463 : vector<8x32xf32>
    %cst_129 = arith.constant dense<0.000000e+00> : vector<8xf32>
    %465 = vector.multi_reduction <add>, %464, %cst_129 [1] : vector<8x32xf32> to vector<8xf32>
    %466 = vector.shape_cast %465 : vector<8xf32> to vector<8x1xf32>
    %cst_130 = arith.constant 3.200000e+01 : f32
    %467 = vector.broadcast %cst_130 : f32 to vector<8x1xf32>
    %468 = arith.divf %466, %467 : vector<8x1xf32>
    %469 = arith.mulf %464, %464 : vector<8x32xf32>
    %cst_131 = arith.constant dense<0.000000e+00> : vector<8xf32>
    %470 = vector.multi_reduction <add>, %469, %cst_131 [1] : vector<8x32xf32> to vector<8xf32>
    %471 = vector.shape_cast %470 : vector<8xf32> to vector<8x1xf32>
    %cst_132 = arith.constant 3.200000e+01 : f32
    %472 = vector.broadcast %cst_132 : f32 to vector<8x1xf32>
    %473 = arith.divf %471, %472 : vector<8x1xf32>
    %474 = arith.mulf %468, %468 : vector<8x1xf32>
    %475 = arith.subf %473, %474 : vector<8x1xf32>
    %cst_133 = arith.constant 0.000000e+00 : f32
    %476 = vector.broadcast %cst_133 : f32 to vector<8x1xf32>
    %477 = arith.maximumf %475, %476 : vector<8x1xf32>
    %478 = vector.broadcast %468 : vector<8x1xf32> to vector<8x32xf32>
    %479 = arith.subf %464, %478 : vector<8x32xf32>
    %cst_134 = arith.constant 9.99999974E-6 : f32
    %480 = vector.broadcast %cst_134 : f32 to vector<8x1xf32>
    %481 = arith.addf %477, %480 : vector<8x1xf32>
    %482 = math.rsqrt %481 : vector<8x1xf32>
    %483 = vector.broadcast %482 : vector<8x1xf32> to vector<8x32xf32>
    %484 = arith.mulf %479, %483 : vector<8x32xf32>
    %485 = vector.broadcast %14 : vector<1x32xf32> to vector<8x32xf32>
    %486 = arith.mulf %484, %485 : vector<8x32xf32>
    %487 = vector.broadcast %15 : vector<1x32xf32> to vector<8x32xf32>
    %488 = arith.addf %486, %487 : vector<8x32xf32>
    %489 = math.tanh %488 : vector<8x32xf32>
    %490 = arith.mulf %461, %489 : vector<8x32xf32>
    %491 = arith.index_cast %c2_i32 : i32 to index
    %c0_135 = arith.constant 0 : index
    %c0_136 = arith.constant 0 : index
    %492 = vector.load %arg10[%491, %c0_135, %c0_136] : memref<4x8x32xf32, #tpu.memory_space<vmem>>, vector<1x8x32xf32>
    %493 = vector.shape_cast %492 : vector<1x8x32xf32> to vector<8x32xf32>
    %494 = vector.shape_cast %490 : vector<8x32xf32> to vector<1x8x32xf32>
    tpu.vector_store %arg10[%491, %c0_135, %c0_136], %494 {strides = array<i32>} : memref<4x8x32xf32, #tpu.memory_space<vmem>>, vector<1x8x32xf32>,
    %c1_i32_137 = arith.constant 1 : i32
    %495 = arith.cmpi eq, %c2_i32, %c1_i32_137 : i32
    %496 = arith.select %495, %490, %339 : vector<8x32xf32>
    %497 = arith.select %495, %488, %340 : vector<8x32xf32>
    %c3_i32 = arith.constant 3 : i32
    %498 = arith.index_cast %c3_i32 : i32 to index
    %c0_138 = arith.constant 0 : index
    %c0_139 = arith.constant 0 : index
    %499 = vector.load %arg15[%498, %c0_138, %c0_139] : memref<4x8x128xf32, #tpu.memory_space<vmem>>, vector<1x8x128xf32>
    %500 = vector.shape_cast %499 : vector<1x8x128xf32> to vector<8x128xf32>
    %cst_140 = arith.constant dense<0.000000e+00> : vector<8x128xf32>
    %501 = tpu.matmul %490, %3, %cst_140 {dimension_numbers = #tpu.dot_dimension_numbers<[1], [0], [0], [1], [0, 0, 1, 1], [], []>} : vector<8x32xf32>, vector<32x128xf32>, vector<8x128xf32> -> vector<8x128xf32>
    %502 = arith.addf %500, %501 : vector<8x128xf32>
    %503 = vector.extract_strided_slice %502 {offsets = [0, 0], sizes = [8, 32], strides = [1, 1]} : vector<8x128xf32> to vector<8x32xf32>
    %cst_141 = arith.constant dense<0.000000e+00> : vector<8xf32>
    %504 = vector.multi_reduction <add>, %503, %cst_141 [1] : vector<8x32xf32> to vector<8xf32>
    %505 = vector.shape_cast %504 : vector<8xf32> to vector<8x1xf32>
    %cst_142 = arith.constant 3.200000e+01 : f32
    %506 = vector.broadcast %cst_142 : f32 to vector<8x1xf32>
    %507 = arith.divf %505, %506 : vector<8x1xf32>
    %508 = arith.mulf %503, %503 : vector<8x32xf32>
    %cst_143 = arith.constant dense<0.000000e+00> : vector<8xf32>
    %509 = vector.multi_reduction <add>, %508, %cst_143 [1] : vector<8x32xf32> to vector<8xf32>
    %510 = vector.shape_cast %509 : vector<8xf32> to vector<8x1xf32>
    %cst_144 = arith.constant 3.200000e+01 : f32
    %511 = vector.broadcast %cst_144 : f32 to vector<8x1xf32>
    %512 = arith.divf %510, %511 : vector<8x1xf32>
    %513 = arith.mulf %507, %507 : vector<8x1xf32>
    %514 = arith.subf %512, %513 : vector<8x1xf32>
    %cst_145 = arith.constant 0.000000e+00 : f32
    %515 = vector.broadcast %cst_145 : f32 to vector<8x1xf32>
    %516 = arith.maximumf %514, %515 : vector<8x1xf32>
    %517 = vector.broadcast %507 : vector<8x1xf32> to vector<8x32xf32>
    %518 = arith.subf %503, %517 : vector<8x32xf32>
    %cst_146 = arith.constant 9.99999974E-6 : f32
    %519 = vector.broadcast %cst_146 : f32 to vector<8x1xf32>
    %520 = arith.addf %516, %519 : vector<8x1xf32>
    %521 = math.rsqrt %520 : vector<8x1xf32>
    %522 = vector.broadcast %521 : vector<8x1xf32> to vector<8x32xf32>
    %523 = arith.mulf %518, %522 : vector<8x32xf32>
    %524 = vector.broadcast %6 : vector<1x32xf32> to vector<8x32xf32>
    %525 = arith.mulf %523, %524 : vector<8x32xf32>
    %526 = vector.broadcast %7 : vector<1x32xf32> to vector<8x32xf32>
    %527 = arith.addf %525, %526 : vector<8x32xf32>
    %528 = arith.negf %527 : vector<8x32xf32>
    %529 = math.exp %528 : vector<8x32xf32>
    %cst_147 = arith.constant 1.000000e+00 : f32
    %530 = vector.broadcast %cst_147 : f32 to vector<8x32xf32>
    %531 = arith.addf %530, %529 : vector<8x32xf32>
    %532 = arith.divf %530, %531 : vector<8x32xf32>
    %533 = vector.extract_strided_slice %502 {offsets = [0, 32], sizes = [8, 32], strides = [1, 1]} : vector<8x128xf32> to vector<8x32xf32>
    %cst_148 = arith.constant dense<0.000000e+00> : vector<8xf32>
    %534 = vector.multi_reduction <add>, %533, %cst_148 [1] : vector<8x32xf32> to vector<8xf32>
    %535 = vector.shape_cast %534 : vector<8xf32> to vector<8x1xf32>
    %cst_149 = arith.constant 3.200000e+01 : f32
    %536 = vector.broadcast %cst_149 : f32 to vector<8x1xf32>
    %537 = arith.divf %535, %536 : vector<8x1xf32>
    %538 = arith.mulf %533, %533 : vector<8x32xf32>
    %cst_150 = arith.constant dense<0.000000e+00> : vector<8xf32>
    %539 = vector.multi_reduction <add>, %538, %cst_150 [1] : vector<8x32xf32> to vector<8xf32>
    %540 = vector.shape_cast %539 : vector<8xf32> to vector<8x1xf32>
    %cst_151 = arith.constant 3.200000e+01 : f32
    %541 = vector.broadcast %cst_151 : f32 to vector<8x1xf32>
    %542 = arith.divf %540, %541 : vector<8x1xf32>
    %543 = arith.mulf %537, %537 : vector<8x1xf32>
    %544 = arith.subf %542, %543 : vector<8x1xf32>
    %cst_152 = arith.constant 0.000000e+00 : f32
    %545 = vector.broadcast %cst_152 : f32 to vector<8x1xf32>
    %546 = arith.maximumf %544, %545 : vector<8x1xf32>
    %547 = vector.broadcast %537 : vector<8x1xf32> to vector<8x32xf32>
    %548 = arith.subf %533, %547 : vector<8x32xf32>
    %cst_153 = arith.constant 9.99999974E-6 : f32
    %549 = vector.broadcast %cst_153 : f32 to vector<8x1xf32>
    %550 = arith.addf %546, %549 : vector<8x1xf32>
    %551 = math.rsqrt %550 : vector<8x1xf32>
    %552 = vector.broadcast %551 : vector<8x1xf32> to vector<8x32xf32>
    %553 = arith.mulf %548, %552 : vector<8x32xf32>
    %554 = vector.broadcast %8 : vector<1x32xf32> to vector<8x32xf32>
    %555 = arith.mulf %553, %554 : vector<8x32xf32>
    %556 = vector.broadcast %9 : vector<1x32xf32> to vector<8x32xf32>
    %557 = arith.addf %555, %556 : vector<8x32xf32>
    %558 = arith.negf %557 : vector<8x32xf32>
    %559 = math.exp %558 : vector<8x32xf32>
    %cst_154 = arith.constant 1.000000e+00 : f32
    %560 = vector.broadcast %cst_154 : f32 to vector<8x32xf32>
    %561 = arith.addf %560, %559 : vector<8x32xf32>
    %562 = arith.divf %560, %561 : vector<8x32xf32>
    %563 = vector.extract_strided_slice %502 {offsets = [0, 64], sizes = [8, 32], strides = [1, 1]} : vector<8x128xf32> to vector<8x32xf32>
    %cst_155 = arith.constant dense<0.000000e+00> : vector<8xf32>
    %564 = vector.multi_reduction <add>, %563, %cst_155 [1] : vector<8x32xf32> to vector<8xf32>
    %565 = vector.shape_cast %564 : vector<8xf32> to vector<8x1xf32>
    %cst_156 = arith.constant 3.200000e+01 : f32
    %566 = vector.broadcast %cst_156 : f32 to vector<8x1xf32>
    %567 = arith.divf %565, %566 : vector<8x1xf32>
    %568 = arith.mulf %563, %563 : vector<8x32xf32>
    %cst_157 = arith.constant dense<0.000000e+00> : vector<8xf32>
    %569 = vector.multi_reduction <add>, %568, %cst_157 [1] : vector<8x32xf32> to vector<8xf32>
    %570 = vector.shape_cast %569 : vector<8xf32> to vector<8x1xf32>
    %cst_158 = arith.constant 3.200000e+01 : f32
    %571 = vector.broadcast %cst_158 : f32 to vector<8x1xf32>
    %572 = arith.divf %570, %571 : vector<8x1xf32>
    %573 = arith.mulf %567, %567 : vector<8x1xf32>
    %574 = arith.subf %572, %573 : vector<8x1xf32>
    %cst_159 = arith.constant 0.000000e+00 : f32
    %575 = vector.broadcast %cst_159 : f32 to vector<8x1xf32>
    %576 = arith.maximumf %574, %575 : vector<8x1xf32>
    %577 = vector.broadcast %567 : vector<8x1xf32> to vector<8x32xf32>
    %578 = arith.subf %563, %577 : vector<8x32xf32>
    %cst_160 = arith.constant 9.99999974E-6 : f32
    %579 = vector.broadcast %cst_160 : f32 to vector<8x1xf32>
    %580 = arith.addf %576, %579 : vector<8x1xf32>
    %581 = math.rsqrt %580 : vector<8x1xf32>
    %582 = vector.broadcast %581 : vector<8x1xf32> to vector<8x32xf32>
    %583 = arith.mulf %578, %582 : vector<8x32xf32>
    %584 = vector.broadcast %10 : vector<1x32xf32> to vector<8x32xf32>
    %585 = arith.mulf %583, %584 : vector<8x32xf32>
    %586 = vector.broadcast %11 : vector<1x32xf32> to vector<8x32xf32>
    %587 = arith.addf %585, %586 : vector<8x32xf32>
    %588 = math.tanh %587 : vector<8x32xf32>
    %589 = vector.extract_strided_slice %502 {offsets = [0, 96], sizes = [8, 32], strides = [1, 1]} : vector<8x128xf32> to vector<8x32xf32>
    %cst_161 = arith.constant dense<0.000000e+00> : vector<8xf32>
    %590 = vector.multi_reduction <add>, %589, %cst_161 [1] : vector<8x32xf32> to vector<8xf32>
    %591 = vector.shape_cast %590 : vector<8xf32> to vector<8x1xf32>
    %cst_162 = arith.constant 3.200000e+01 : f32
    %592 = vector.broadcast %cst_162 : f32 to vector<8x1xf32>
    %593 = arith.divf %591, %592 : vector<8x1xf32>
    %594 = arith.mulf %589, %589 : vector<8x32xf32>
    %cst_163 = arith.constant dense<0.000000e+00> : vector<8xf32>
    %595 = vector.multi_reduction <add>, %594, %cst_163 [1] : vector<8x32xf32> to vector<8xf32>
    %596 = vector.shape_cast %595 : vector<8xf32> to vector<8x1xf32>
    %cst_164 = arith.constant 3.200000e+01 : f32
    %597 = vector.broadcast %cst_164 : f32 to vector<8x1xf32>
    %598 = arith.divf %596, %597 : vector<8x1xf32>
    %599 = arith.mulf %593, %593 : vector<8x1xf32>
    %600 = arith.subf %598, %599 : vector<8x1xf32>
    %cst_165 = arith.constant 0.000000e+00 : f32
    %601 = vector.broadcast %cst_165 : f32 to vector<8x1xf32>
    %602 = arith.maximumf %600, %601 : vector<8x1xf32>
    %603 = vector.broadcast %593 : vector<8x1xf32> to vector<8x32xf32>
    %604 = arith.subf %589, %603 : vector<8x32xf32>
    %cst_166 = arith.constant 9.99999974E-6 : f32
    %605 = vector.broadcast %cst_166 : f32 to vector<8x1xf32>
    %606 = arith.addf %602, %605 : vector<8x1xf32>
    %607 = math.rsqrt %606 : vector<8x1xf32>
    %608 = vector.broadcast %607 : vector<8x1xf32> to vector<8x32xf32>
    %609 = arith.mulf %604, %608 : vector<8x32xf32>
    %610 = vector.broadcast %12 : vector<1x32xf32> to vector<8x32xf32>
    %611 = arith.mulf %609, %610 : vector<8x32xf32>
    %612 = vector.broadcast %13 : vector<1x32xf32> to vector<8x32xf32>
    %613 = arith.addf %611, %612 : vector<8x32xf32>
    %614 = arith.negf %613 : vector<8x32xf32>
    %615 = math.exp %614 : vector<8x32xf32>
    %cst_167 = arith.constant 1.000000e+00 : f32
    %616 = vector.broadcast %cst_167 : f32 to vector<8x32xf32>
    %617 = arith.addf %616, %615 : vector<8x32xf32>
    %618 = arith.divf %616, %617 : vector<8x32xf32>
    %619 = arith.mulf %562, %488 : vector<8x32xf32>
    %620 = arith.mulf %532, %588 : vector<8x32xf32>
    %621 = arith.addf %619, %620 : vector<8x32xf32>
    %cst_168 = arith.constant dense<0.000000e+00> : vector<8xf32>
    %622 = vector.multi_reduction <add>, %621, %cst_168 [1] : vector<8x32xf32> to vector<8xf32>
    %623 = vector.shape_cast %622 : vector<8xf32> to vector<8x1xf32>
    %cst_169 = arith.constant 3.200000e+01 : f32
    %624 = vector.broadcast %cst_169 : f32 to vector<8x1xf32>
    %625 = arith.divf %623, %624 : vector<8x1xf32>
    %626 = arith.mulf %621, %621 : vector<8x32xf32>
    %cst_170 = arith.constant dense<0.000000e+00> : vector<8xf32>
    %627 = vector.multi_reduction <add>, %626, %cst_170 [1] : vector<8x32xf32> to vector<8xf32>
    %628 = vector.shape_cast %627 : vector<8xf32> to vector<8x1xf32>
    %cst_171 = arith.constant 3.200000e+01 : f32
    %629 = vector.broadcast %cst_171 : f32 to vector<8x1xf32>
    %630 = arith.divf %628, %629 : vector<8x1xf32>
    %631 = arith.mulf %625, %625 : vector<8x1xf32>
    %632 = arith.subf %630, %631 : vector<8x1xf32>
    %cst_172 = arith.constant 0.000000e+00 : f32
    %633 = vector.broadcast %cst_172 : f32 to vector<8x1xf32>
    %634 = arith.maximumf %632, %633 : vector<8x1xf32>
    %635 = vector.broadcast %625 : vector<8x1xf32> to vector<8x32xf32>
    %636 = arith.subf %621, %635 : vector<8x32xf32>
    %cst_173 = arith.constant 9.99999974E-6 : f32
    %637 = vector.broadcast %cst_173 : f32 to vector<8x1xf32>
    %638 = arith.addf %634, %637 : vector<8x1xf32>
    %639 = math.rsqrt %638 : vector<8x1xf32>
    %640 = vector.broadcast %639 : vector<8x1xf32> to vector<8x32xf32>
    %641 = arith.mulf %636, %640 : vector<8x32xf32>
    %642 = vector.broadcast %14 : vector<1x32xf32> to vector<8x32xf32>
    %643 = arith.mulf %641, %642 : vector<8x32xf32>
    %644 = vector.broadcast %15 : vector<1x32xf32> to vector<8x32xf32>
    %645 = arith.addf %643, %644 : vector<8x32xf32>
    %646 = math.tanh %645 : vector<8x32xf32>
    %647 = arith.mulf %618, %646 : vector<8x32xf32>
    %648 = arith.index_cast %c3_i32 : i32 to index
    %c0_174 = arith.constant 0 : index
    %c0_175 = arith.constant 0 : index
    %649 = vector.load %arg10[%648, %c0_174, %c0_175] : memref<4x8x32xf32, #tpu.memory_space<vmem>>, vector<1x8x32xf32>
    %650 = vector.shape_cast %649 : vector<1x8x32xf32> to vector<8x32xf32>
    %651 = vector.shape_cast %647 : vector<8x32xf32> to vector<1x8x32xf32>
    tpu.vector_store %arg10[%648, %c0_174, %c0_175], %651 {strides = array<i32>} : memref<4x8x32xf32, #tpu.memory_space<vmem>>, vector<1x8x32xf32>,
    %c1_i32_176 = arith.constant 1 : i32
    %652 = arith.cmpi eq, %c3_i32, %c1_i32_176 : i32
    %653 = arith.select %652, %647, %496 : vector<8x32xf32>
    %654 = arith.select %652, %645, %497 : vector<8x32xf32>
    %c4_i32 = arith.constant 4 : i32
    %c0_177 = arith.constant 0 : index
    %c0_178 = arith.constant 0 : index
    %655 = vector.load %arg13[%c0_177, %c0_178] : memref<8x32xf32, #tpu.memory_space<vmem>>, vector<8x32xf32>
    tpu.vector_store %arg13[%c0_177, %c0_178], %647 {strides = array<i32>} : memref<8x32xf32, #tpu.memory_space<vmem>>, vector<8x32xf32>,
    %c0_179 = arith.constant 0 : index
    %c0_180 = arith.constant 0 : index
    %656 = vector.load %arg14[%c0_179, %c0_180] : memref<8x32xf32, #tpu.memory_space<vmem>>, vector<8x32xf32>
    tpu.vector_store %arg14[%c0_179, %c0_180], %645 {strides = array<i32>} : memref<8x32xf32, #tpu.memory_space<vmem>>, vector<8x32xf32>,
    %c2_i32_181 = arith.constant 2 : i32
    %657 = arith.cmpi eq, %arg1, %c2_i32_181 : i32
    %658 = arith.extui %657 : i1 to i32
    %c0_i32_182 = arith.constant 0 : i32
    %659 = arith.cmpi ne, %658, %c0_i32_182 : i32
    scf.if %659 {
      %c0_183 = arith.constant 0 : index
      %c0_184 = arith.constant 0 : index
      %660 = vector.load %arg11[%c0_183, %c0_184] : memref<8x32xf32, #tpu.memory_space<vmem>>, vector<8x32xf32>
      tpu.vector_store %arg11[%c0_183, %c0_184], %653 {strides = array<i32>} : memref<8x32xf32, #tpu.memory_space<vmem>>, vector<8x32xf32>,
      %c0_185 = arith.constant 0 : index
      %c0_186 = arith.constant 0 : index
      %661 = vector.load %arg12[%c0_185, %c0_186] : memref<8x32xf32, #tpu.memory_space<vmem>>, vector<8x32xf32>
      tpu.vector_store %arg12[%c0_185, %c0_186], %654 {strides = array<i32>} : memref<8x32xf32, #tpu.memory_space<vmem>>, vector<8x32xf32>,
    } else {
    }
    return
  }
  func.func @transform_0(%arg0: i32, %arg1: i32) -> (i32, i32, i32) {
    %c0_i32 = arith.constant 0 : i32
    %c0_i32_0 = arith.constant 0 : i32
    return %arg1, %arg0, %c0_i32 : i32, i32, i32
  }
  func.func @transform_1(%arg0: i32, %arg1: i32) -> (i32, i32) {
    %c0_i32 = arith.constant 0 : i32
    %c0_i32_0 = arith.constant 0 : i32
    return %arg0, %c0_i32 : i32, i32
  }
  func.func @transform_2(%arg0: i32, %arg1: i32) -> (i32, i32) {
    %c0_i32 = arith.constant 0 : i32
    %c0_i32_0 = arith.constant 0 : i32
    return %arg0, %c0_i32 : i32, i32
  }
  func.func @transform_3(%arg0: i32, %arg1: i32) -> (i32, i32) {
    %c0_i32 = arith.constant 0 : i32
    %c0_i32_0 = arith.constant 0 : i32
    %c0_i32_1 = arith.constant 0 : i32
    return %c0_i32, %c0_i32_0 : i32, i32
  }
  func.func @transform_4(%arg0: i32, %arg1: i32) -> (i32, i32) {
    %c0_i32 = arith.constant 0 : i32
    %c0_i32_0 = arith.constant 0 : i32
    %c0_i32_1 = arith.constant 0 : i32
    return %c0_i32, %c0_i32_0 : i32, i32
  }
  func.func @transform_5(%arg0: i32, %arg1: i32) -> (i32, i32) {
    %c0_i32 = arith.constant 0 : i32
    %c0_i32_0 = arith.constant 0 : i32
    %c0_i32_1 = arith.constant 0 : i32
    return %c0_i32, %c0_i32_0 : i32, i32
  }
  func.func @transform_6(%arg0: i32, %arg1: i32) -> (i32, i32) {
    %c0_i32 = arith.constant 0 : i32
    %c0_i32_0 = arith.constant 0 : i32
    %c0_i32_1 = arith.constant 0 : i32
    return %c0_i32, %c0_i32_0 : i32, i32
  }
  func.func @transform_7(%arg0: i32, %arg1: i32) -> (i32, i32) {
    %c0_i32 = arith.constant 0 : i32
    %c0_i32_0 = arith.constant 0 : i32
    %c0_i32_1 = arith.constant 0 : i32
    return %c0_i32, %c0_i32_0 : i32, i32
  }
  func.func @transform_8(%arg0: i32, %arg1: i32) -> (i32, i32, i32) {
    %c0_i32 = arith.constant 0 : i32
    %c0_i32_0 = arith.constant 0 : i32
    return %arg1, %arg0, %c0_i32 : i32, i32, i32
  }
  func.func @transform_9(%arg0: i32, %arg1: i32) -> (i32, i32) {
    %c0_i32 = arith.constant 0 : i32
    %c0_i32_0 = arith.constant 0 : i32
    return %arg0, %c0_i32 : i32, i32
  }
  func.func @transform_10(%arg0: i32, %arg1: i32) -> (i32, i32) {
    %c0_i32 = arith.constant 0 : i32
    %c0_i32_0 = arith.constant 0 : i32
    return %arg0, %c0_i32 : i32, i32
  }
}

module attributes {stable_mosaic.version = 11 : i64} {
  func.func @lstm_layer_kernel(%arg0: i32, %arg1: i32, %arg2: memref<4x8x16xf32, #tpu.memory_space<vmem>>, %arg3: memref<8x32xf32, #tpu.memory_space<vmem>>, %arg4: memref<8x32xf32, #tpu.memory_space<vmem>>, %arg5: memref<16x128xf32, #tpu.memory_space<vmem>>, %arg6: memref<32x128xf32, #tpu.memory_space<vmem>>, %arg7: memref<1x128xf32, #tpu.memory_space<vmem>>, %arg8: memref<5x32xf32, #tpu.memory_space<vmem>>, %arg9: memref<5x32xf32, #tpu.memory_space<vmem>>, %arg10: memref<4x8x32xf32, #tpu.memory_space<vmem>>, %arg11: memref<8x32xf32, #tpu.memory_space<vmem>>, %arg12: memref<8x32xf32, #tpu.memory_space<vmem>>, %arg13: memref<8x32xf32, #tpu.memory_space<vmem>>, %arg14: memref<8x32xf32, #tpu.memory_space<vmem>>, %arg15: memref<4x8x128xf32, #tpu.memory_space<vmem>>) attributes {dimension_semantics = [#tpu.dimension_semantics<parallel>, #tpu.dimension_semantics<arbitrary>], iteration_bounds = array<i64: 1, 3>, scalar_prefetch = 0 : i64, scratch_operands = 3 : i64, tpu.core_type = #tpu.core_type<tc>, window_params = [{transform_indices = @transform_0, window_bounds = array<i64: 4, 8, 16>}, {transform_indices = @transform_1, window_bounds = array<i64: 8, 32>}, {transform_indices = @transform_2, window_bounds = array<i64: 8, 32>}, {pipeline_mode = #tpu.pipeline_mode<synchronous>, transform_indices = @transform_3, window_bounds = array<i64: 16, 128>}, {pipeline_mode = #tpu.pipeline_mode<synchronous>, transform_indices = @transform_4, window_bounds = array<i64: 32, 128>}, {pipeline_mode = #tpu.pipeline_mode<synchronous>, transform_indices = @transform_5, window_bounds = array<i64: 1, 128>}, {pipeline_mode = #tpu.pipeline_mode<synchronous>, transform_indices = @transform_6, window_bounds = array<i64: 5, 32>}, {pipeline_mode = #tpu.pipeline_mode<synchronous>, transform_indices = @transform_7, window_bounds = array<i64: 5, 32>}, {transform_indices = @transform_8, window_bounds = array<i64: 4, 8, 32>}, {transform_indices = @transform_9, window_bounds = array<i64: 8, 32>}, {transform_indices = @transform_10, window_bounds = array<i64: 8, 32>}]} {
    %c0_i32 = arith.constant 0 : i32
    %0 = arith.cmpi eq, %arg1, %c0_i32 : i32
    %1 = arith.extui %0 : i1 to i32
    %c0_i32_0 = arith.constant 0 : i32
    %2 = arith.cmpi ne, %1, %c0_i32_0 : i32
    scf.if %2 {
      %c0_183 = arith.constant 0 : index
      %c0_184 = arith.constant 0 : index
      %660 = vector.load %arg3[%c0_183, %c0_184] : memref<8x32xf32, #tpu.memory_space<vmem>>, vector<8x32xf32>
      %c0_185 = arith.constant 0 : index
      %c0_186 = arith.constant 0 : index
      %661 = vector.load %arg13[%c0_185, %c0_186] : memref<8x32xf32, #tpu.memory_space<vmem>>, vector<8x32xf32>
      tpu.vector_store %arg13[%c0_185, %c0_186], %660 {strides = array<i32>} : memref<8x32xf32, #tpu.memory_space<vmem>>, vector<8x32xf32>,
      %c0_187 = arith.constant 0 : index
      %c0_188 = arith.constant 0 : index
      %662 = vector.load %arg4[%c0_187, %c0_188] : memref<8x32xf32, #tpu.memory_space<vmem>>, vector<8x32xf32>
      %c0_189 = arith.constant 0 : index
      %c0_190 = arith.constant 0 : index
      %663 = vector.load %arg14[%c0_189, %c0_190] : memref<8x32xf32, #tpu.memory_space<vmem>>, vector<8x32xf32>
      tpu.vector_store %arg14[%c0_189, %c0_190], %662 {strides = array<i32>} : memref<8x32xf32, #tpu.memory_space<vmem>>, vector<8x32xf32>,
    } else {
    }
    %c0 = arith.constant 0 : index
    %c0_1 = arith.constant 0 : index
    %3 = vector.load %arg6[%c0, %c0_1] : memref<32x128xf32, #tpu.memory_space<vmem>>, vector<32x128xf32>
    %c0_2 = arith.constant 0 : index
    %c0_3 = arith.constant 0 : index
    %4 = vector.load %arg8[%c0_2, %c0_3] : memref<5x32xf32, #tpu.memory_space<vmem>>, vector<5x32xf32>
    %c0_4 = arith.constant 0 : index
    %c0_5 = arith.constant 0 : index
    %5 = vector.load %arg9[%c0_4, %c0_5] : memref<5x32xf32, #tpu.memory_space<vmem>>, vector<5x32xf32>
    %6 = vector.extract_strided_slice %4 {offsets = [0, 0], sizes = [1, 32], strides = [1, 1]} : vector<5x32xf32> to vector<1x32xf32>
    %7 = vector.extract_strided_slice %5 {offsets = [0, 0], sizes = [1, 32], strides = [1, 1]} : vector<5x32xf32> to vector<1x32xf32>
    %8 = vector.extract_strided_slice %4 {offsets = [1, 0], sizes = [1, 32], strides = [1, 1]} : vector<5x32xf32> to vector<1x32xf32>
    %9 = vector.extract_strided_slice %5 {offsets = [1, 0], sizes = [1, 32], strides = [1, 1]} : vector<5x32xf32> to vector<1x32xf32>
    %10 = vector.extract_strided_slice %4 {offsets = [2, 0], sizes = [1, 32], strides = [1, 1]} : vector<5x32xf32> to vector<1x32xf32>
    %11 = vector.extract_strided_slice %5 {offsets = [2, 0], sizes = [1, 32], strides = [1, 1]} : vector<5x32xf32> to vector<1x32xf32>
    %12 = vector.extract_strided_slice %4 {offsets = [3, 0], sizes = [1, 32], strides = [1, 1]} : vector<5x32xf32> to vector<1x32xf32>
    %13 = vector.extract_strided_slice %5 {offsets = [3, 0], sizes = [1, 32], strides = [1, 1]} : vector<5x32xf32> to vector<1x32xf32>
    %14 = vector.extract_strided_slice %4 {offsets = [4, 0], sizes = [1, 32], strides = [1, 1]} : vector<5x32xf32> to vector<1x32xf32>
    %15 = vector.extract_strided_slice %5 {offsets = [4, 0], sizes = [1, 32], strides = [1, 1]} : vector<5x32xf32> to vector<1x32xf32>
    %c0_6 = arith.constant 0 : index
    %c0_7 = arith.constant 0 : index
    %c0_8 = arith.constant 0 : index
    %16 = vector.load %arg2[%c0_6, %c0_7, %c0_8] : memref<4x8x16xf32, #tpu.memory_space<vmem>>, vector<4x8x16xf32>
    %17 = vector.shape_cast %16 : vector<4x8x16xf32> to vector<32x16xf32>
    %c0_9 = arith.constant 0 : index
    %c0_10 = arith.constant 0 : index
    %18 = vector.load %arg5[%c0_9, %c0_10] : memref<16x128xf32, #tpu.memory_space<vmem>>, vector<16x128xf32>
    %cst = arith.constant dense<0.000000e+00> : vector<32x128xf32>
    %19 = tpu.matmul %17, %18, %cst {dimension_numbers = #tpu.dot_dimension_numbers<[1], [0], [0], [1], [0, 0, 1, 1], [], []>} : vector<32x16xf32>, vector<16x128xf32>, vector<32x128xf32> -> vector<32x128xf32>
    %c0_11 = arith.constant 0 : index
    %c0_12 = arith.constant 0 : index
    %20 = vector.load %arg7[%c0_11, %c0_12] : memref<1x128xf32, #tpu.memory_space<vmem>>, vector<1x128xf32>
    %21 = vector.broadcast %20 : vector<1x128xf32> to vector<32x128xf32>
    %22 = arith.addf %19, %21 : vector<32x128xf32>
    %23 = vector.shape_cast %22 : vector<32x128xf32> to vector<4x8x128xf32>
    %c0_13 = arith.constant 0 : index
    %c0_14 = arith.constant 0 : index
    %c0_15 = arith.constant 0 : index
    %24 = vector.load %arg15[%c0_13, %c0_14, %c0_15] : memref<4x8x128xf32, #tpu.memory_space<vmem>>, vector<4x8x128xf32>
    tpu.vector_store %arg15[%c0_13, %c0_14, %c0_15], %23 {strides = array<i32>} : memref<4x8x128xf32, #tpu.memory_space<vmem>>, vector<4x8x128xf32>,
    %c0_16 = arith.constant 0 : index
    %c0_17 = arith.constant 0 : index
    %25 = vector.load %arg13[%c0_16, %c0_17] : memref<8x32xf32, #tpu.memory_space<vmem>>, vector<8x32xf32>
    %c0_18 = arith.constant 0 : index
    %c0_19 = arith.constant 0 : index
    %26 = vector.load %arg14[%c0_18, %c0_19] : memref<8x32xf32, #tpu.memory_space<vmem>>, vector<8x32xf32>
    %c0_i32_20 = arith.constant 0 : i32
    %27 = arith.index_cast %c0_i32_20 : i32 to index
    %c0_21 = arith.constant 0 : index
    %c0_22 = arith.constant 0 : index
    %28 = vector.load %arg15[%27, %c0_21, %c0_22] : memref<4x8x128xf32, #tpu.memory_space<vmem>>, vector<1x8x128xf32>
    %29 = vector.shape_cast %28 : vector<1x8x128xf32> to vector<8x128xf32>
    %cst_23 = arith.constant dense<0.000000e+00> : vector<8x128xf32>
    %30 = tpu.matmul %25, %3, %cst_23 {dimension_numbers = #tpu.dot_dimension_numbers<[1], [0], [0], [1], [0, 0, 1, 1], [], []>} : vector<8x32xf32>, vector<32x128xf32>, vector<8x128xf32> -> vector<8x128xf32>
    %31 = arith.addf %29, %30 : vector<8x128xf32>
    %32 = vector.extract_strided_slice %31 {offsets = [0, 0], sizes = [8, 32], strides = [1, 1]} : vector<8x128xf32> to vector<8x32xf32>
    %cst_24 = arith.constant dense<0.000000e+00> : vector<8xf32>
    %33 = vector.multi_reduction <add>, %32, %cst_24 [1] : vector<8x32xf32> to vector<8xf32>
    %34 = vector.shape_cast %33 : vector<8xf32> to vector<8x1xf32>
    %cst_25 = arith.constant 3.200000e+01 : f32
    %35 = vector.broadcast %cst_25 : f32 to vector<8x1xf32>
    %36 = arith.divf %34, %35 : vector<8x1xf32>
    %37 = arith.mulf %32, %32 : vector<8x32xf32>
    %cst_26 = arith.constant dense<0.000000e+00> : vector<8xf32>
    %38 = vector.multi_reduction <add>, %37, %cst_26 [1] : vector<8x32xf32> to vector<8xf32>
    %39 = vector.shape_cast %38 : vector<8xf32> to vector<8x1xf32>
    %cst_27 = arith.constant 3.200000e+01 : f32
    %40 = vector.broadcast %cst_27 : f32 to vector<8x1xf32>
    %41 = arith.divf %39, %40 : vector<8x1xf32>
    %42 = arith.mulf %36, %36 : vector<8x1xf32>
    %43 = arith.subf %41, %42 : vector<8x1xf32>
    %cst_28 = arith.constant 0.000000e+00 : f32
    %44 = vector.broadcast %cst_28 : f32 to vector<8x1xf32>
    %45 = arith.maximumf %43, %44 : vector<8x1xf32>
    %46 = vector.broadcast %36 : vector<8x1xf32> to vector<8x32xf32>
    %47 = arith.subf %32, %46 : vector<8x32xf32>
    %cst_29 = arith.constant 9.99999974E-6 : f32
    %48 = vector.broadcast %cst_29 : f32 to vector<8x1xf32>
    %49 = arith.addf %45, %48 : vector<8x1xf32>
    %50 = math.rsqrt %49 : vector<8x1xf32>
    %51 = vector.broadcast %50 : vector<8x1xf32> to vector<8x32xf32>
    %52 = arith.mulf %47, %51 : vector<8x32xf32>
    %53 = vector.broadcast %6 : vector<1x32xf32> to vector<8x32xf32>
    %54 = arith.mulf %52, %53 : vector<8x32xf32>
    %55 = vector.broadcast %7 : vector<1x32xf32> to vector<8x32xf32>
    %56 = arith.addf %54, %55 : vector<8x32xf32>
    %57 = arith.negf %56 : vector<8x32xf32>
    %58 = math.exp %57 : vector<8x32xf32>
    %cst_30 = arith.constant 1.000000e+00 : f32
    %59 = vector.broadcast %cst_30 : f32 to vector<8x32xf32>
    %60 = arith.addf %59, %58 : vector<8x32xf32>
    %61 = arith.divf %59, %60 : vector<8x32xf32>
    %62 = vector.extract_strided_slice %31 {offsets = [0, 32], sizes = [8, 32], strides = [1, 1]} : vector<8x128xf32> to vector<8x32xf32>
    %cst_31 = arith.constant dense<0.000000e+00> : vector<8xf32>
    %63 = vector.multi_reduction <add>, %62, %cst_31 [1] : vector<8x32xf32> to vector<8xf32>
    %64 = vector.shape_cast %63 : vector<8xf32> to vector<8x1xf32>
    %cst_32 = arith.constant 3.200000e+01 : f32
    %65 = vector.broadcast %cst_32 : f32 to vector<8x1xf32>
    %66 = arith.divf %64, %65 : vector<8x1xf32>
    %67 = arith.mulf %62, %62 : vector<8x32xf32>
    %cst_33 = arith.constant dense<0.000000e+00> : vector<8xf32>
    %68 = vector.multi_reduction <add>, %67, %cst_33 [1] : vector<8x32xf32> to vector<8xf32>
    %69 = vector.shape_cast %68 : vector<8xf32> to vector<8x1xf32>
    %cst_34 = arith.constant 3.200000e+01 : f32
    %70 = vector.broadcast %cst_34 : f32 to vector<8x1xf32>
    %71 = arith.divf %69, %70 : vector<8x1xf32>
    %72 = arith.mulf %66, %66 : vector<8x1xf32>
    %73 = arith.subf %71, %72 : vector<8x1xf32>
    %cst_35 = arith.constant 0.000000e+00 : f32
    %74 = vector.broadcast %cst_35 : f32 to vector<8x1xf32>
    %75 = arith.maximumf %73, %74 : vector<8x1xf32>
    %76 = vector.broadcast %66 : vector<8x1xf32> to vector<8x32xf32>
    %77 = arith.subf %62, %76 : vector<8x32xf32>
    %cst_36 = arith.constant 9.99999974E-6 : f32
    %78 = vector.broadcast %cst_36 : f32 to vector<8x1xf32>
    %79 = arith.addf %75, %78 : vector<8x1xf32>
    %80 = math.rsqrt %79 : vector<8x1xf32>
    %81 = vector.broadcast %80 : vector<8x1xf32> to vector<8x32xf32>
    %82 = arith.mulf %77, %81 : vector<8x32xf32>
    %83 = vector.broadcast %8 : vector<1x32xf32> to vector<8x32xf32>
    %84 = arith.mulf %82, %83 : vector<8x32xf32>
    %85 = vector.broadcast %9 : vector<1x32xf32> to vector<8x32xf32>
    %86 = arith.addf %84, %85 : vector<8x32xf32>
    %87 = arith.negf %86 : vector<8x32xf32>
    %88 = math.exp %87 : vector<8x32xf32>
    %cst_37 = arith.constant 1.000000e+00 : f32
    %89 = vector.broadcast %cst_37 : f32 to vector<8x32xf32>
    %90 = arith.addf %89, %88 : vector<8x32xf32>
    %91 = arith.divf %89, %90 : vector<8x32xf32>
    %92 = vector.extract_strided_slice %31 {offsets = [0, 64], sizes = [8, 32], strides = [1, 1]} : vector<8x128xf32> to vector<8x32xf32>
    %cst_38 = arith.constant dense<0.000000e+00> : vector<8xf32>
    %93 = vector.multi_reduction <add>, %92, %cst_38 [1] : vector<8x32xf32> to vector<8xf32>
    %94 = vector.shape_cast %93 : vector<8xf32> to vector<8x1xf32>
    %cst_39 = arith.constant 3.200000e+01 : f32
    %95 = vector.broadcast %cst_39 : f32 to vector<8x1xf32>
    %96 = arith.divf %94, %95 : vector<8x1xf32>
    %97 = arith.mulf %92, %92 : vector<8x32xf32>
    %cst_40 = arith.constant dense<0.000000e+00> : vector<8xf32>
    %98 = vector.multi_reduction <add>, %97, %cst_40 [1] : vector<8x32xf32> to vector<8xf32>
    %99 = vector.shape_cast %98 : vector<8xf32> to vector<8x1xf32>
    %cst_41 = arith.constant 3.200000e+01 : f32
    %100 = vector.broadcast %cst_41 : f32 to vector<8x1xf32>
    %101 = arith.divf %99, %100 : vector<8x1xf32>
    %102 = arith.mulf %96, %96 : vector<8x1xf32>
    %103 = arith.subf %101, %102 : vector<8x1xf32>
    %cst_42 = arith.constant 0.000000e+00 : f32
    %104 = vector.broadcast %cst_42 : f32 to vector<8x1xf32>
    %105 = arith.maximumf %103, %104 : vector<8x1xf32>
    %106 = vector.broadcast %96 : vector<8x1xf32> to vector<8x32xf32>
    %107 = arith.subf %92, %106 : vector<8x32xf32>
    %cst_43 = arith.constant 9.99999974E-6 : f32
    %108 = vector.broadcast %cst_43 : f32 to vector<8x1xf32>
    %109 = arith.addf %105, %108 : vector<8x1xf32>
    %110 = math.rsqrt %109 : vector<8x1xf32>
    %111 = vector.broadcast %110 : vector<8x1xf32> to vector<8x32xf32>
    %112 = arith.mulf %107, %111 : vector<8x32xf32>
    %113 = vector.broadcast %10 : vector<1x32xf32> to vector<8x32xf32>
    %114 = arith.mulf %112, %113 : vector<8x32xf32>
    %115 = vector.broadcast %11 : vector<1x32xf32> to vector<8x32xf32>
    %116 = arith.addf %114, %115 : vector<8x32xf32>
    %117 = math.tanh %116 : vector<8x32xf32>
    %118 = vector.extract_strided_slice %31 {offsets = [0, 96], sizes = [8, 32], strides = [1, 1]} : vector<8x128xf32> to vector<8x32xf32>
    %cst_44 = arith.constant dense<0.000000e+00> : vector<8xf32>
    %119 = vector.multi_reduction <add>, %118, %cst_44 [1] : vector<8x32xf32> to vector<8xf32>
    %120 = vector.shape_cast %119 : vector<8xf32> to vector<8x1xf32>
    %cst_45 = arith.constant 3.200000e+01 : f32
    %121 = vector.broadcast %cst_45 : f32 to vector<8x1xf32>
    %122 = arith.divf %120, %121 : vector<8x1xf32>
    %123 = arith.mulf %118, %118 : vector<8x32xf32>
    %cst_46 = arith.constant dense<0.000000e+00> : vector<8xf32>
    %124 = vector.multi_reduction <add>, %123, %cst_46 [1] : vector<8x32xf32> to vector<8xf32>
    %125 = vector.shape_cast %124 : vector<8xf32> to vector<8x1xf32>
    %cst_47 = arith.constant 3.200000e+01 : f32
    %126 = vector.broadcast %cst_47 : f32 to vector<8x1xf32>
    %127 = arith.divf %125, %126 : vector<8x1xf32>
    %128 = arith.mulf %122, %122 : vector<8x1xf32>
    %129 = arith.subf %127, %128 : vector<8x1xf32>
    %cst_48 = arith.constant 0.000000e+00 : f32
    %130 = vector.broadcast %cst_48 : f32 to vector<8x1xf32>
    %131 = arith.maximumf %129, %130 : vector<8x1xf32>
    %132 = vector.broadcast %122 : vector<8x1xf32> to vector<8x32xf32>
    %133 = arith.subf %118, %132 : vector<8x32xf32>
    %cst_49 = arith.constant 9.99999974E-6 : f32
    %134 = vector.broadcast %cst_49 : f32 to vector<8x1xf32>
    %135 = arith.addf %131, %134 : vector<8x1xf32>
    %136 = math.rsqrt %135 : vector<8x1xf32>
    %137 = vector.broadcast %136 : vector<8x1xf32> to vector<8x32xf32>
    %138 = arith.mulf %133, %137 : vector<8x32xf32>
    %139 = vector.broadcast %12 : vector<1x32xf32> to vector<8x32xf32>
    %140 = arith.mulf %138, %139 : vector<8x32xf32>
    %141 = vector.broadcast %13 : vector<1x32xf32> to vector<8x32xf32>
    %142 = arith.addf %140, %141 : vector<8x32xf32>
    %143 = arith.negf %142 : vector<8x32xf32>
    %144 = math.exp %143 : vector<8x32xf32>
    %cst_50 = arith.constant 1.000000e+00 : f32
    %145 = vector.broadcast %cst_50 : f32 to vector<8x32xf32>
    %146 = arith.addf %145, %144 : vector<8x32xf32>
    %147 = arith.divf %145, %146 : vector<8x32xf32>
    %148 = arith.mulf %91, %26 : vector<8x32xf32>
    %149 = arith.mulf %61, %117 : vector<8x32xf32>
    %150 = arith.addf %148, %149 : vector<8x32xf32>
    %cst_51 = arith.constant dense<0.000000e+00> : vector<8xf32>
    %151 = vector.multi_reduction <add>, %150, %cst_51 [1] : vector<8x32xf32> to vector<8xf32>
    %152 = vector.shape_cast %151 : vector<8xf32> to vector<8x1xf32>
    %cst_52 = arith.constant 3.200000e+01 : f32
    %153 = vector.broadcast %cst_52 : f32 to vector<8x1xf32>
    %154 = arith.divf %152, %153 : vector<8x1xf32>
    %155 = arith.mulf %150, %150 : vector<8x32xf32>
    %cst_53 = arith.constant dense<0.000000e+00> : vector<8xf32>
    %156 = vector.multi_reduction <add>, %155, %cst_53 [1] : vector<8x32xf32> to vector<8xf32>
    %157 = vector.shape_cast %156 : vector<8xf32> to vector<8x1xf32>
    %cst_54 = arith.constant 3.200000e+01 : f32
    %158 = vector.broadcast %cst_54 : f32 to vector<8x1xf32>
    %159 = arith.divf %157, %158 : vector<8x1xf32>
    %160 = arith.mulf %154, %154 : vector<8x1xf32>
    %161 = arith.subf %159, %160 : vector<8x1xf32>
    %cst_55 = arith.constant 0.000000e+00 : f32
    %162 = vector.broadcast %cst_55 : f32 to vector<8x1xf32>
    %163 = arith.maximumf %161, %162 : vector<8x1xf32>
    %164 = vector.broadcast %154 : vector<8x1xf32> to vector<8x32xf32>
    %165 = arith.subf %150, %164 : vector<8x32xf32>
    %cst_56 = arith.constant 9.99999974E-6 : f32
    %166 = vector.broadcast %cst_56 : f32 to vector<8x1xf32>
    %167 = arith.addf %163, %166 : vector<8x1xf32>
    %168 = math.rsqrt %167 : vector<8x1xf32>
    %169 = vector.broadcast %168 : vector<8x1xf32> to vector<8x32xf32>
    %170 = arith.mulf %165, %169 : vector<8x32xf32>
    %171 = vector.broadcast %14 : vector<1x32xf32> to vector<8x32xf32>
    %172 = arith.mulf %170, %171 : vector<8x32xf32>
    %173 = vector.broadcast %15 : vector<1x32xf32> to vector<8x32xf32>
    %174 = arith.addf %172, %173 : vector<8x32xf32>
    %175 = math.tanh %174 : vector<8x32xf32>
    %176 = arith.mulf %147, %175 : vector<8x32xf32>
    %177 = arith.index_cast %c0_i32_20 : i32 to index
    %c0_57 = arith.constant 0 : index
    %c0_58 = arith.constant 0 : index
    %178 = vector.load %arg10[%177, %c0_57, %c0_58] : memref<4x8x32xf32, #tpu.memory_space<vmem>>, vector<1x8x32xf32>
    %179 = vector.shape_cast %178 : vector<1x8x32xf32> to vector<8x32xf32>
    %180 = vector.shape_cast %176 : vector<8x32xf32> to vector<1x8x32xf32>
    tpu.vector_store %arg10[%177, %c0_57, %c0_58], %180 {strides = array<i32>} : memref<4x8x32xf32, #tpu.memory_space<vmem>>, vector<1x8x32xf32>,
    %c1_i32 = arith.constant 1 : i32
    %181 = arith.cmpi eq, %c0_i32_20, %c1_i32 : i32
    %182 = arith.select %181, %176, %25 : vector<8x32xf32>
    %183 = arith.select %181, %174, %26 : vector<8x32xf32>
    %c1_i32_59 = arith.constant 1 : i32
    %184 = arith.index_cast %c1_i32_59 : i32 to index
    %c0_60 = arith.constant 0 : index
    %c0_61 = arith.constant 0 : index
    %185 = vector.load %arg15[%184, %c0_60, %c0_61] : memref<4x8x128xf32, #tpu.memory_space<vmem>>, vector<1x8x128xf32>
    %186 = vector.shape_cast %185 : vector<1x8x128xf32> to vector<8x128xf32>
    %cst_62 = arith.constant dense<0.000000e+00> : vector<8x128xf32>
    %187 = tpu.matmul %176, %3, %cst_62 {dimension_numbers = #tpu.dot_dimension_numbers<[1], [0], [0], [1], [0, 0, 1, 1], [], []>} : vector<8x32xf32>, vector<32x128xf32>, vector<8x128xf32> -> vector<8x128xf32>
    %188 = arith.addf %186, %187 : vector<8x128xf32>
    %189 = vector.extract_strided_slice %188 {offsets = [0, 0], sizes = [8, 32], strides = [1, 1]} : vector<8x128xf32> to vector<8x32xf32>
    %cst_63 = arith.constant dense<0.000000e+00> : vector<8xf32>
    %190 = vector.multi_reduction <add>, %189, %cst_63 [1] : vector<8x32xf32> to vector<8xf32>
    %191 = vector.shape_cast %190 : vector<8xf32> to vector<8x1xf32>
    %cst_64 = arith.constant 3.200000e+01 : f32
    %192 = vector.broadcast %cst_64 : f32 to vector<8x1xf32>
    %193 = arith.divf %191, %192 : vector<8x1xf32>
    %194 = arith.mulf %189, %189 : vector<8x32xf32>
    %cst_65 = arith.constant dense<0.000000e+00> : vector<8xf32>
    %195 = vector.multi_reduction <add>, %194, %cst_65 [1] : vector<8x32xf32> to vector<8xf32>
    %196 = vector.shape_cast %195 : vector<8xf32> to vector<8x1xf32>
    %cst_66 = arith.constant 3.200000e+01 : f32
    %197 = vector.broadcast %cst_66 : f32 to vector<8x1xf32>
    %198 = arith.divf %196, %197 : vector<8x1xf32>
    %199 = arith.mulf %193, %193 : vector<8x1xf32>
    %200 = arith.subf %198, %199 : vector<8x1xf32>
    %cst_67 = arith.constant 0.000000e+00 : f32
    %201 = vector.broadcast %cst_67 : f32 to vector<8x1xf32>
    %202 = arith.maximumf %200, %201 : vector<8x1xf32>
    %203 = vector.broadcast %193 : vector<8x1xf32> to vector<8x32xf32>
    %204 = arith.subf %189, %203 : vector<8x32xf32>
    %cst_68 = arith.constant 9.99999974E-6 : f32
    %205 = vector.broadcast %cst_68 : f32 to vector<8x1xf32>
    %206 = arith.addf %202, %205 : vector<8x1xf32>
    %207 = math.rsqrt %206 : vector<8x1xf32>
    %208 = vector.broadcast %207 : vector<8x1xf32> to vector<8x32xf32>
    %209 = arith.mulf %204, %208 : vector<8x32xf32>
    %210 = vector.broadcast %6 : vector<1x32xf32> to vector<8x32xf32>
    %211 = arith.mulf %209, %210 : vector<8x32xf32>
    %212 = vector.broadcast %7 : vector<1x32xf32> to vector<8x32xf32>
    %213 = arith.addf %211, %212 : vector<8x32xf32>
    %214 = arith.negf %213 : vector<8x32xf32>
    %215 = math.exp %214 : vector<8x32xf32>
    %cst_69 = arith.constant 1.000000e+00 : f32
    %216 = vector.broadcast %cst_69 : f32 to vector<8x32xf32>
    %217 = arith.addf %216, %215 : vector<8x32xf32>
    %218 = arith.divf %216, %217 : vector<8x32xf32>
    %219 = vector.extract_strided_slice %188 {offsets = [0, 32], sizes = [8, 32], strides = [1, 1]} : vector<8x128xf32> to vector<8x32xf32>
    %cst_70 = arith.constant dense<0.000000e+00> : vector<8xf32>
    %220 = vector.multi_reduction <add>, %219, %cst_70 [1] : vector<8x32xf32> to vector<8xf32>
    %221 = vector.shape_cast %220 : vector<8xf32> to vector<8x1xf32>
    %cst_71 = arith.constant 3.200000e+01 : f32
    %222 = vector.broadcast %cst_71 : f32 to vector<8x1xf32>
    %223 = arith.divf %221, %222 : vector<8x1xf32>
    %224 = arith.mulf %219, %219 : vector<8x32xf32>
    %cst_72 = arith.constant dense<0.000000e+00> : vector<8xf32>
    %225 = vector.multi_reduction <add>, %224, %cst_72 [1] : vector<8x32xf32> to vector<8xf32>
    %226 = vector.shape_cast %225 : vector<8xf32> to vector<8x1xf32>
    %cst_73 = arith.constant 3.200000e+01 : f32
    %227 = vector.broadcast %cst_73 : f32 to vector<8x1xf32>
    %228 = arith.divf %226, %227 : vector<8x1xf32>
    %229 = arith.mulf %223, %223 : vector<8x1xf32>
    %230 = arith.subf %228, %229 : vector<8x1xf32>
    %cst_74 = arith.constant 0.000000e+00 : f32
    %231 = vector.broadcast %cst_74 : f32 to vector<8x1xf32>
    %232 = arith.maximumf %230, %231 : vector<8x1xf32>
    %233 = vector.broadcast %223 : vector<8x1xf32> to vector<8x32xf32>
    %234 = arith.subf %219, %233 : vector<8x32xf32>
    %cst_75 = arith.constant 9.99999974E-6 : f32
    %235 = vector.broadcast %cst_75 : f32 to vector<8x1xf32>
    %236 = arith.addf %232, %235 : vector<8x1xf32>
    %237 = math.rsqrt %236 : vector<8x1xf32>
    %238 = vector.broadcast %237 : vector<8x1xf32> to vector<8x32xf32>
    %239 = arith.mulf %234, %238 : vector<8x32xf32>
    %240 = vector.broadcast %8 : vector<1x32xf32> to vector<8x32xf32>
    %241 = arith.mulf %239, %240 : vector<8x32xf32>
    %242 = vector.broadcast %9 : vector<1x32xf32> to vector<8x32xf32>
    %243 = arith.addf %241, %242 : vector<8x32xf32>
    %244 = arith.negf %243 : vector<8x32xf32>
    %245 = math.exp %244 : vector<8x32xf32>
    %cst_76 = arith.constant 1.000000e+00 : f32
    %246 = vector.broadcast %cst_76 : f32 to vector<8x32xf32>
    %247 = arith.addf %246, %245 : vector<8x32xf32>
    %248 = arith.divf %246, %247 : vector<8x32xf32>
    %249 = vector.extract_strided_slice %188 {offsets = [0, 64], sizes = [8, 32], strides = [1, 1]} : vector<8x128xf32> to vector<8x32xf32>
    %cst_77 = arith.constant dense<0.000000e+00> : vector<8xf32>
    %250 = vector.multi_reduction <add>, %249, %cst_77 [1] : vector<8x32xf32> to vector<8xf32>
    %251 = vector.shape_cast %250 : vector<8xf32> to vector<8x1xf32>
    %cst_78 = arith.constant 3.200000e+01 : f32
    %252 = vector.broadcast %cst_78 : f32 to vector<8x1xf32>
    %253 = arith.divf %251, %252 : vector<8x1xf32>
    %254 = arith.mulf %249, %249 : vector<8x32xf32>
    %cst_79 = arith.constant dense<0.000000e+00> : vector<8xf32>
    %255 = vector.multi_reduction <add>, %254, %cst_79 [1] : vector<8x32xf32> to vector<8xf32>
    %256 = vector.shape_cast %255 : vector<8xf32> to vector<8x1xf32>
    %cst_80 = arith.constant 3.200000e+01 : f32
    %257 = vector.broadcast %cst_80 : f32 to vector<8x1xf32>
    %258 = arith.divf %256, %257 : vector<8x1xf32>
    %259 = arith.mulf %253, %253 : vector<8x1xf32>
    %260 = arith.subf %258, %259 : vector<8x1xf32>
    %cst_81 = arith.constant 0.000000e+00 : f32
    %261 = vector.broadcast %cst_81 : f32 to vector<8x1xf32>
    %262 = arith.maximumf %260, %261 : vector<8x1xf32>
    %263 = vector.broadcast %253 : vector<8x1xf32> to vector<8x32xf32>
    %264 = arith.subf %249, %263 : vector<8x32xf32>
    %cst_82 = arith.constant 9.99999974E-6 : f32
    %265 = vector.broadcast %cst_82 : f32 to vector<8x1xf32>
    %266 = arith.addf %262, %265 : vector<8x1xf32>
    %267 = math.rsqrt %266 : vector<8x1xf32>
    %268 = vector.broadcast %267 : vector<8x1xf32> to vector<8x32xf32>
    %269 = arith.mulf %264, %268 : vector<8x32xf32>
    %270 = vector.broadcast %10 : vector<1x32xf32> to vector<8x32xf32>
    %271 = arith.mulf %269, %270 : vector<8x32xf32>
    %272 = vector.broadcast %11 : vector<1x32xf32> to vector<8x32xf32>
    %273 = arith.addf %271, %272 : vector<8x32xf32>
    %274 = math.tanh %273 : vector<8x32xf32>
    %275 = vector.extract_strided_slice %188 {offsets = [0, 96], sizes = [8, 32], strides = [1, 1]} : vector<8x128xf32> to vector<8x32xf32>
    %cst_83 = arith.constant dense<0.000000e+00> : vector<8xf32>
    %276 = vector.multi_reduction <add>, %275, %cst_83 [1] : vector<8x32xf32> to vector<8xf32>
    %277 = vector.shape_cast %276 : vector<8xf32> to vector<8x1xf32>
    %cst_84 = arith.constant 3.200000e+01 : f32
    %278 = vector.broadcast %cst_84 : f32 to vector<8x1xf32>
    %279 = arith.divf %277, %278 : vector<8x1xf32>
    %280 = arith.mulf %275, %275 : vector<8x32xf32>
    %cst_85 = arith.constant dense<0.000000e+00> : vector<8xf32>
    %281 = vector.multi_reduction <add>, %280, %cst_85 [1] : vector<8x32xf32> to vector<8xf32>
    %282 = vector.shape_cast %281 : vector<8xf32> to vector<8x1xf32>
    %cst_86 = arith.constant 3.200000e+01 : f32
    %283 = vector.broadcast %cst_86 : f32 to vector<8x1xf32>
    %284 = arith.divf %282, %283 : vector<8x1xf32>
    %285 = arith.mulf %279, %279 : vector<8x1xf32>
    %286 = arith.subf %284, %285 : vector<8x1xf32>
    %cst_87 = arith.constant 0.000000e+00 : f32
    %287 = vector.broadcast %cst_87 : f32 to vector<8x1xf32>
    %288 = arith.maximumf %286, %287 : vector<8x1xf32>
    %289 = vector.broadcast %279 : vector<8x1xf32> to vector<8x32xf32>
    %290 = arith.subf %275, %289 : vector<8x32xf32>
    %cst_88 = arith.constant 9.99999974E-6 : f32
    %291 = vector.broadcast %cst_88 : f32 to vector<8x1xf32>
    %292 = arith.addf %288, %291 : vector<8x1xf32>
    %293 = math.rsqrt %292 : vector<8x1xf32>
    %294 = vector.broadcast %293 : vector<8x1xf32> to vector<8x32xf32>
    %295 = arith.mulf %290, %294 : vector<8x32xf32>
    %296 = vector.broadcast %12 : vector<1x32xf32> to vector<8x32xf32>
    %297 = arith.mulf %295, %296 : vector<8x32xf32>
    %298 = vector.broadcast %13 : vector<1x32xf32> to vector<8x32xf32>
    %299 = arith.addf %297, %298 : vector<8x32xf32>
    %300 = arith.negf %299 : vector<8x32xf32>
    %301 = math.exp %300 : vector<8x32xf32>
    %cst_89 = arith.constant 1.000000e+00 : f32
    %302 = vector.broadcast %cst_89 : f32 to vector<8x32xf32>
    %303 = arith.addf %302, %301 : vector<8x32xf32>
    %304 = arith.divf %302, %303 : vector<8x32xf32>
    %305 = arith.mulf %248, %174 : vector<8x32xf32>
    %306 = arith.mulf %218, %274 : vector<8x32xf32>
    %307 = arith.addf %305, %306 : vector<8x32xf32>
    %cst_90 = arith.constant dense<0.000000e+00> : vector<8xf32>
    %308 = vector.multi_reduction <add>, %307, %cst_90 [1] : vector<8x32xf32> to vector<8xf32>
    %309 = vector.shape_cast %308 : vector<8xf32> to vector<8x1xf32>
    %cst_91 = arith.constant 3.200000e+01 : f32
    %310 = vector.broadcast %cst_91 : f32 to vector<8x1xf32>
    %311 = arith.divf %309, %310 : vector<8x1xf32>
    %312 = arith.mulf %307, %307 : vector<8x32xf32>
    %cst_92 = arith.constant dense<0.000000e+00> : vector<8xf32>
    %313 = vector.multi_reduction <add>, %312, %cst_92 [1] : vector<8x32xf32> to vector<8xf32>
    %314 = vector.shape_cast %313 : vector<8xf32> to vector<8x1xf32>
    %cst_93 = arith.constant 3.200000e+01 : f32
    %315 = vector.broadcast %cst_93 : f32 to vector<8x1xf32>
    %316 = arith.divf %314, %315 : vector<8x1xf32>
    %317 = arith.mulf %311, %311 : vector<8x1xf32>
    %318 = arith.subf %316, %317 : vector<8x1xf32>
    %cst_94 = arith.constant 0.000000e+00 : f32
    %319 = vector.broadcast %cst_94 : f32 to vector<8x1xf32>
    %320 = arith.maximumf %318, %319 : vector<8x1xf32>
    %321 = vector.broadcast %311 : vector<8x1xf32> to vector<8x32xf32>
    %322 = arith.subf %307, %321 : vector<8x32xf32>
    %cst_95 = arith.constant 9.99999974E-6 : f32
    %323 = vector.broadcast %cst_95 : f32 to vector<8x1xf32>
    %324 = arith.addf %320, %323 : vector<8x1xf32>
    %325 = math.rsqrt %324 : vector<8x1xf32>
    %326 = vector.broadcast %325 : vector<8x1xf32> to vector<8x32xf32>
    %327 = arith.mulf %322, %326 : vector<8x32xf32>
    %328 = vector.broadcast %14 : vector<1x32xf32> to vector<8x32xf32>
    %329 = arith.mulf %327, %328 : vector<8x32xf32>
    %330 = vector.broadcast %15 : vector<1x32xf32> to vector<8x32xf32>
    %331 = arith.addf %329, %330 : vector<8x32xf32>
    %332 = math.tanh %331 : vector<8x32xf32>
    %333 = arith.mulf %304, %332 : vector<8x32xf32>
    %334 = arith.index_cast %c1_i32_59 : i32 to index
    %c0_96 = arith.constant 0 : index
    %c0_97 = arith.constant 0 : index
    %335 = vector.load %arg10[%334, %c0_96, %c0_97] : memref<4x8x32xf32, #tpu.memory_space<vmem>>, vector<1x8x32xf32>
    %336 = vector.shape_cast %335 : vector<1x8x32xf32> to vector<8x32xf32>
    %337 = vector.shape_cast %333 : vector<8x32xf32> to vector<1x8x32xf32>
    tpu.vector_store %arg10[%334, %c0_96, %c0_97], %337 {strides = array<i32>} : memref<4x8x32xf32, #tpu.memory_space<vmem>>, vector<1x8x32xf32>,
    %c1_i32_98 = arith.constant 1 : i32
    %338 = arith.cmpi eq, %c1_i32_59, %c1_i32_98 : i32
    %339 = arith.select %338, %333, %182 : vector<8x32xf32>
    %340 = arith.select %338, %331, %183 : vector<8x32xf32>
    %c2_i32 = arith.constant 2 : i32
    %341 = arith.index_cast %c2_i32 : i32 to index
    %c0_99 = arith.constant 0 : index
    %c0_100 = arith.constant 0 : index
    %342 = vector.load %arg15[%341, %c0_99, %c0_100] : memref<4x8x128xf32, #tpu.memory_space<vmem>>, vector<1x8x128xf32>
    %343 = vector.shape_cast %342 : vector<1x8x128xf32> to vector<8x128xf32>
    %cst_101 = arith.constant dense<0.000000e+00> : vector<8x128xf32>
    %344 = tpu.matmul %333, %3, %cst_101 {dimension_numbers = #tpu.dot_dimension_numbers<[1], [0], [0], [1], [0, 0, 1, 1], [], []>} : vector<8x32xf32>, vector<32x128xf32>, vector<8x128xf32> -> vector<8x128xf32>
    %345 = arith.addf %343, %344 : vector<8x128xf32>
    %346 = vector.extract_strided_slice %345 {offsets = [0, 0], sizes = [8, 32], strides = [1, 1]} : vector<8x128xf32> to vector<8x32xf32>
    %cst_102 = arith.constant dense<0.000000e+00> : vector<8xf32>
    %347 = vector.multi_reduction <add>, %346, %cst_102 [1] : vector<8x32xf32> to vector<8xf32>
    %348 = vector.shape_cast %347 : vector<8xf32> to vector<8x1xf32>
    %cst_103 = arith.constant 3.200000e+01 : f32
    %349 = vector.broadcast %cst_103 : f32 to vector<8x1xf32>
    %350 = arith.divf %348, %349 : vector<8x1xf32>
    %351 = arith.mulf %346, %346 : vector<8x32xf32>
    %cst_104 = arith.constant dense<0.000000e+00> : vector<8xf32>
    %352 = vector.multi_reduction <add>, %351, %cst_104 [1] : vector<8x32xf32> to vector<8xf32>
    %353 = vector.shape_cast %352 : vector<8xf32> to vector<8x1xf32>
    %cst_105 = arith.constant 3.200000e+01 : f32
    %354 = vector.broadcast %cst_105 : f32 to vector<8x1xf32>
    %355 = arith.divf %353, %354 : vector<8x1xf32>
    %356 = arith.mulf %350, %350 : vector<8x1xf32>
    %357 = arith.subf %355, %356 : vector<8x1xf32>
    %cst_106 = arith.constant 0.000000e+00 : f32
    %358 = vector.broadcast %cst_106 : f32 to vector<8x1xf32>
    %359 = arith.maximumf %357, %358 : vector<8x1xf32>
    %360 = vector.broadcast %350 : vector<8x1xf32> to vector<8x32xf32>
    %361 = arith.subf %346, %360 : vector<8x32xf32>
    %cst_107 = arith.constant 9.99999974E-6 : f32
    %362 = vector.broadcast %cst_107 : f32 to vector<8x1xf32>
    %363 = arith.addf %359, %362 : vector<8x1xf32>
    %364 = math.rsqrt %363 : vector<8x1xf32>
    %365 = vector.broadcast %364 : vector<8x1xf32> to vector<8x32xf32>
    %366 = arith.mulf %361, %365 : vector<8x32xf32>
    %367 = vector.broadcast %6 : vector<1x32xf32> to vector<8x32xf32>
    %368 = arith.mulf %366, %367 : vector<8x32xf32>
    %369 = vector.broadcast %7 : vector<1x32xf32> to vector<8x32xf32>
    %370 = arith.addf %368, %369 : vector<8x32xf32>
    %371 = arith.negf %370 : vector<8x32xf32>
    %372 = math.exp %371 : vector<8x32xf32>
    %cst_108 = arith.constant 1.000000e+00 : f32
    %373 = vector.broadcast %cst_108 : f32 to vector<8x32xf32>
    %374 = arith.addf %373, %372 : vector<8x32xf32>
    %375 = arith.divf %373, %374 : vector<8x32xf32>
    %376 = vector.extract_strided_slice %345 {offsets = [0, 32], sizes = [8, 32], strides = [1, 1]} : vector<8x128xf32> to vector<8x32xf32>
    %cst_109 = arith.constant dense<0.000000e+00> : vector<8xf32>
    %377 = vector.multi_reduction <add>, %376, %cst_109 [1] : vector<8x32xf32> to vector<8xf32>
    %378 = vector.shape_cast %377 : vector<8xf32> to vector<8x1xf32>
    %cst_110 = arith.constant 3.200000e+01 : f32
    %379 = vector.broadcast %cst_110 : f32 to vector<8x1xf32>
    %380 = arith.divf %378, %379 : vector<8x1xf32>
    %381 = arith.mulf %376, %376 : vector<8x32xf32>
    %cst_111 = arith.constant dense<0.000000e+00> : vector<8xf32>
    %382 = vector.multi_reduction <add>, %381, %cst_111 [1] : vector<8x32xf32> to vector<8xf32>
    %383 = vector.shape_cast %382 : vector<8xf32> to vector<8x1xf32>
    %cst_112 = arith.constant 3.200000e+01 : f32
    %384 = vector.broadcast %cst_112 : f32 to vector<8x1xf32>
    %385 = arith.divf %383, %384 : vector<8x1xf32>
    %386 = arith.mulf %380, %380 : vector<8x1xf32>
    %387 = arith.subf %385, %386 : vector<8x1xf32>
    %cst_113 = arith.constant 0.000000e+00 : f32
    %388 = vector.broadcast %cst_113 : f32 to vector<8x1xf32>
    %389 = arith.maximumf %387, %388 : vector<8x1xf32>
    %390 = vector.broadcast %380 : vector<8x1xf32> to vector<8x32xf32>
    %391 = arith.subf %376, %390 : vector<8x32xf32>
    %cst_114 = arith.constant 9.99999974E-6 : f32
    %392 = vector.broadcast %cst_114 : f32 to vector<8x1xf32>
    %393 = arith.addf %389, %392 : vector<8x1xf32>
    %394 = math.rsqrt %393 : vector<8x1xf32>
    %395 = vector.broadcast %394 : vector<8x1xf32> to vector<8x32xf32>
    %396 = arith.mulf %391, %395 : vector<8x32xf32>
    %397 = vector.broadcast %8 : vector<1x32xf32> to vector<8x32xf32>
    %398 = arith.mulf %396, %397 : vector<8x32xf32>
    %399 = vector.broadcast %9 : vector<1x32xf32> to vector<8x32xf32>
    %400 = arith.addf %398, %399 : vector<8x32xf32>
    %401 = arith.negf %400 : vector<8x32xf32>
    %402 = math.exp %401 : vector<8x32xf32>
    %cst_115 = arith.constant 1.000000e+00 : f32
    %403 = vector.broadcast %cst_115 : f32 to vector<8x32xf32>
    %404 = arith.addf %403, %402 : vector<8x32xf32>
    %405 = arith.divf %403, %404 : vector<8x32xf32>
    %406 = vector.extract_strided_slice %345 {offsets = [0, 64], sizes = [8, 32], strides = [1, 1]} : vector<8x128xf32> to vector<8x32xf32>
    %cst_116 = arith.constant dense<0.000000e+00> : vector<8xf32>
    %407 = vector.multi_reduction <add>, %406, %cst_116 [1] : vector<8x32xf32> to vector<8xf32>
    %408 = vector.shape_cast %407 : vector<8xf32> to vector<8x1xf32>
    %cst_117 = arith.constant 3.200000e+01 : f32
    %409 = vector.broadcast %cst_117 : f32 to vector<8x1xf32>
    %410 = arith.divf %408, %409 : vector<8x1xf32>
    %411 = arith.mulf %406, %406 : vector<8x32xf32>
    %cst_118 = arith.constant dense<0.000000e+00> : vector<8xf32>
    %412 = vector.multi_reduction <add>, %411, %cst_118 [1] : vector<8x32xf32> to vector<8xf32>
    %413 = vector.shape_cast %412 : vector<8xf32> to vector<8x1xf32>
    %cst_119 = arith.constant 3.200000e+01 : f32
    %414 = vector.broadcast %cst_119 : f32 to vector<8x1xf32>
    %415 = arith.divf %413, %414 : vector<8x1xf32>
    %416 = arith.mulf %410, %410 : vector<8x1xf32>
    %417 = arith.subf %415, %416 : vector<8x1xf32>
    %cst_120 = arith.constant 0.000000e+00 : f32
    %418 = vector.broadcast %cst_120 : f32 to vector<8x1xf32>
    %419 = arith.maximumf %417, %418 : vector<8x1xf32>
    %420 = vector.broadcast %410 : vector<8x1xf32> to vector<8x32xf32>
    %421 = arith.subf %406, %420 : vector<8x32xf32>
    %cst_121 = arith.constant 9.99999974E-6 : f32
    %422 = vector.broadcast %cst_121 : f32 to vector<8x1xf32>
    %423 = arith.addf %419, %422 : vector<8x1xf32>
    %424 = math.rsqrt %423 : vector<8x1xf32>
    %425 = vector.broadcast %424 : vector<8x1xf32> to vector<8x32xf32>
    %426 = arith.mulf %421, %425 : vector<8x32xf32>
    %427 = vector.broadcast %10 : vector<1x32xf32> to vector<8x32xf32>
    %428 = arith.mulf %426, %427 : vector<8x32xf32>
    %429 = vector.broadcast %11 : vector<1x32xf32> to vector<8x32xf32>
    %430 = arith.addf %428, %429 : vector<8x32xf32>
    %431 = math.tanh %430 : vector<8x32xf32>
    %432 = vector.extract_strided_slice %345 {offsets = [0, 96], sizes = [8, 32], strides = [1, 1]} : vector<8x128xf32> to vector<8x32xf32>
    %cst_122 = arith.constant dense<0.000000e+00> : vector<8xf32>
    %433 = vector.multi_reduction <add>, %432, %cst_122 [1] : vector<8x32xf32> to vector<8xf32>
    %434 = vector.shape_cast %433 : vector<8xf32> to vector<8x1xf32>
    %cst_123 = arith.constant 3.200000e+01 : f32
    %435 = vector.broadcast %cst_123 : f32 to vector<8x1xf32>
    %436 = arith.divf %434, %435 : vector<8x1xf32>
    %437 = arith.mulf %432, %432 : vector<8x32xf32>
    %cst_124 = arith.constant dense<0.000000e+00> : vector<8xf32>
    %438 = vector.multi_reduction <add>, %437, %cst_124 [1] : vector<8x32xf32> to vector<8xf32>
    %439 = vector.shape_cast %438 : vector<8xf32> to vector<8x1xf32>
    %cst_125 = arith.constant 3.200000e+01 : f32
    %440 = vector.broadcast %cst_125 : f32 to vector<8x1xf32>
    %441 = arith.divf %439, %440 : vector<8x1xf32>
    %442 = arith.mulf %436, %436 : vector<8x1xf32>
    %443 = arith.subf %441, %442 : vector<8x1xf32>
    %cst_126 = arith.constant 0.000000e+00 : f32
    %444 = vector.broadcast %cst_126 : f32 to vector<8x1xf32>
    %445 = arith.maximumf %443, %444 : vector<8x1xf32>
    %446 = vector.broadcast %436 : vector<8x1xf32> to vector<8x32xf32>
    %447 = arith.subf %432, %446 : vector<8x32xf32>
    %cst_127 = arith.constant 9.99999974E-6 : f32
    %448 = vector.broadcast %cst_127 : f32 to vector<8x1xf32>
    %449 = arith.addf %445, %448 : vector<8x1xf32>
    %450 = math.rsqrt %449 : vector<8x1xf32>
    %451 = vector.broadcast %450 : vector<8x1xf32> to vector<8x32xf32>
    %452 = arith.mulf %447, %451 : vector<8x32xf32>
    %453 = vector.broadcast %12 : vector<1x32xf32> to vector<8x32xf32>
    %454 = arith.mulf %452, %453 : vector<8x32xf32>
    %455 = vector.broadcast %13 : vector<1x32xf32> to vector<8x32xf32>
    %456 = arith.addf %454, %455 : vector<8x32xf32>
    %457 = arith.negf %456 : vector<8x32xf32>
    %458 = math.exp %457 : vector<8x32xf32>
    %cst_128 = arith.constant 1.000000e+00 : f32
    %459 = vector.broadcast %cst_128 : f32 to vector<8x32xf32>
    %460 = arith.addf %459, %458 : vector<8x32xf32>
    %461 = arith.divf %459, %460 : vector<8x32xf32>
    %462 = arith.mulf %405, %331 : vector<8x32xf32>
    %463 = arith.mulf %375, %431 : vector<8x32xf32>
    %464 = arith.addf %462, %463 : vector<8x32xf32>
    %cst_129 = arith.constant dense<0.000000e+00> : vector<8xf32>
    %465 = vector.multi_reduction <add>, %464, %cst_129 [1] : vector<8x32xf32> to vector<8xf32>
    %466 = vector.shape_cast %465 : vector<8xf32> to vector<8x1xf32>
    %cst_130 = arith.constant 3.200000e+01 : f32
    %467 = vector.broadcast %cst_130 : f32 to vector<8x1xf32>
    %468 = arith.divf %466, %467 : vector<8x1xf32>
    %469 = arith.mulf %464, %464 : vector<8x32xf32>
    %cst_131 = arith.constant dense<0.000000e+00> : vector<8xf32>
    %470 = vector.multi_reduction <add>, %469, %cst_131 [1] : vector<8x32xf32> to vector<8xf32>
    %471 = vector.shape_cast %470 : vector<8xf32> to vector<8x1xf32>
    %cst_132 = arith.constant 3.200000e+01 : f32
    %472 = vector.broadcast %cst_132 : f32 to vector<8x1xf32>
    %473 = arith.divf %471, %472 : vector<8x1xf32>
    %474 = arith.mulf %468, %468 : vector<8x1xf32>
    %475 = arith.subf %473, %474 : vector<8x1xf32>
    %cst_133 = arith.constant 0.000000e+00 : f32
    %476 = vector.broadcast %cst_133 : f32 to vector<8x1xf32>
    %477 = arith.maximumf %475, %476 : vector<8x1xf32>
    %478 = vector.broadcast %468 : vector<8x1xf32> to vector<8x32xf32>
    %479 = arith.subf %464, %478 : vector<8x32xf32>
    %cst_134 = arith.constant 9.99999974E-6 : f32
    %480 = vector.broadcast %cst_134 : f32 to vector<8x1xf32>
    %481 = arith.addf %477, %480 : vector<8x1xf32>
    %482 = math.rsqrt %481 : vector<8x1xf32>
    %483 = vector.broadcast %482 : vector<8x1xf32> to vector<8x32xf32>
    %484 = arith.mulf %479, %483 : vector<8x32xf32>
    %485 = vector.broadcast %14 : vector<1x32xf32> to vector<8x32xf32>
    %486 = arith.mulf %484, %485 : vector<8x32xf32>
    %487 = vector.broadcast %15 : vector<1x32xf32> to vector<8x32xf32>
    %488 = arith.addf %486, %487 : vector<8x32xf32>
    %489 = math.tanh %488 : vector<8x32xf32>
    %490 = arith.mulf %461, %489 : vector<8x32xf32>
    %491 = arith.index_cast %c2_i32 : i32 to index
    %c0_135 = arith.constant 0 : index
    %c0_136 = arith.constant 0 : index
    %492 = vector.load %arg10[%491, %c0_135, %c0_136] : memref<4x8x32xf32, #tpu.memory_space<vmem>>, vector<1x8x32xf32>
    %493 = vector.shape_cast %492 : vector<1x8x32xf32> to vector<8x32xf32>
    %494 = vector.shape_cast %490 : vector<8x32xf32> to vector<1x8x32xf32>
    tpu.vector_store %arg10[%491, %c0_135, %c0_136], %494 {strides = array<i32>} : memref<4x8x32xf32, #tpu.memory_space<vmem>>, vector<1x8x32xf32>,
    %c1_i32_137 = arith.constant 1 : i32
    %495 = arith.cmpi eq, %c2_i32, %c1_i32_137 : i32
    %496 = arith.select %495, %490, %339 : vector<8x32xf32>
    %497 = arith.select %495, %488, %340 : vector<8x32xf32>
    %c3_i32 = arith.constant 3 : i32
    %498 = arith.index_cast %c3_i32 : i32 to index
    %c0_138 = arith.constant 0 : index
    %c0_139 = arith.constant 0 : index
    %499 = vector.load %arg15[%498, %c0_138, %c0_139] : memref<4x8x128xf32, #tpu.memory_space<vmem>>, vector<1x8x128xf32>
    %500 = vector.shape_cast %499 : vector<1x8x128xf32> to vector<8x128xf32>
    %cst_140 = arith.constant dense<0.000000e+00> : vector<8x128xf32>
    %501 = tpu.matmul %490, %3, %cst_140 {dimension_numbers = #tpu.dot_dimension_numbers<[1], [0], [0], [1], [0, 0, 1, 1], [], []>} : vector<8x32xf32>, vector<32x128xf32>, vector<8x128xf32> -> vector<8x128xf32>
    %502 = arith.addf %500, %501 : vector<8x128xf32>
    %503 = vector.extract_strided_slice %502 {offsets = [0, 0], sizes = [8, 32], strides = [1, 1]} : vector<8x128xf32> to vector<8x32xf32>
    %cst_141 = arith.constant dense<0.000000e+00> : vector<8xf32>
    %504 = vector.multi_reduction <add>, %503, %cst_141 [1] : vector<8x32xf32> to vector<8xf32>
    %505 = vector.shape_cast %504 : vector<8xf32> to vector<8x1xf32>
    %cst_142 = arith.constant 3.200000e+01 : f32
    %506 = vector.broadcast %cst_142 : f32 to vector<8x1xf32>
    %507 = arith.divf %505, %506 : vector<8x1xf32>
    %508 = arith.mulf %503, %503 : vector<8x32xf32>
    %cst_143 = arith.constant dense<0.000000e+00> : vector<8xf32>
    %509 = vector.multi_reduction <add>, %508, %cst_143 [1] : vector<8x32xf32> to vector<8xf32>
    %510 = vector.shape_cast %509 : vector<8xf32> to vector<8x1xf32>
    %cst_144 = arith.constant 3.200000e+01 : f32
    %511 = vector.broadcast %cst_144 : f32 to vector<8x1xf32>
    %512 = arith.divf %510, %511 : vector<8x1xf32>
    %513 = arith.mulf %507, %507 : vector<8x1xf32>
    %514 = arith.subf %512, %513 : vector<8x1xf32>
    %cst_145 = arith.constant 0.000000e+00 : f32
    %515 = vector.broadcast %cst_145 : f32 to vector<8x1xf32>
    %516 = arith.maximumf %514, %515 : vector<8x1xf32>
    %517 = vector.broadcast %507 : vector<8x1xf32> to vector<8x32xf32>
    %518 = arith.subf %503, %517 : vector<8x32xf32>
    %cst_146 = arith.constant 9.99999974E-6 : f32
    %519 = vector.broadcast %cst_146 : f32 to vector<8x1xf32>
    %520 = arith.addf %516, %519 : vector<8x1xf32>
    %521 = math.rsqrt %520 : vector<8x1xf32>
    %522 = vector.broadcast %521 : vector<8x1xf32> to vector<8x32xf32>
    %523 = arith.mulf %518, %522 : vector<8x32xf32>
    %524 = vector.broadcast %6 : vector<1x32xf32> to vector<8x32xf32>
    %525 = arith.mulf %523, %524 : vector<8x32xf32>
    %526 = vector.broadcast %7 : vector<1x32xf32> to vector<8x32xf32>
    %527 = arith.addf %525, %526 : vector<8x32xf32>
    %528 = arith.negf %527 : vector<8x32xf32>
    %529 = math.exp %528 : vector<8x32xf32>
    %cst_147 = arith.constant 1.000000e+00 : f32
    %530 = vector.broadcast %cst_147 : f32 to vector<8x32xf32>
    %531 = arith.addf %530, %529 : vector<8x32xf32>
    %532 = arith.divf %530, %531 : vector<8x32xf32>
    %533 = vector.extract_strided_slice %502 {offsets = [0, 32], sizes = [8, 32], strides = [1, 1]} : vector<8x128xf32> to vector<8x32xf32>
    %cst_148 = arith.constant dense<0.000000e+00> : vector<8xf32>
    %534 = vector.multi_reduction <add>, %533, %cst_148 [1] : vector<8x32xf32> to vector<8xf32>
    %535 = vector.shape_cast %534 : vector<8xf32> to vector<8x1xf32>
    %cst_149 = arith.constant 3.200000e+01 : f32
    %536 = vector.broadcast %cst_149 : f32 to vector<8x1xf32>
    %537 = arith.divf %535, %536 : vector<8x1xf32>
    %538 = arith.mulf %533, %533 : vector<8x32xf32>
    %cst_150 = arith.constant dense<0.000000e+00> : vector<8xf32>
    %539 = vector.multi_reduction <add>, %538, %cst_150 [1] : vector<8x32xf32> to vector<8xf32>
    %540 = vector.shape_cast %539 : vector<8xf32> to vector<8x1xf32>
    %cst_151 = arith.constant 3.200000e+01 : f32
    %541 = vector.broadcast %cst_151 : f32 to vector<8x1xf32>
    %542 = arith.divf %540, %541 : vector<8x1xf32>
    %543 = arith.mulf %537, %537 : vector<8x1xf32>
    %544 = arith.subf %542, %543 : vector<8x1xf32>
    %cst_152 = arith.constant 0.000000e+00 : f32
    %545 = vector.broadcast %cst_152 : f32 to vector<8x1xf32>
    %546 = arith.maximumf %544, %545 : vector<8x1xf32>
    %547 = vector.broadcast %537 : vector<8x1xf32> to vector<8x32xf32>
    %548 = arith.subf %533, %547 : vector<8x32xf32>
    %cst_153 = arith.constant 9.99999974E-6 : f32
    %549 = vector.broadcast %cst_153 : f32 to vector<8x1xf32>
    %550 = arith.addf %546, %549 : vector<8x1xf32>
    %551 = math.rsqrt %550 : vector<8x1xf32>
    %552 = vector.broadcast %551 : vector<8x1xf32> to vector<8x32xf32>
    %553 = arith.mulf %548, %552 : vector<8x32xf32>
    %554 = vector.broadcast %8 : vector<1x32xf32> to vector<8x32xf32>
    %555 = arith.mulf %553, %554 : vector<8x32xf32>
    %556 = vector.broadcast %9 : vector<1x32xf32> to vector<8x32xf32>
    %557 = arith.addf %555, %556 : vector<8x32xf32>
    %558 = arith.negf %557 : vector<8x32xf32>
    %559 = math.exp %558 : vector<8x32xf32>
    %cst_154 = arith.constant 1.000000e+00 : f32
    %560 = vector.broadcast %cst_154 : f32 to vector<8x32xf32>
    %561 = arith.addf %560, %559 : vector<8x32xf32>
    %562 = arith.divf %560, %561 : vector<8x32xf32>
    %563 = vector.extract_strided_slice %502 {offsets = [0, 64], sizes = [8, 32], strides = [1, 1]} : vector<8x128xf32> to vector<8x32xf32>
    %cst_155 = arith.constant dense<0.000000e+00> : vector<8xf32>
    %564 = vector.multi_reduction <add>, %563, %cst_155 [1] : vector<8x32xf32> to vector<8xf32>
    %565 = vector.shape_cast %564 : vector<8xf32> to vector<8x1xf32>
    %cst_156 = arith.constant 3.200000e+01 : f32
    %566 = vector.broadcast %cst_156 : f32 to vector<8x1xf32>
    %567 = arith.divf %565, %566 : vector<8x1xf32>
    %568 = arith.mulf %563, %563 : vector<8x32xf32>
    %cst_157 = arith.constant dense<0.000000e+00> : vector<8xf32>
    %569 = vector.multi_reduction <add>, %568, %cst_157 [1] : vector<8x32xf32> to vector<8xf32>
    %570 = vector.shape_cast %569 : vector<8xf32> to vector<8x1xf32>
    %cst_158 = arith.constant 3.200000e+01 : f32
    %571 = vector.broadcast %cst_158 : f32 to vector<8x1xf32>
    %572 = arith.divf %570, %571 : vector<8x1xf32>
    %573 = arith.mulf %567, %567 : vector<8x1xf32>
    %574 = arith.subf %572, %573 : vector<8x1xf32>
    %cst_159 = arith.constant 0.000000e+00 : f32
    %575 = vector.broadcast %cst_159 : f32 to vector<8x1xf32>
    %576 = arith.maximumf %574, %575 : vector<8x1xf32>
    %577 = vector.broadcast %567 : vector<8x1xf32> to vector<8x32xf32>
    %578 = arith.subf %563, %577 : vector<8x32xf32>
    %cst_160 = arith.constant 9.99999974E-6 : f32
    %579 = vector.broadcast %cst_160 : f32 to vector<8x1xf32>
    %580 = arith.addf %576, %579 : vector<8x1xf32>
    %581 = math.rsqrt %580 : vector<8x1xf32>
    %582 = vector.broadcast %581 : vector<8x1xf32> to vector<8x32xf32>
    %583 = arith.mulf %578, %582 : vector<8x32xf32>
    %584 = vector.broadcast %10 : vector<1x32xf32> to vector<8x32xf32>
    %585 = arith.mulf %583, %584 : vector<8x32xf32>
    %586 = vector.broadcast %11 : vector<1x32xf32> to vector<8x32xf32>
    %587 = arith.addf %585, %586 : vector<8x32xf32>
    %588 = math.tanh %587 : vector<8x32xf32>
    %589 = vector.extract_strided_slice %502 {offsets = [0, 96], sizes = [8, 32], strides = [1, 1]} : vector<8x128xf32> to vector<8x32xf32>
    %cst_161 = arith.constant dense<0.000000e+00> : vector<8xf32>
    %590 = vector.multi_reduction <add>, %589, %cst_161 [1] : vector<8x32xf32> to vector<8xf32>
    %591 = vector.shape_cast %590 : vector<8xf32> to vector<8x1xf32>
    %cst_162 = arith.constant 3.200000e+01 : f32
    %592 = vector.broadcast %cst_162 : f32 to vector<8x1xf32>
    %593 = arith.divf %591, %592 : vector<8x1xf32>
    %594 = arith.mulf %589, %589 : vector<8x32xf32>
    %cst_163 = arith.constant dense<0.000000e+00> : vector<8xf32>
    %595 = vector.multi_reduction <add>, %594, %cst_163 [1] : vector<8x32xf32> to vector<8xf32>
    %596 = vector.shape_cast %595 : vector<8xf32> to vector<8x1xf32>
    %cst_164 = arith.constant 3.200000e+01 : f32
    %597 = vector.broadcast %cst_164 : f32 to vector<8x1xf32>
    %598 = arith.divf %596, %597 : vector<8x1xf32>
    %599 = arith.mulf %593, %593 : vector<8x1xf32>
    %600 = arith.subf %598, %599 : vector<8x1xf32>
    %cst_165 = arith.constant 0.000000e+00 : f32
    %601 = vector.broadcast %cst_165 : f32 to vector<8x1xf32>
    %602 = arith.maximumf %600, %601 : vector<8x1xf32>
    %603 = vector.broadcast %593 : vector<8x1xf32> to vector<8x32xf32>
    %604 = arith.subf %589, %603 : vector<8x32xf32>
    %cst_166 = arith.constant 9.99999974E-6 : f32
    %605 = vector.broadcast %cst_166 : f32 to vector<8x1xf32>
    %606 = arith.addf %602, %605 : vector<8x1xf32>
    %607 = math.rsqrt %606 : vector<8x1xf32>
    %608 = vector.broadcast %607 : vector<8x1xf32> to vector<8x32xf32>
    %609 = arith.mulf %604, %608 : vector<8x32xf32>
    %610 = vector.broadcast %12 : vector<1x32xf32> to vector<8x32xf32>
    %611 = arith.mulf %609, %610 : vector<8x32xf32>
    %612 = vector.broadcast %13 : vector<1x32xf32> to vector<8x32xf32>
    %613 = arith.addf %611, %612 : vector<8x32xf32>
    %614 = arith.negf %613 : vector<8x32xf32>
    %615 = math.exp %614 : vector<8x32xf32>
    %cst_167 = arith.constant 1.000000e+00 : f32
    %616 = vector.broadcast %cst_167 : f32 to vector<8x32xf32>
    %617 = arith.addf %616, %615 : vector<8x32xf32>
    %618 = arith.divf %616, %617 : vector<8x32xf32>
    %619 = arith.mulf %562, %488 : vector<8x32xf32>
    %620 = arith.mulf %532, %588 : vector<8x32xf32>
    %621 = arith.addf %619, %620 : vector<8x32xf32>
    %cst_168 = arith.constant dense<0.000000e+00> : vector<8xf32>
    %622 = vector.multi_reduction <add>, %621, %cst_168 [1] : vector<8x32xf32> to vector<8xf32>
    %623 = vector.shape_cast %622 : vector<8xf32> to vector<8x1xf32>
    %cst_169 = arith.constant 3.200000e+01 : f32
    %624 = vector.broadcast %cst_169 : f32 to vector<8x1xf32>
    %625 = arith.divf %623, %624 : vector<8x1xf32>
    %626 = arith.mulf %621, %621 : vector<8x32xf32>
    %cst_170 = arith.constant dense<0.000000e+00> : vector<8xf32>
    %627 = vector.multi_reduction <add>, %626, %cst_170 [1] : vector<8x32xf32> to vector<8xf32>
    %628 = vector.shape_cast %627 : vector<8xf32> to vector<8x1xf32>
    %cst_171 = arith.constant 3.200000e+01 : f32
    %629 = vector.broadcast %cst_171 : f32 to vector<8x1xf32>
    %630 = arith.divf %628, %629 : vector<8x1xf32>
    %631 = arith.mulf %625, %625 : vector<8x1xf32>
    %632 = arith.subf %630, %631 : vector<8x1xf32>
    %cst_172 = arith.constant 0.000000e+00 : f32
    %633 = vector.broadcast %cst_172 : f32 to vector<8x1xf32>
    %634 = arith.maximumf %632, %633 : vector<8x1xf32>
    %635 = vector.broadcast %625 : vector<8x1xf32> to vector<8x32xf32>
    %636 = arith.subf %621, %635 : vector<8x32xf32>
    %cst_173 = arith.constant 9.99999974E-6 : f32
    %637 = vector.broadcast %cst_173 : f32 to vector<8x1xf32>
    %638 = arith.addf %634, %637 : vector<8x1xf32>
    %639 = math.rsqrt %638 : vector<8x1xf32>
    %640 = vector.broadcast %639 : vector<8x1xf32> to vector<8x32xf32>
    %641 = arith.mulf %636, %640 : vector<8x32xf32>
    %642 = vector.broadcast %14 : vector<1x32xf32> to vector<8x32xf32>
    %643 = arith.mulf %641, %642 : vector<8x32xf32>
    %644 = vector.broadcast %15 : vector<1x32xf32> to vector<8x32xf32>
    %645 = arith.addf %643, %644 : vector<8x32xf32>
    %646 = math.tanh %645 : vector<8x32xf32>
    %647 = arith.mulf %618, %646 : vector<8x32xf32>
    %648 = arith.index_cast %c3_i32 : i32 to index
    %c0_174 = arith.constant 0 : index
    %c0_175 = arith.constant 0 : index
    %649 = vector.load %arg10[%648, %c0_174, %c0_175] : memref<4x8x32xf32, #tpu.memory_space<vmem>>, vector<1x8x32xf32>
    %650 = vector.shape_cast %649 : vector<1x8x32xf32> to vector<8x32xf32>
    %651 = vector.shape_cast %647 : vector<8x32xf32> to vector<1x8x32xf32>
    tpu.vector_store %arg10[%648, %c0_174, %c0_175], %651 {strides = array<i32>} : memref<4x8x32xf32, #tpu.memory_space<vmem>>, vector<1x8x32xf32>,
    %c1_i32_176 = arith.constant 1 : i32
    %652 = arith.cmpi eq, %c3_i32, %c1_i32_176 : i32
    %653 = arith.select %652, %647, %496 : vector<8x32xf32>
    %654 = arith.select %652, %645, %497 : vector<8x32xf32>
    %c4_i32 = arith.constant 4 : i32
    %c0_177 = arith.constant 0 : index
    %c0_178 = arith.constant 0 : index
    %655 = vector.load %arg13[%c0_177, %c0_178] : memref<8x32xf32, #tpu.memory_space<vmem>>, vector<8x32xf32>
    tpu.vector_store %arg13[%c0_177, %c0_178], %647 {strides = array<i32>} : memref<8x32xf32, #tpu.memory_space<vmem>>, vector<8x32xf32>,
    %c0_179 = arith.constant 0 : index
    %c0_180 = arith.constant 0 : index
    %656 = vector.load %arg14[%c0_179, %c0_180] : memref<8x32xf32, #tpu.memory_space<vmem>>, vector<8x32xf32>
    tpu.vector_store %arg14[%c0_179, %c0_180], %645 {strides = array<i32>} : memref<8x32xf32, #tpu.memory_space<vmem>>, vector<8x32xf32>,
    %c2_i32_181 = arith.constant 2 : i32
    %657 = arith.cmpi eq, %arg1, %c2_i32_181 : i32
    %658 = arith.extui %657 : i1 to i32
    %c0_i32_182 = arith.constant 0 : i32
    %659 = arith.cmpi ne, %658, %c0_i32_182 : i32
    scf.if %659 {
      %c0_183 = arith.constant 0 : index
      %c0_184 = arith.constant 0 : index
      %660 = vector.load %arg11[%c0_183, %c0_184] : memref<8x32xf32, #tpu.memory_space<vmem>>, vector<8x32xf32>
      tpu.vector_store %arg11[%c0_183, %c0_184], %653 {strides = array<i32>} : memref<8x32xf32, #tpu.memory_space<vmem>>, vector<8x32xf32>,
      %c0_185 = arith.constant 0 : index
      %c0_186 = arith.constant 0 : index
      %661 = vector.load %arg12[%c0_185, %c0_186] : memref<8x32xf32, #tpu.memory_space<vmem>>, vector<8x32xf32>
      tpu.vector_store %arg12[%c0_185, %c0_186], %654 {strides = array<i32>} : memref<8x32xf32, #tpu.memory_space<vmem>>, vector<8x32xf32>,
    } else {
    }
    return
  }
  func.func @transform_0(%arg0: i32, %arg1: i32) -> (i32, i32, i32) {
    %c0_i32 = arith.constant 0 : i32
    %c0_i32_0 = arith.constant 0 : i32
    return %arg1, %arg0, %c0_i32 : i32, i32, i32
  }
  func.func @transform_1(%arg0: i32, %arg1: i32) -> (i32, i32) {
    %c0_i32 = arith.constant 0 : i32
    %c0_i32_0 = arith.constant 0 : i32
    return %arg0, %c0_i32 : i32, i32
  }
  func.func @transform_2(%arg0: i32, %arg1: i32) -> (i32, i32) {
    %c0_i32 = arith.constant 0 : i32
    %c0_i32_0 = arith.constant 0 : i32
    return %arg0, %c0_i32 : i32, i32
  }
  func.func @transform_3(%arg0: i32, %arg1: i32) -> (i32, i32) {
    %c0_i32 = arith.constant 0 : i32
    %c0_i32_0 = arith.constant 0 : i32
    %c0_i32_1 = arith.constant 0 : i32
    return %c0_i32, %c0_i32_0 : i32, i32
  }
  func.func @transform_4(%arg0: i32, %arg1: i32) -> (i32, i32) {
    %c0_i32 = arith.constant 0 : i32
    %c0_i32_0 = arith.constant 0 : i32
    %c0_i32_1 = arith.constant 0 : i32
    return %c0_i32, %c0_i32_0 : i32, i32
  }
  func.func @transform_5(%arg0: i32, %arg1: i32) -> (i32, i32) {
    %c0_i32 = arith.constant 0 : i32
    %c0_i32_0 = arith.constant 0 : i32
    %c0_i32_1 = arith.constant 0 : i32
    return %c0_i32, %c0_i32_0 : i32, i32
  }
  func.func @transform_6(%arg0: i32, %arg1: i32) -> (i32, i32) {
    %c0_i32 = arith.constant 0 : i32
    %c0_i32_0 = arith.constant 0 : i32
    %c0_i32_1 = arith.constant 0 : i32
    return %c0_i32, %c0_i32_0 : i32, i32
  }
  func.func @transform_7(%arg0: i32, %arg1: i32) -> (i32, i32) {
    %c0_i32 = arith.constant 0 : i32
    %c0_i32_0 = arith.constant 0 : i32
    %c0_i32_1 = arith.constant 0 : i32
    return %c0_i32, %c0_i32_0 : i32, i32
  }
  func.func @transform_8(%arg0: i32, %arg1: i32) -> (i32, i32, i32) {
    %c0_i32 = arith.constant 0 : i32
    %c0_i32_0 = arith.constant 0 : i32
    return %arg1, %arg0, %c0_i32 : i32, i32, i32
  }
  func.func @transform_9(%arg0: i32, %arg1: i32) -> (i32, i32) {
    %c0_i32 = arith.constant 0 : i32
    %c0_i32_0 = arith.constant 0 : i32
    return %arg0, %c0_i32 : i32, i32
  }
  func.func @transform_10(%arg0: i32, %arg1: i32) -> (i32, i32) {
    %c0_i32 = arith.constant 0 : i32
    %c0_i32_0 = arith.constant 0 : i32
    return %arg0, %c0_i32 : i32, i32
  }
}

</mosaic_0001>

<bundles_post_ra>
// kernel: tpu_custom_call.1
= control target key start
LH: loop header
LB: loop body
LE: loop exit
PB: predicated region body
PF: predicated region fallthrough
CT: control target
= control target key end

     0   :  { %s3236_s0 = inlined_call_operand.hbm [shape: f32[12,8,16], index: 0, kind: input, shape index: {}]   ;;  %s3237_s1 = inlined_call_operand.hbm [shape: f32[8,32], index: 1, kind: input, shape index: {}]   ;;  %s3238_s2 = inlined_call_operand.hbm [shape: f32[8,32], index: 2, kind: input, shape index: {}]   ;;  %s3239_s3 = inlined_call_operand.hbm [shape: f32[16,128], index: 3, kind: input, shape index: {}]   ;;  %s3240_s4 = inlined_call_operand.hbm [shape: f32[32,128], index: 4, kind: input, shape index: {}]   ;;  %s3241_s5 = inlined_call_operand.vmem [shape: f32[1,128], index: 5, kind: input, shape index: {}]   ;;  %s3242_s6 = inlined_call_operand.hbm [shape: f32[5,32], index: 6, kind: input, shape index: {}]   ;;  %s3243_s7 = inlined_call_operand.hbm [shape: f32[5,32], index: 7, kind: input, shape index: {}]   ;;  %s3244_s8 = inlined_call_operand.hbm [shape: f32[12,8,32], index: 8, kind: output, shape index: {0}]   ;;  %s3245_s9 = inlined_call_operand.hbm [shape: f32[8,32], index: 9, kind: output, shape index: {1}]   ;;  %s3246_s10 = inlined_call_operand.hbm [shape: f32[8,32], index: 10, kind: output, shape index: {2}]  }
   0x1   :  { %3252 = sst [smem:[#allocation28_spill]] %s3237_s1 }
   0x2   :  { %3253 = sst [smem:[#allocation29_spill]] %s3238_s2 }
   0x3   :  { %3254 = sst [smem:[#allocation30_spill]] %s3239_s3 }
   0x4   :  { %3255 = sst [smem:[#allocation31_spill]] %s3240_s4 }
   0x5   :  { %3256 = sst [smem:[#allocation32_spill]] %s3242_s6 }
   0x6   :  { %3257 = sst [smem:[#allocation33_spill]] %s3243_s7 }
   0x7   :  { %16 = vsyncpa [#allocation6], 0 }
   0x8   :  { %18 = vsyncpa [#allocation6 + $0x1], 0 }
   0x9   :  { %19 = vsyncpa [#allocation9], 0 }
   0xa   :  { %20 = vsyncpa [#allocation12], 0 }
   0xb   :  { %21 = vsyncpa [#allocation15], 0 }
   0xc   :  { %22 = vsyncpa [#allocation7], 0 }
   0xd   :  { %24 = vsyncpa [#allocation7 + $0x1], 0 }
   0xe   :  { %25 = vsyncpa [#allocation19], 0  ;;  %s2686_s13 = smov 0   ;;  %s2688_s14 = smov 0  }
   0xf   :  { %s2690_s15 = smov 0   ;;  %s2692_s16 = smov 0  }
  0x10   :  { %s2694_s17 = smov 0   ;;  %s2696_s18 = smov 0  }
  0x11 LB: > { %s3247_s19 = sadd.s32 4294967295, %s2612_s18   ;;  %p1936_p0 = scmp.ge.s32.totalorder %s2612_s18, 1  ;;  %s2612_s18 = sphi %s2696_s18, %s31_s18   ;;  %s2608_s17 = sphi %s2694_s17, %s3280_s17   ;;  %s2604_s16 = sphi %s2692_s16, %s3279_s16   ;;  %s2600_s15 = sphi %s2690_s15, %s3278_s15   ;;  %s2596_s14 = sphi %s2688_s14, %s3277_s14   ;;  %s2592_s13 = sphi %s2686_s13, %s3276_s13  }
  0x12   : > { %p2720_p1 = scmp.eq.s32.totalorder %s3247_s19, 0  ;;  %p313_p2 = scmp.lt.s32.totalorder %s2612_s18, 4 }
  0x13   : > { %s3259_s1 = sld [smem:[#allocation28_spill]]  ;;  %s2614_s25 = smov [#allocation8]  }
  0x14   : > { %p2728_p3 = pnand %p1936_p0, %p313_p2  ;;  %s329_s26 = sshll.u32 %s2614_s25, 4  ;;  %s330_s26 = int_to_ptr.vmem [resolvable:$true] %s329_s26 }
  0x15   : > { %s3261_s3 = sld [smem:[#allocation30_spill]]  ;;  %s2615_s11 = smov [#allocation11]  }
  0x16   : > { %p2030_p4 = pneg %p2728_p3  ;;  %s354_s12 = sshll.u32 %s2615_s11, 4  ;;  %s355_s12 = int_to_ptr.vmem [resolvable:$true] %s354_s12 }
  0x17   : > { %s3248_s21 = smov 128   ;;  %s3250_s22 = smov 8  }
  0x18   : > { %p2739_p5 = pnand %p2030_p4, %p2720_p1  ;;  %s3263_s6 = sld [smem:[#allocation32_spill]] }
  0x19   : > { %s327_s23 = sshll.u32 %s3259_s1, 4  ;;  %s2618_s19 = smov [#allocation14]   ;;  %s328_s23 = int_to_ptr.hbm [resolvable:$true] %s327_s23 }
  0x1a   : > { %2033 = dma.hbm_to_vmem [thread:$0]  (!%p2739_p5), %s328_s23, 128, %s330_s26, [#allocation9]  }
  0x1b   : > { %s352_s29 = sshll.u32 %s3261_s3, 4  ;;  %s386_s1 = sshll.u32 %s2618_s19, 4  ;;  %s353_s29 = int_to_ptr.hbm [resolvable:$true] %s352_s29  ;;  %s387_s1 = int_to_ptr.vmem [resolvable:$true] %s386_s1 }
  0x1c   : > { %2039 = dma.hbm_to_vmem [thread:$0]  (!%p2739_p5), %s353_s29, 256, %s355_s12, [#allocation12], %s3248_s21, %s3248_s21, %s3250_s22  }
  0x1d   : > { %s3264_s2 = sld [smem:[#allocation29_spill]]  ;;  %s2619_s3 = smov [#allocation10]  }
  0x1e   : > { %s384_s28 = sshll.u32 %s3263_s6, 4  ;;  %s343_s29 = sshll.u32 %s2619_s3, 4  ;;  %s385_s28 = int_to_ptr.hbm [resolvable:$true] %s384_s28  ;;  %s344_s29 = int_to_ptr.vmem [resolvable:$true] %s343_s29 }
  0x1f   : > { %2045 = dma.hbm_to_vmem [thread:$0]  (!%p2739_p5), %s385_s28, 128, %s387_s1, [#allocation15]  }
  0x20   : > { %s3265_s4 = sld [smem:[#allocation31_spill]]  ;;  %s2620_s28 = smov [#allocation13]  }
  0x21   : > { %s3266_s7 = sld [smem:[#allocation33_spill]]  ;;  %s368_s3 = sshll.u32 %s2620_s28, 4  ;;  %s369_s3 = int_to_ptr.vmem [resolvable:$true] %s368_s3 }
  0x22   : > { %s3267_s21 = smov 128   ;;  %s2621_s11 = smov [#allocation16]  }
  0x23   : > { %s341_s26 = sshll.u32 %s3264_s2, 4  ;;  %s398_s23 = sshll.u32 %s2621_s11, 4  ;;  %s342_s26 = int_to_ptr.hbm [resolvable:$true] %s341_s26  ;;  %s399_s23 = int_to_ptr.vmem [resolvable:$true] %s398_s23 }
  0x24   : > { %2036 = dma.hbm_to_vmem [thread:$0]  (!%p2739_p5), %s342_s26, 128, %s344_s29, [#allocation9]  }
  0x25   : > { %s40_s26 = sadd.s32 1, %s2608_s17  ;;  %s1935_s29 = sadd.s32 4294967294, %s2612_s18  }
  0x26   : > { %s366_s25 = sshll.u32 %s3265_s4, 4  ;;  %p41_p6 = scmp.ge.s32.totalorder %s40_s26, 3  ;;  %s367_s25 = int_to_ptr.hbm [resolvable:$true] %s366_s25 }
  0x27   : > { %s396_s1 = sshll.u32 %s3266_s7, 4  ;;  %s52_s12 = sadd.s32 1, %s2600_s15  ;;  %s397_s1 = int_to_ptr.hbm [resolvable:$true] %s396_s1 }
  0x28   : > { %2042 = dma.hbm_to_vmem [thread:$0]  (!%p2739_p5), %s367_s25, 512, %s369_s3, [#allocation12], %s3267_s21, %s3267_s21, %s3250_s22  }
  0x29   : > { %2048 = dma.hbm_to_vmem [thread:$0]  (!%p2739_p5), %s397_s1, 128, %s399_s23, [#allocation15]  }
  0x2a   : > { %p59_p7 = scmp.ne.s32.totalorder %s2600_s15, %s2596_s14  ;;  %s3282_s26 = smov (%p41_p6, %s40_s26), 0 }
  0x2b   : > { %3268 = sst [smem:[#allocation27_spill]] %s3282_s26  ;;  %p60_p8 = scmp.eq.s32.totalorder %s2612_s18, 0 }
  0x2c   : > { %p65_p9 = scmp.ne.s32.totalorder %s2596_s14, %s2592_s13  ;;  %s47_s25 = ssub.s32 %s2608_s17, %s3282_s26 }
  0x2d   : > { %s3269_s19 = sadd.s32 4294967295, %s2612_s18   ;;  %p50_p11 = scmp.eq.s32.totalorder %s47_s25, 0 }
  0x2e   : > { %p2787_p10 = scmp.eq.s32.totalorder %s3269_s19, 2  ;;  %p2793_p12 = por %p2720_p1, %p65_p9 }
  0x2f   : > { %p254_p0 = scmp.eq.s32.totalorder %s1935_s29, 2  ;;  %p61_p2 = por %p60_p8, %p59_p7 }
  0x30   : > { %p2799_p13 = por %p2787_p10, %p59_p7  ;;  %s409_s11 = sand.u32 1, %s2600_s15  }
  0x31   : > { %s2804_s28 = scalar_select %p50_p11, %s2600_s15, %s52_s12  }
  0x32   : > { %p2806_p4 = por %p254_p0, %p65_p9  ;;  %s1990_s23 = sshll.u32 %s2608_s17, 5 }
  0x33   : > { %p2063_p5 = scmp.lt.s32.totalorder %s2612_s18, 3  ;;  %s1944_s25 = sshll.u32 %s409_s11, 5 }
  0x34   : > { %s419_s2 = scalar_lea.hbm %s3236_s0, %s1990_s23  ;;  %s413_s6 = scalar_lea.vmem [#allocation5], %s1944_s25 }
  0x35   : > { %s420_s4 = sshll.u32 %s419_s2, 4  ;;  %s422_s7 = sshll.u32 %s413_s6, 4  ;;  %s421_s4 = int_to_ptr.hbm [resolvable:$true] %s420_s4  ;;  %s423_s7 = int_to_ptr.vmem [resolvable:$true] %s422_s7 }
  0x36   : > { %p2050_p6 = pnand %p2063_p5, %p61_p2  ;;  %s410_s29 = scalar_lea.sflag [#allocation6], %s409_s11 }
  0x37   : > { %s3274_s12 = smov 8   ;;  %434 = sbr.rel (%p2728_p3) target bundleno = 4667 (0x123b), region = 52 }
  0x38   : > { %2052 = dma.hbm_to_vmem [thread:$0]  (!%p2050_p6), %s421_s4, 512, %s423_s7, %s410_s29, %s3267_s21, %s3267_s21, %s3274_s12  }
  0x39   : > { %s2822_s26 = sand.u32 (!%p2728_p3), 1, %s2596_s14  }
  0x3a   : > { %s1948_s2 = sshll.u32 (!%p2728_p3), %s2822_s26, 5  ;;  %s437_s22 = scalar_lea.sflag (!%p2728_p3), [#allocation6], %s2822_s26 }
  0x3b   : > { %s2826_s6 = scalar_lea.vmem (!%p2728_p3), [#allocation5], %s1948_s2 }
  0x3c   : > { %2567 = dma.done.wait (%p2793_p12), %s437_s22, 512  }
  0x3d   : > { %2569 = vsyncadd (%p2793_p12), %s437_s22, 4294966784 }
  0x3e   : > { %2571 = dma.done.wait (%p2720_p1), [#allocation9], 256  }
  0x3f   : > { %2573 = vsyncadd (%p2720_p1), [#allocation9], 4294967040 }
  0x40   : > { %2575 = dma.done.wait (%p2720_p1), [#allocation12], 768  }
  0x41   : > { %2577 = vsyncadd (%p2720_p1), [#allocation12], 4294966528 }
  0x42   : > { %2579 = dma.done.wait (%p2720_p1), [#allocation15], 256  }
  0x43   : > { %2581 = vsyncadd (%p2720_p1), [#allocation15], 4294967040  ;;  %s2844_s4 = scalar_lea.vmem [#allocation17], %s1948_s2  ;;  %p1956_p3 = scmp.ne.s32.totalorder %s2604_s16, 0 }
  0x45   : > { %513 = sbr.rel (%p1956_p3) target bundleno = 77 (0x4d), region = 84 }
  0x4a   : > { %v514_v0 = vld [vmem:[#allocation8] sm:$0xff]  ;;  %vm515_vm0 = vcmask 261120   ;;  %v517_v1 = vld [vmem:[#allocation10] sm:$0xff] }
  0x4b   : > { %516 = vst.msk [vmem:[#allocation2] sm:$0xff] %vm515_vm0, %v514_v0 }
  0x4c   : > { %518 = vst.msk [vmem:[#allocation3] sm:$0xff] %vm515_vm0, %v517_v1 }
  0x4d PF: > { %v522_v2 = vld [vmem:[#allocation13 + $0x18] sm:$0xff]  ;;  %v521_v4 = vld [vmem:[#allocation13 + $0x10] sm:$0xff]  ;;  %v525_v6 = vld [vmem:[%s2826_s6] sm:$0xff]  ;;  %vm535_vm1 = vcmask 130048   ;;  %vm584_vm2 = vcmask 261120   ;;  %s2622_s24 = smov 96  }
  0x4e   : > { %v530_v3 = vld [vmem:[#allocation11 + $0x8] sm:$0xff]  ;;  %600 = vmatpush.msra.mxu1 %v522_v2  ;;  %v529_v5 = vld [vmem:[#allocation11] sm:$0xff]  ;;  %v520_v7 = vld [vmem:[#allocation13 + $0x8] sm:$0xff]  ;;  %1184 = vmatpush.msra.mxu3 %v522_v2  ;;  %s2623_s21 = smov 64   ;;  %v2624_v30 = vmov 32.0   ;;  %s2625_s30 = smov 32  }
  0x4f   : > { %562 = vmatpush.msra.mxu0 %v530_v3  ;;  %1992 = vmatpush.msra.mxu2 %v530_v3  ;;  %v519_v8 = vld [vmem:[#allocation13] sm:$0xff]  ;;  %v2853_v10 = vld [vmem:[%s3241_s5] ss:$0 sm:$0xff]  ;;  %v2881_v26 = vld [vmem:[#allocation16] sm:$0x1f]  ;;  %2141 = vrcp.f32 %v2624_v30  ;;  %p1980_p1 = scmp.ne.s32.totalorder %s2604_s16, 2 }
  0x50   : > { %601 = vmatpush.msra.mxu1 %v521_v4  ;;  %1185 = vmatpush.msra.mxu3 %v521_v4  ;;  %v2872_v17 = vld [vmem:[#allocation14] sm:$0x1f]  ;;  %v763_v27 = vperm.slane %v2881_v26, 2  ;;  %v702_v38 = vperm.slane %v2881_v26, 1  ;;  %s2626_s25 = smov (!%p1980_p1), 96  }
  0x51   : > { %563 = vmatpush.msra.mxu0 %v529_v5  ;;  %1993 = vmatpush.msra.mxu2 %v529_v5  ;;  %v757_v18 = vperm.slane %v2872_v17, 2 }
  0x52   : > { %1957 = vmatmul.msk.f32.vlgmr.msra.gmra.mxu0 %vm535_vm1, %v525_v6  ;;  %602 = vmatpush.msra.mxu1 %v520_v7  ;;  %v581_v9 = vld [vmem:[#allocation2] sm:$0xff] }
  0x53   : > { %918 = vmatpush.msrb.mxu2 %v522_v2  ;;  %1186 = vmatpush.msra.mxu3 %v520_v7 }
  0x54   : > { %603 = vmatpush.msra.mxu1 %v519_v8 }
  0x55   : > { %919 = vmatpush.msrb.mxu2 %v521_v4  ;;  %1961 = vmatmul.msk.f32.vlgmr.msra.gmra.mxu1 %vm584_vm2, %v581_v9  ;;  %v2142_v31 = vpop.eup %2141 }
  0x56   : > { %1450 = vmatpush.msrb.mxu1 %v522_v2  ;;  %1187 = vmatpush.msra.mxu3 %v519_v8  ;;  %v613_v32 = vmul.f32 32.0, %v2142_v31  ;;  %vm617_vm3 = vweird.f32 %v2142_v31 }
  0x57   : > { %920 = vmatpush.msrb.mxu2 %v520_v7 }
  0x58   : > { %1451 = vmatpush.msrb.mxu1 %v521_v4  ;;  %v614_v33 = vsub.f32 1.0, %v613_v32  ;;  %v696_v4 = vperm.slane %v2872_v17, 1 }
  0x59   : > { %921 = vmatpush.msrb.mxu2 %v519_v8 }
  0x5a   : > { %1452 = vmatpush.msrb.mxu1 %v520_v7  ;;  %v615_v35 = vmul.f32 %v2142_v31, %v614_v33  ;;  %v582_v7 = vld [vmem:[#allocation3] sm:$0xff] }
  0x5c   : > { %1453 = vmatpush.msrb.mxu1 %v519_v8  ;;  %v616_v36 = vadd.f32 %v2142_v31, %v615_v35 }
  0x5e   : > { %v2888_v39 = vsel %vm617_vm3, %v2142_v31, %v616_v36 }
  0xcf   : > { %v565_v11 = vpop.f32.mrf.mxu0 }
  0xd0   : > { %v566_v12 = vadd.f32 %v2853_v10, %v565_v11 }
  0xd2   : > { %v605_v13 = vpop.f32.mrf.mxu1 }
  0xd3   : > { %v2856_v14 = vadd.f32 %v605_v13, %v566_v12 }
  0xd5   : > { %665 = vrot.lane.b32.xlu2 %v2856_v14, %s2622_s24  ;;  %727 = vrot.lane.b32.xlu0 %v2856_v14, %s2623_s21  ;;  %v2864_v15 = vmul.f32 %v2856_v14, %v2856_v14  ;;  %v609_v19 = vsel %vm584_vm2, %v2856_v14, 0.0 }
  0xd7   : > { %v621_v16 = vsel %vm584_vm2, %v2864_v15, 0.0 }
  0xd8   : > { %622 = vadd.xlane.f32.xlu1 %v621_v16 }
  0xdd   : > { %734 = vrot.lane.b32.xlu0 %v2864_v15, %s2623_s21 }
  0xe5   : > { %673 = vrot.lane.b32.xlu0 %v2864_v15, %s2622_s24 }
  0xed   : > { %759 = vrot.lane.b32.xlu0 %v757_v18, %s2623_s21  ;;  %v2907_v18 = vperm.slane %v2872_v17, 0 }
  0xfe   : > { %610 = vadd.xlane.f32.xlu2 %v609_v19 }
 0x12f   : > { %v666_v20 = vpop.permute.xlu2 %665 }
 0x130   : > { %v668_v21 = vsel %vm584_vm2, %v666_v20, 0.0  ;;  %v2910_v20 = vperm.slane %v2881_v26, 0 }
 0x131   : > { %669 = vadd.xlane.f32.xlu0 %v668_v21 }
 0x145   : > { %704 = vrot.lane.b32.xlu0 %v702_v38, %s2625_s30 }
 0x147   : > { %v728_v22 = vpop.permute.xlu0 %727 }
 0x148   : > { %v730_v23 = vsel %vm584_vm2, %v728_v22, 0.0 }
 0x149   : > { %731 = vadd.xlane.f32.xlu1 %v730_v23 }
 0x14b   : > { %v623_v34 = vpop.xlane.xlu1 %622 }
 0x14c   : > { %v624_v58 = vmul.f32 %v623_v34, %v2888_v39 }
 0x14f   : > { %v735_v24 = vpop.permute.xlu0 %734 }
 0x150   : > { %v737_v25 = vsel %vm584_vm2, %v735_v24, 0.0 }
 0x151   : > { %738 = vadd.xlane.f32.xlu1 %v737_v25 }
 0x157   : > { %v674_v28 = vpop.permute.xlu0 %673 }
 0x158   : > { %v676_v29 = vsel %vm584_vm2, %v674_v28, 0.0 }
 0x15f   : > { %v2895_v60 = vpop.permute.xlu0 %759 }
 0x16a   : > { %765 = vrot.lane.b32.xlu1 %v763_v27, %s2623_s21 }
 0x171   : > { %v611_v49 = vpop.xlane.xlu2 %610 }
 0x172   : > { %v619_v52 = vmul.f32 %v2888_v39, %v611_v49 }
 0x174   : > { %v625_v55 = vmul.f32 %v619_v52, %v619_v52  ;;  %v628_v16 = vsub.f32 %v2856_v14, %v619_v52 }
 0x176   : > { %v626_v62 = vsub.f32 %v624_v58, %v625_v55 }
 0x178   : > { %v627_v1 = vmax.f32 %v626_v62, 0.0 }
 0x17a   : > { %v629_v2 = vadd.f32 1e-05, %v627_v1 }
 0x17c   : > { %vm636_vm8 = vweird.f32 %v629_v2 }
 0x194   : > { %677 = vadd.xlane.f32.xlu1 %v676_v29 }
 0x1a4   : > { %v670_v28 = vpop.xlane.xlu0 %669 }
 0x1a5   : > { %v671_v31 = vmul.f32 %v670_v28, %v2888_v39 }
 0x1a7   : > { %v680_v34 = vmul.f32 %v671_v31, %v671_v31  ;;  %v683_v55 = vsub.f32 %v2856_v14, %v671_v31 }
 0x1bc   : > { %v732_v37 = vpop.xlane.xlu1 %731 }
 0x1bd   : > { %v733_v40 = vmul.f32 %v732_v37, %v2888_v39 }
 0x1bf   : > { %v741_v42 = vmul.f32 %v733_v40, %v733_v40  ;;  %v744_v56 = vsub.f32 %v2856_v14, %v733_v40 }
 0x1c4   : > { %v739_v41 = vpop.xlane.xlu1 %738 }
 0x1c5   : > { %v740_v43 = vmul.f32 %v739_v41, %v2888_v39 }
 0x1c7   : > { %v742_v44 = vsub.f32 %v740_v43, %v741_v42 }
 0x1c9   : > { %v743_v45 = vmax.f32 %v742_v44, 0.0 }
 0x1cb   : > { %v745_v46 = vadd.f32 1e-05, %v743_v45 }
 0x1cd   : > { %2143 = vrsqrt.f32 %v745_v46  ;;  %vm752_vm5 = vweird.f32 %v745_v46 }
 0x1d3   : > { %v2144_v47 = vpop.eup %2143 }
 0x1d4   : > { %v747_v48 = vmul.f32 %v2144_v47, %v745_v46  ;;  %vm753_vm4 = vweird.f32 %v2144_v47 }
 0x1d5   : > { %vm754_vm6 = vmor %vm752_vm5, %vm753_vm4 }
 0x1d6   : > { %v748_v50 = vmul.f32 %v2144_v47, %v747_v48 }
 0x1d8   : > { %v749_v51 = vmul.f32 0.5, %v748_v50 }
 0x1da   : > { %v750_v53 = vsub.f32 1.5, %v749_v51 }
 0x1dc   : > { %v751_v54 = vmul.f32 %v2144_v47, %v750_v53  ;;  %v2897_v61 = vpop.permute.xlu1 %765 }
 0x1de   : > { %v755_v57 = vsel %vm754_vm6, %v2144_v47, %v751_v54 }
 0x1df   : > { %v756_v59 = vmul.f32 %v755_v57, %v744_v56 }
 0x1e1   : > { %v762_v63 = vmul.f32 %v2895_v60, %v756_v59  ;;  %v2923_v59 = vpop.permute.xlu0 %704 }
 0x1e3   : > { %v768_v0 = vadd.f32 %v2897_v61, %v762_v63 }
 0x1e5   : > { %2145 = vtanh.f32 %v768_v0 }
 0x1e6   : > { %2147 = vrsqrt.f32 %v629_v2 }
 0x1eb   : > { %v2146_v3 = vpop.eup %2145 }
 0x1ec   : > { %837 = vrot.lane.b32.xlu2 %v2146_v3, %s2623_s21  ;;  %v2148_v5 = vpop.eup %2147 }
 0x1ed   : > { %v631_v6 = vmul.f32 %v2148_v5, %v629_v2  ;;  %vm637_vm7 = vweird.f32 %v2148_v5 }
 0x1ee   : > { %vm638_vm9 = vmor %vm636_vm8, %vm637_vm7 }
 0x1ef   : > { %v632_v8 = vmul.f32 %v2148_v5, %v631_v6 }
 0x1f1   : > { %v633_v9 = vmul.f32 0.5, %v632_v8 }
 0x1f3   : > { %v634_v11 = vsub.f32 1.5, %v633_v9 }
 0x1f4   : > { %698 = vrot.lane.b32.xlu2 %v696_v4, %s2625_s30 }
 0x1f5   : > { %v635_v12 = vmul.f32 %v2148_v5, %v634_v11 }
 0x1f7   : > { %v639_v13 = vsel %vm638_vm9, %v2148_v5, %v635_v12 }
 0x1f8   : > { %v640_v19 = vmul.f32 %v639_v13, %v628_v16 }
 0x1fa   : > { %v642_v21 = vmul.f32 %v2907_v18, %v640_v19 }
 0x1fc   : > { %832 = vrot.lane.b32.xlu2 %v582_v7, %s2625_s30  ;;  %v644_v22 = vadd.f32 %v2910_v20, %v642_v21 }
 0x1fe   : > { %v1962_v23 = vmul.f32 -1.442695, %v644_v22 }
 0x200   : > { %2149 = vpow2.f32 %v1962_v23 }
 0x206   : > { %v2150_v24 = vpop.eup %2149 }
 0x207   : > { %v648_v25 = vadd.f32 1.0, %v2150_v24  ;;  %v678_v30 = vpop.xlane.xlu1 %677 }
 0x208   : > { %v679_v33 = vmul.f32 %v678_v30, %v2888_v39 }
 0x209   : > { %2151 = vrcp.f32 %v648_v25  ;;  %v660_v40 = vand.u32 2147483648, %v648_v25  ;;  %vm654_vm11 = vweird.f32 %v648_v25  ;;  %v658_v41 = vand.u32 2147483647, %v648_v25 }
 0x20a   : > { %v681_v36 = vsub.f32 %v679_v33, %v680_v34  ;;  %v806_v33 = vperm.slane %v2881_v26, 3  ;;  %v885_v34 = vperm.slane %v2881_v26, 4 }
 0x20b   : > { %v661_v44 = vor.u32 1.1754944e-38, %v660_v40  ;;  %vm659_vm13 = vcmp.eq.f32.partialorder %v658_v41, 8.507059e+37 }
 0x20c   : > { %v682_v38 = vmax.f32 %v681_v36, 0.0 }
 0x20e   : > { %v684_v43 = vadd.f32 1e-05, %v682_v38 }
 0x20f   : > { %v2152_v27 = vpop.eup %2151 }
 0x210   : > { %v650_v29 = vmul.f32 %v2152_v27, %v648_v25  ;;  %vm655_vm10 = vweird.f32 %v2152_v27  ;;  %2153 = vrsqrt.f32 %v684_v43  ;;  %vm691_vm15 = vweird.f32 %v684_v43 }
 0x211   : > { %vm656_vm12 = vmor %vm654_vm11, %vm655_vm10  ;;  %v800_v25 = vperm.slane %v2872_v17, 3 }
 0x212   : > { %v651_v32 = vsub.f32 1.0, %v650_v29 }
 0x214   : > { %v652_v35 = vmul.f32 %v2152_v27, %v651_v32 }
 0x216   : > { %v653_v37 = vadd.f32 %v2152_v27, %v652_v35  ;;  %v2154_v48 = vpop.eup %2153 }
 0x217   : > { %v686_v49 = vmul.f32 %v2154_v48, %v684_v43  ;;  %vm692_vm14 = vweird.f32 %v2154_v48 }
 0x218   : > { %v657_v42 = vsel %vm656_vm12, %v2152_v27, %v653_v37  ;;  %vm693_vm0 = vmor %vm691_vm15, %vm692_vm14 }
 0x219   : > { %v662_v45 = vsel %vm659_vm13, %v661_v44, %v657_v42  ;;  %v687_v50 = vmul.f32 %v2154_v48, %v686_v49 }
 0x21b   : > { %v688_v51 = vmul.f32 0.5, %v687_v50 }
 0x21d   : > { %v689_v52 = vsub.f32 1.5, %v688_v51 }
 0x21f   : > { %v690_v53 = vmul.f32 %v2154_v48, %v689_v52 }
 0x221   : > { %v694_v54 = vsel %vm693_vm0, %v2154_v48, %v690_v53 }
 0x222   : > { %v695_v57 = vmul.f32 %v694_v54, %v683_v55 }
 0x246   : > { %v838_v46 = vpop.permute.xlu2 %837 }
 0x247   : > { %v840_v47 = vmul.f32 %v838_v46, %v662_v45 }
 0x249   : > { %842 = vrot.lane.b32.xlu2 %v840_v47, %s2625_s30 }
 0x24e   : > { %v2920_v56 = vpop.permute.xlu2 %698 }
 0x24f   : > { %v701_v58 = vmul.f32 %v2920_v56, %v695_v57 }
 0x251   : > { %770 = vrot.lane.b32.xlu2 %v2856_v14, %s2625_s30  ;;  %v707_v62 = vadd.f32 %v2923_v59, %v701_v58 }
 0x253   : > { %v1963_v63 = vmul.f32 -1.442695, %v707_v62 }
 0x255   : > { %2155 = vpow2.f32 %v1963_v63 }
 0x256   : > { %v833_v9 = vpop.permute.xlu2 %832 }
 0x25b   : > { %v2156_v0 = vpop.eup %2155 }
 0x25c   : > { %v711_v1 = vadd.f32 1.0, %v2156_v0 }
 0x25e   : > { %2157 = vrcp.f32 %v711_v1  ;;  %v723_v7 = vand.u32 2147483648, %v711_v1  ;;  %vm717_vm4 = vweird.f32 %v711_v1  ;;  %v721_v8 = vand.u32 2147483647, %v711_v1 }
 0x260   : > { %v724_v12 = vor.u32 1.1754944e-38, %v723_v7  ;;  %vm722_vm6 = vcmp.eq.f32.partialorder %v721_v8, 8.507059e+37 }
 0x264   : > { %v2158_v2 = vpop.eup %2157 }
 0x265   : > { %v713_v3 = vmul.f32 %v2158_v2, %v711_v1  ;;  %vm718_vm3 = vweird.f32 %v2158_v2 }
 0x266   : > { %vm719_vm5 = vmor %vm717_vm4, %vm718_vm3 }
 0x267   : > { %v714_v4 = vsub.f32 1.0, %v713_v3 }
 0x269   : > { %v715_v5 = vmul.f32 %v2158_v2, %v714_v4 }
 0x26b   : > { %v716_v6 = vadd.f32 %v2158_v2, %v715_v5 }
 0x26d   : > { %v720_v11 = vsel %vm719_vm5, %v2158_v2, %v716_v6 }
 0x26e   : > { %v725_v13 = vsel %vm722_vm6, %v724_v12, %v720_v11 }
 0x26f   : > { %v835_v16 = vmul.f32 %v833_v9, %v725_v13 }
 0x2a3   : > { %v843_v19 = vpop.permute.xlu2 %842 }
 0x2a4   : > { %v845_v21 = vadd.f32 %v843_v19, %v835_v16 }
 0x2a6   : > { %847 = vrot.lane.b32.xlu1 %v845_v21, %s2622_s24  ;;  %v854_v22 = vmul.f32 %v845_v21, %v845_v21 }
 0x2a8   : > { %856 = vrot.lane.b32.xlu0 %v854_v22, %s2622_s24 }
 0x2ab   : > { %v771_v23 = vpop.permute.xlu2 %770 }
 0x2ac   : > { %v773_v24 = vsel %vm584_vm2, %v771_v23, 0.0 }
 0x2b0   : > { %777 = vrot.lane.b32.xlu0 %v2864_v15, %s2625_s30  ;;  %v879_v15 = vperm.slane %v2872_v17, 4 }
 0x2d0   : > { %774 = vadd.xlane.f32.xlu1 %v773_v24 }
 0x2e9   : > { %802 = vrot.lane.b32.xlu1 %v800_v25, %s2622_s24 }
 0x318   : > { %v848_v31 = vpop.permute.xlu1 %847 }
 0x319   : > { %v850_v32 = vsel %vm584_vm2, %v848_v31, 0.0 }
 0x31a   : > { %v857_v27 = vpop.permute.xlu0 %856 }
 0x31b   : > { %v859_v28 = vsel %vm584_vm2, %v857_v27, 0.0  ;;  %v528_v27 = vld [vmem:[%s2826_s6 + $0x18] sm:$0xff] }
 0x31c   : > { %860 = vadd.xlane.f32.xlu0 %v859_v28  ;;  %1960 = vmatmul.msk.f32.vlgmr.msra.gmra.mxu2 %vm535_vm1, %v528_v27 }
 0x322   : > { %v778_v29 = vpop.permute.xlu0 %777 }
 0x323   : > { %v780_v30 = vsel %vm584_vm2, %v778_v29, 0.0 }
 0x324   : > { %781 = vadd.xlane.f32.xlu2 %v780_v30 }
 0x32c   : > { %851 = vadd.xlane.f32.xlu2 %v850_v32 }
 0x330   : > { %881 = vrot.lane.b32.xlu0 %v879_v15, %s2625_s30 }
 0x338   : > { %808 = vrot.lane.b32.xlu0 %v806_v33, %s2622_s24 }
 0x343   : > { %v775_v47 = vpop.xlane.xlu1 %774 }
 0x344   : > { %887 = vrot.lane.b32.xlu2 %v885_v34, %s2625_s30  ;;  %v776_v49 = vmul.f32 %v775_v47, %v2888_v39 }
 0x346   : > { %v784_v54 = vmul.f32 %v776_v49, %v776_v49  ;;  %v787_v12 = vsub.f32 %v2856_v14, %v776_v49 }
 0x35b   : > { %v2957_v16 = vpop.permute.xlu1 %802 }
 0x38f   : > { %v861_v36 = vpop.xlane.xlu0 %860 }
 0x390   : > { %v862_v40 = vmul.f32 %v861_v36, %v2888_v39 }
 0x397   : > { %v782_v35 = vpop.xlane.xlu2 %781 }
 0x398   : > { %v783_v51 = vmul.f32 %v782_v35, %v2888_v39 }
 0x39a   : > { %v785_v62 = vsub.f32 %v783_v51, %v784_v54 }
 0x39c   : > { %v786_v1 = vmax.f32 %v785_v62, 0.0 }
 0x39e   : > { %v788_v2 = vadd.f32 1e-05, %v786_v1 }
 0x39f   : > { %v852_v37 = vpop.xlane.xlu2 %851 }
 0x3a0   : > { %v853_v38 = vmul.f32 %v852_v37, %v2888_v39  ;;  %vm795_vm11 = vweird.f32 %v788_v2 }
 0x3a2   : > { %v863_v41 = vmul.f32 %v853_v38, %v853_v38  ;;  %v866_v52 = vsub.f32 %v845_v21, %v853_v38  ;;  %v2946_v57 = vpop.permute.xlu0 %881  ;;  %v526_v38 = vld [vmem:[%s2826_s6 + $0x8] sm:$0xff] }
 0x3a3   : > { %1958 = vmatmul.msk.f32.gmra.mxu0 %vm535_vm1, %v526_v38 }
 0x3a4   : > { %v864_v42 = vsub.f32 %v862_v40, %v863_v41  ;;  %v2971_v41 = vpop.f32.mrf.mxu2 }
 0x3a6   : > { %v865_v17 = vmax.f32 %v864_v42, 0.0 }
 0x3a7   : > { %v2948_v58 = vpop.permute.xlu2 %887 }
 0x3a8   : > { %v867_v43 = vadd.f32 1e-05, %v865_v17 }
 0x3aa   : > { %2159 = vrsqrt.f32 %v867_v43  ;;  %vm874_vm8 = vweird.f32 %v867_v43  ;;  %v2960_v21 = vpop.permute.xlu0 %808 }
 0x3b0   : > { %v2160_v44 = vpop.eup %2159 }
 0x3b1   : > { %v869_v45 = vmul.f32 %v2160_v44, %v867_v43  ;;  %vm875_vm7 = vweird.f32 %v2160_v44 }
 0x3b2   : > { %vm876_vm9 = vmor %vm874_vm8, %vm875_vm7 }
 0x3b3   : > { %v870_v46 = vmul.f32 %v2160_v44, %v869_v45 }
 0x3b5   : > { %v871_v48 = vmul.f32 0.5, %v870_v46 }
 0x3b7   : > { %v872_v26 = vsub.f32 1.5, %v871_v48 }
 0x3b9   : > { %v873_v50 = vmul.f32 %v2160_v44, %v872_v26 }
 0x3bb   : > { %v877_v53 = vsel %vm876_vm9, %v2160_v44, %v873_v50 }
 0x3bc   : > { %v878_v55 = vmul.f32 %v877_v53, %v866_v52 }
 0x3be   : > { %v884_v63 = vmul.f32 %v2946_v57, %v878_v55 }
 0x3c0   : > { %v2952_v0 = vadd.f32 %v2948_v58, %v884_v63 }
 0x3c2   : > { %2161 = vtanh.f32 %v2952_v0 }
 0x3c3   : > { %2163 = vrsqrt.f32 %v788_v2 }
 0x3c8   : > { %v2162_v3 = vpop.eup %2161 }
 0x3c9   : > { %893 = vrot.lane.b32.xlu2 %v2162_v3, %s2623_s21  ;;  %v2164_v4 = vpop.eup %2163 }
 0x3ca   : > { %v790_v5 = vmul.f32 %v2164_v4, %v788_v2  ;;  %vm796_vm10 = vweird.f32 %v2164_v4 }
 0x3cb   : > { %vm797_vm12 = vmor %vm795_vm11, %vm796_vm10 }
 0x3cc   : > { %v791_v6 = vmul.f32 %v2164_v4, %v790_v5 }
 0x3ce   : > { %v792_v7 = vmul.f32 0.5, %v791_v6 }
 0x3d0   : > { %v793_v8 = vsub.f32 1.5, %v792_v7 }
 0x3d2   : > { %v794_v9 = vmul.f32 %v2164_v4, %v793_v8 }
 0x3d4   : > { %v798_v11 = vsel %vm797_vm12, %v2164_v4, %v794_v9 }
 0x3d5   : > { %v799_v13 = vmul.f32 %v798_v11, %v787_v12 }
 0x3d7   : > { %v805_v19 = vmul.f32 %v2957_v16, %v799_v13 }
 0x3d9   : > { %v811_v22 = vadd.f32 %v2960_v21, %v805_v19 }
 0x3db   : > { %v1964_v23 = vmul.f32 -1.442695, %v811_v22 }
 0x3dd   : > { %2165 = vpow2.f32 %v1964_v23 }
 0x3e3   : > { %v2166_v24 = vpop.eup %2165 }
 0x3e4   : > { %v815_v25 = vadd.f32 1.0, %v2166_v24 }
 0x3e6   : > { %2167 = vrcp.f32 %v815_v25  ;;  %v827_v32 = vand.u32 2147483648, %v815_v25  ;;  %vm821_vm14 = vweird.f32 %v815_v25  ;;  %v825_v15 = vand.u32 2147483647, %v815_v25 }
 0x3e8   : > { %v828_v34 = vor.u32 1.1754944e-38, %v827_v32  ;;  %vm826_vm0 = vcmp.eq.f32.partialorder %v825_v15, 8.507059e+37 }
 0x3ec   : > { %v2168_v28 = vpop.eup %2167 }
 0x3ed   : > { %v817_v29 = vmul.f32 %v2168_v28, %v815_v25  ;;  %vm822_vm13 = vweird.f32 %v2168_v28 }
 0x3ee   : > { %vm823_vm15 = vmor %vm821_vm14, %vm822_vm13 }
 0x3ef   : > { %v818_v14 = vsub.f32 1.0, %v817_v29 }
 0x3f1   : > { %v819_v30 = vmul.f32 %v2168_v28, %v818_v14 }
 0x3f3   : > { %v820_v31 = vadd.f32 %v2168_v28, %v819_v30 }
 0x3f5   : > { %v824_v33 = vsel %vm823_vm15, %v2168_v28, %v820_v31 }
 0x3f6   : > { %v829_v35 = vsel %vm826_vm0, %v828_v34, %v824_v33 }
 0x420   : > { %v568_v42 = vpop.f32.mrf.mxu0 }
 0x421   : > { %v569_v17 = vadd.f32 %v2853_v10, %v568_v42 }
 0x423   : > { %v894_v36 = vpop.permute.xlu2 %893 }
 0x424   : > { %v896_v37 = vmul.f32 %v894_v36, %v829_v35 }
 0x426   : > { %898 = vrot.lane.b32.xlu0 %v896_v37, %s2625_s30 }
 0x498   : > { %v899_v40 = vpop.permute.xlu0 %898 }
 0x499   : > { %901 = vst.msk [vmem:[%s2844_s4] sm:$0xff] %vm584_vm2, %v899_v40  ;;  %1965 = vmatmul.msk.f32.vlgmr.msrb.gmra.mxu2 %vm584_vm2, %v899_v40 }
 0x51c   : > { %v923_v43 = vpop.f32.mrf.mxu2 }
 0x51d   : > { %v2974_v44 = vadd.f32 %v923_v43, %v569_v17 }
 0x51f   : > { %1026 = vrot.lane.b32.xlu1 %v2974_v44, %s2623_s21  ;;  %v2980_v45 = vmul.f32 %v2974_v44, %v2974_v44  ;;  %v927_v46 = vsel %vm584_vm2, %v2974_v44, 0.0 }
 0x521   : > { %1033 = vrot.lane.b32.xlu2 %v2980_v45, %s2623_s21  ;;  %v932_v48 = vsel %vm584_vm2, %v2980_v45, 0.0 }
 0x529   : > { %974 = vrot.lane.b32.xlu2 %v2974_v44, %s2622_s24 }
 0x552   : > { %928 = vadd.xlane.f32.xlu2 %v927_v46 }
 0x57b   : > { %v1034_v10 = vpop.permute.xlu2 %1033 }
 0x57c   : > { %v1036_v47 = vsel %vm584_vm2, %v1034_v10, 0.0 }
 0x57d   : > { %1037 = vadd.xlane.f32.xlu1 %v1036_v47 }
 0x583   : > { %v975_v26 = vpop.permute.xlu2 %974 }
 0x584   : > { %v977_v49 = vsel %vm584_vm2, %v975_v26, 0.0 }
 0x585   : > { %933 = vadd.xlane.f32.xlu1 %v932_v48 }
 0x58d   : > { %978 = vadd.xlane.f32.xlu1 %v977_v49 }
 0x591   : > { %v1027_v50 = vpop.permute.xlu1 %1026 }
 0x592   : > { %v1029_v51 = vsel %vm584_vm2, %v1027_v50, 0.0 }
 0x593   : > { %1030 = vadd.xlane.f32.xlu0 %v1029_v51 }
 0x5a7   : > { %982 = vrot.lane.b32.xlu0 %v2980_v45, %s2622_s24 }
 0x5c5   : > { %v929_v25 = vpop.xlane.xlu2 %928 }
 0x5c6   : > { %v930_v28 = vmul.f32 %v929_v25, %v2888_v39 }
 0x5c8   : > { %v936_v14 = vmul.f32 %v930_v28, %v930_v28  ;;  %v939_v40 = vsub.f32 %v2974_v44, %v930_v28 }
 0x5f0   : > { %v1038_v52 = vpop.xlane.xlu1 %1037 }
 0x5f1   : > { %v1039_v55 = vmul.f32 %v1038_v52, %v2888_v39 }
 0x5f8   : > { %v934_v27 = vpop.xlane.xlu1 %933 }
 0x5f9   : > { %v935_v29 = vmul.f32 %v934_v27, %v2888_v39 }
 0x5fb   : > { %v937_v30 = vsub.f32 %v935_v29, %v936_v14 }
 0x5fd   : > { %v938_v31 = vmax.f32 %v937_v30, 0.0 }
 0x5ff   : > { %v940_v32 = vadd.f32 1e-05, %v938_v31 }
 0x600   : > { %v979_v51 = vpop.xlane.xlu1 %978 }
 0x601   : > { %vm947_vm7 = vweird.f32 %v940_v32 }
 0x606   : > { %v1031_v53 = vpop.xlane.xlu0 %1030 }
 0x607   : > { %v1032_v54 = vmul.f32 %v1031_v53, %v2888_v39 }
 0x609   : > { %v1040_v62 = vmul.f32 %v1032_v54, %v1032_v54  ;;  %v1043_v12 = vsub.f32 %v2974_v44, %v1032_v54 }
 0x60b   : > { %v1041_v63 = vsub.f32 %v1039_v55, %v1040_v62 }
 0x60d   : > { %v1042_v1 = vmax.f32 %v1041_v63, 0.0 }
 0x60f   : > { %v1044_v2 = vadd.f32 1e-05, %v1042_v1 }
 0x611   : > { %2169 = vrsqrt.f32 %v1044_v2  ;;  %vm1051_vm4 = vweird.f32 %v1044_v2 }
 0x617   : > { %v2170_v3 = vpop.eup %2169 }
 0x618   : > { %v1046_v4 = vmul.f32 %v2170_v3, %v1044_v2  ;;  %vm1052_vm3 = vweird.f32 %v2170_v3 }
 0x619   : > { %v983_v5 = vpop.permute.xlu0 %982  ;;  %vm1053_vm5 = vmor %vm1051_vm4, %vm1052_vm3 }
 0x61a   : > { %v1047_v6 = vmul.f32 %v2170_v3, %v1046_v4  ;;  %v985_v7 = vsel %vm584_vm2, %v983_v5, 0.0  ;;  %v980_v4 = vmul.f32 %v979_v51, %v2888_v39 }
 0x61b   : > { %986 = vadd.xlane.f32.xlu2 %v985_v7 }
 0x61c   : > { %v1048_v8 = vmul.f32 0.5, %v1047_v6  ;;  %v989_v6 = vmul.f32 %v980_v4, %v980_v4  ;;  %v992_v25 = vsub.f32 %v2974_v44, %v980_v4 }
 0x61e   : > { %v1049_v9 = vsub.f32 1.5, %v1048_v8 }
 0x620   : > { %v1050_v11 = vmul.f32 %v2170_v3, %v1049_v9 }
 0x622   : > { %v1054_v13 = vsel %vm1053_vm5, %v2170_v3, %v1050_v11 }
 0x623   : > { %v1055_v19 = vmul.f32 %v1054_v13, %v1043_v12 }
 0x625   : > { %v1056_v22 = vmul.f32 %v1055_v19, %v2895_v60 }
 0x627   : > { %v1057_v23 = vadd.f32 %v1056_v22, %v2897_v61 }
 0x629   : > { %2171 = vtanh.f32 %v1057_v23 }
 0x62a   : > { %2173 = vrsqrt.f32 %v940_v32 }
 0x62f   : > { %v2172_v24 = vpop.eup %2171 }
 0x630   : > { %1112 = vrot.lane.b32.xlu1 %v2172_v24, %s2623_s21  ;;  %v2174_v15 = vpop.eup %2173 }
 0x631   : > { %v942_v33 = vmul.f32 %v2174_v15, %v940_v32  ;;  %vm948_vm6 = vweird.f32 %v2174_v15 }
 0x632   : > { %vm949_vm8 = vmor %vm947_vm7, %vm948_vm6 }
 0x633   : > { %v943_v34 = vmul.f32 %v2174_v15, %v942_v33 }
 0x635   : > { %v944_v35 = vmul.f32 0.5, %v943_v34 }
 0x637   : > { %v945_v36 = vsub.f32 1.5, %v944_v35 }
 0x639   : > { %v946_v37 = vmul.f32 %v2174_v15, %v945_v36 }
 0x63b   : > { %v950_v38 = vsel %vm949_vm8, %v2174_v15, %v946_v37 }
 0x63c   : > { %v951_v42 = vmul.f32 %v950_v38, %v939_v40 }
 0x63e   : > { %v952_v17 = vmul.f32 %v951_v42, %v2907_v18 }
 0x640   : > { %v953_v43 = vadd.f32 %v952_v17, %v2910_v20 }
 0x642   : > { %v1966_v46 = vmul.f32 -1.442695, %v953_v43 }
 0x644   : > { %2175 = vpow2.f32 %v1966_v46 }
 0x64a   : > { %v2176_v10 = vpop.eup %2175 }
 0x64b   : > { %v957_v47 = vadd.f32 1.0, %v2176_v10 }
 0x64d   : > { %2177 = vrcp.f32 %v957_v47  ;;  %v969_v53 = vand.u32 2147483648, %v957_v47  ;;  %vm963_vm10 = vweird.f32 %v957_v47  ;;  %v967_v54 = vand.u32 2147483647, %v957_v47 }
 0x64f   : > { %v970_v62 = vor.u32 1.1754944e-38, %v969_v53  ;;  %vm968_vm12 = vcmp.eq.f32.partialorder %v967_v54, 8.507059e+37 }
 0x653   : > { %v2178_v48 = vpop.eup %2177 }
 0x654   : > { %v959_v26 = vmul.f32 %v2178_v48, %v957_v47  ;;  %vm964_vm9 = vweird.f32 %v2178_v48 }
 0x655   : > { %vm965_vm11 = vmor %vm963_vm10, %vm964_vm9 }
 0x656   : > { %v960_v49 = vsub.f32 1.0, %v959_v26 }
 0x658   : > { %v961_v50 = vmul.f32 %v2178_v48, %v960_v49 }
 0x65a   : > { %v962_v52 = vadd.f32 %v2178_v48, %v961_v50 }
 0x65c   : > { %v966_v55 = vsel %vm965_vm11, %v2178_v48, %v962_v52 }
 0x65d   : > { %v971_v1 = vsel %vm968_vm12, %v970_v62, %v966_v55 }
 0x68e   : > { %v987_v3 = vpop.xlane.xlu2 %986 }
 0x68f   : > { %v988_v5 = vmul.f32 %v987_v3, %v2888_v39 }
 0x691   : > { %v990_v7 = vsub.f32 %v988_v5, %v989_v6 }
 0x693   : > { %v991_v8 = vmax.f32 %v990_v7, 0.0 }
 0x695   : > { %v993_v9 = vadd.f32 1e-05, %v991_v8 }
 0x697   : > { %2179 = vrsqrt.f32 %v993_v9  ;;  %vm1000_vm14 = vweird.f32 %v993_v9 }
 0x69d   : > { %v2180_v11 = vpop.eup %2179 }
 0x69e   : > { %v995_v12 = vmul.f32 %v2180_v11, %v993_v9  ;;  %vm1001_vm13 = vweird.f32 %v2180_v11 }
 0x69f   : > { %vm1002_vm15 = vmor %vm1000_vm14, %vm1001_vm13 }
 0x6a0   : > { %v996_v13 = vmul.f32 %v2180_v11, %v995_v12 }
 0x6a2   : > { %v1113_v63 = vpop.permute.xlu1 %1112  ;;  %v997_v19 = vmul.f32 0.5, %v996_v13 }
 0x6a3   : > { %v1115_v2 = vmul.f32 %v1113_v63, %v971_v1 }
 0x6a4   : > { %v998_v22 = vsub.f32 1.5, %v997_v19 }
 0x6a5   : > { %1117 = vrot.lane.b32.xlu0 %v1115_v2, %s2625_s30 }
 0x6a6   : > { %v999_v23 = vmul.f32 %v2180_v11, %v998_v22 }
 0x6a8   : > { %v1003_v24 = vsel %vm1002_vm15, %v2180_v11, %v999_v23 }
 0x6a9   : > { %v1004_v27 = vmul.f32 %v1003_v24, %v992_v25 }
 0x6ab   : > { %v1005_v28 = vmul.f32 %v1004_v27, %v2920_v56 }
 0x6ad   : > { %v1006_v29 = vadd.f32 %v1005_v28, %v2923_v59 }
 0x6af   : > { %v1967_v14 = vmul.f32 -1.442695, %v1006_v29 }
 0x6b1   : > { %2181 = vpow2.f32 %v1967_v14 }
 0x6b7   : > { %v2182_v30 = vpop.eup %2181 }
 0x6b8   : > { %v1010_v31 = vadd.f32 1.0, %v2182_v30 }
 0x6ba   : > { %2183 = vrcp.f32 %v1010_v31  ;;  %v1022_v36 = vand.u32 2147483648, %v1010_v31  ;;  %vm1016_vm3 = vweird.f32 %v1010_v31  ;;  %v1020_v37 = vand.u32 2147483647, %v1010_v31 }
 0x6bc   : > { %v1023_v40 = vor.u32 1.1754944e-38, %v1022_v36  ;;  %vm1021_vm5 = vcmp.eq.f32.partialorder %v1020_v37, 8.507059e+37 }
 0x6c0   : > { %v2184_v32 = vpop.eup %2183 }
 0x6c1   : > { %v1012_v15 = vmul.f32 %v2184_v32, %v1010_v31  ;;  %vm1017_vm0 = vweird.f32 %v2184_v32 }
 0x6c2   : > { %vm1018_vm4 = vmor %vm1016_vm3, %vm1017_vm0 }
 0x6c3   : > { %v1013_v33 = vsub.f32 1.0, %v1012_v15 }
 0x6c5   : > { %v1014_v34 = vmul.f32 %v2184_v32, %v1013_v33 }
 0x6c7   : > { %v1015_v35 = vadd.f32 %v2184_v32, %v1014_v34 }
 0x6c9   : > { %v1019_v38 = vsel %vm1018_vm4, %v2184_v32, %v1015_v35 }
 0x6ca   : > { %v1024_v42 = vsel %vm1021_vm5, %v1023_v40, %v1019_v38 }
 0x6cb   : > { %v1110_v17 = vmul.f32 %v1024_v42, %v2952_v0 }
 0x717   : > { %v1118_v43 = vpop.permute.xlu0 %1117 }
 0x718   : > { %v1120_v46 = vadd.f32 %v1118_v43, %v1110_v17 }
 0x71a   : > { %1122 = vrot.lane.b32.xlu2 %v1120_v46, %s2622_s24  ;;  %v1129_v10 = vmul.f32 %v1120_v46, %v1120_v46 }
 0x71c   : > { %1131 = vrot.lane.b32.xlu0 %v1129_v10, %s2622_s24 }
 0x724   : > { %1059 = vrot.lane.b32.xlu0 %v2974_v44, %s2625_s30 }
 0x72c   : > { %1066 = vrot.lane.b32.xlu0 %v2980_v45, %s2625_s30 }
 0x774   : > { %v1123_v47 = vpop.permute.xlu2 %1122 }
 0x775   : > { %v1125_v48 = vsel %vm584_vm2, %v1123_v47, 0.0 }
 0x776   : > { %1126 = vadd.xlane.f32.xlu1 %v1125_v48 }
 0x78e   : > { %v1132_v26 = vpop.permute.xlu0 %1131 }
 0x78f   : > { %v1134_v0 = vsel %vm584_vm2, %v1132_v26, 0.0 }
 0x790   : > { %1135 = vadd.xlane.f32.xlu2 %v1134_v0 }
 0x796   : > { %v1060_v49 = vpop.permute.xlu0 %1059 }
 0x797   : > { %v1062_v50 = vsel %vm584_vm2, %v1060_v49, 0.0 }
 0x798   : > { %1063 = vadd.xlane.f32.xlu0 %v1062_v50 }
 0x79e   : > { %v1067_v51 = vpop.permute.xlu0 %1066 }
 0x79f   : > { %v1069_v52 = vsel %vm584_vm2, %v1067_v51, 0.0 }
 0x7a0   : > { %1070 = vadd.xlane.f32.xlu1 %v1069_v52 }
 0x7e9   : > { %v1127_v53 = vpop.xlane.xlu1 %1126 }
 0x7ea   : > { %v1128_v54 = vmul.f32 %v1127_v53, %v2888_v39 }
 0x7ec   : > { %v1138_v55 = vmul.f32 %v1128_v54, %v1128_v54  ;;  %v1141_v13 = vsub.f32 %v1120_v46, %v1128_v54 }
 0x803   : > { %v1136_v45 = vpop.xlane.xlu2 %1135 }
 0x804   : > { %v1137_v62 = vmul.f32 %v1136_v45, %v2888_v39  ;;  %v527_v45 = vld [vmem:[%s2826_s6 + $0x10] sm:$0xff] }
 0x805   : > { %1959 = vmatmul.msk.f32.gmra.mxu0 %vm535_vm1, %v527_v45 }
 0x806   : > { %v1139_v63 = vsub.f32 %v1137_v62, %v1138_v55 }
 0x808   : > { %v1140_v1 = vmax.f32 %v1139_v63, 0.0  ;;  %v3050_v63 = vld [vmem:[%s3241_s5] ss:$0 sm:$0xff] }
 0x80a   : > { %v1142_v2 = vadd.f32 1e-05, %v1140_v1 }
 0x80b   : > { %v1064_v7 = vpop.xlane.xlu0 %1063 }
 0x80c   : > { %2185 = vrsqrt.f32 %v1142_v2  ;;  %v1065_v11 = vmul.f32 %v1064_v7, %v2888_v39  ;;  %vm1149_vm7 = vweird.f32 %v1142_v2 }
 0x80e   : > { %v1073_v24 = vmul.f32 %v1065_v11, %v1065_v11  ;;  %v1076_v37 = vsub.f32 %v2974_v44, %v1065_v11 }
 0x812   : > { %v2186_v3 = vpop.eup %2185 }
 0x813   : > { %v1144_v4 = vmul.f32 %v2186_v3, %v1142_v2  ;;  %vm1150_vm6 = vweird.f32 %v2186_v3  ;;  %v1071_v9 = vpop.xlane.xlu1 %1070 }
 0x814   : > { %vm1151_vm8 = vmor %vm1149_vm7, %vm1150_vm6  ;;  %v1072_v19 = vmul.f32 %v1071_v9, %v2888_v39 }
 0x815   : > { %v1145_v5 = vmul.f32 %v2186_v3, %v1144_v4 }
 0x816   : > { %v1074_v27 = vsub.f32 %v1072_v19, %v1073_v24 }
 0x817   : > { %v1146_v6 = vmul.f32 0.5, %v1145_v5 }
 0x818   : > { %v1075_v29 = vmax.f32 %v1074_v27, 0.0 }
 0x819   : > { %v1147_v8 = vsub.f32 1.5, %v1146_v6 }
 0x81a   : > { %v1077_v14 = vadd.f32 1e-05, %v1075_v29 }
 0x81b   : > { %v1148_v12 = vmul.f32 %v2186_v3, %v1147_v8 }
 0x81c   : > { %vm1084_vm10 = vweird.f32 %v1077_v14 }
 0x81d   : > { %v1152_v22 = vsel %vm1151_vm8, %v2186_v3, %v1148_v12 }
 0x81e   : > { %v1153_v23 = vmul.f32 %v1152_v22, %v1141_v13 }
 0x820   : > { %v1154_v25 = vmul.f32 %v1153_v23, %v2946_v57 }
 0x822   : > { %v3030_v28 = vadd.f32 %v1154_v25, %v2948_v58 }
 0x824   : > { %2187 = vtanh.f32 %v3030_v28 }
 0x825   : > { %2189 = vrsqrt.f32 %v1077_v14 }
 0x82a   : > { %v2188_v30 = vpop.eup %2187 }
 0x82b   : > { %1158 = vrot.lane.b32.xlu2 %v2188_v30, %s2623_s21  ;;  %v2190_v31 = vpop.eup %2189 }
 0x82c   : > { %v1079_v32 = vmul.f32 %v2190_v31, %v1077_v14  ;;  %vm1085_vm9 = vweird.f32 %v2190_v31 }
 0x82d   : > { %vm1086_vm11 = vmor %vm1084_vm10, %vm1085_vm9 }
 0x82e   : > { %v1080_v15 = vmul.f32 %v2190_v31, %v1079_v32 }
 0x830   : > { %v1081_v33 = vmul.f32 0.5, %v1080_v15 }
 0x832   : > { %v1082_v34 = vsub.f32 1.5, %v1081_v33 }
 0x834   : > { %v1083_v35 = vmul.f32 %v2190_v31, %v1082_v34 }
 0x836   : > { %v1087_v36 = vsel %vm1086_vm11, %v2190_v31, %v1083_v35 }
 0x837   : > { %v1088_v38 = vmul.f32 %v1087_v36, %v1076_v37 }
 0x839   : > { %v1089_v40 = vmul.f32 %v1088_v38, %v2957_v16 }
 0x83b   : > { %v1090_v42 = vadd.f32 %v1089_v40, %v2960_v21 }
 0x83d   : > { %v1968_v17 = vmul.f32 -1.442695, %v1090_v42 }
 0x83f   : > { %2191 = vpow2.f32 %v1968_v17 }
 0x845   : > { %v2192_v43 = vpop.eup %2191 }
 0x846   : > { %v1094_v46 = vadd.f32 1.0, %v2192_v43 }
 0x848   : > { %2193 = vrcp.f32 %v1094_v46  ;;  %v1106_v49 = vand.u32 2147483648, %v1094_v46  ;;  %vm1100_vm13 = vweird.f32 %v1094_v46  ;;  %v1104_v44 = vand.u32 2147483647, %v1094_v46 }
 0x84a   : > { %v1107_v51 = vor.u32 1.1754944e-38, %v1106_v49  ;;  %vm1105_vm15 = vcmp.eq.f32.partialorder %v1104_v44, 8.507059e+37 }
 0x84e   : > { %v2194_v10 = vpop.eup %2193 }
 0x84f   : > { %v1096_v47 = vmul.f32 %v2194_v10, %v1094_v46  ;;  %vm1101_vm12 = vweird.f32 %v2194_v10 }
 0x850   : > { %vm1102_vm14 = vmor %vm1100_vm13, %vm1101_vm12 }
 0x851   : > { %v1097_v48 = vsub.f32 1.0, %v1096_v47 }
 0x853   : > { %v1098_v26 = vmul.f32 %v2194_v10, %v1097_v48 }
 0x855   : > { %v1099_v0 = vadd.f32 %v2194_v10, %v1098_v26 }
 0x857   : > { %v1103_v50 = vsel %vm1102_vm14, %v2194_v10, %v1099_v0 }
 0x858   : > { %v1108_v53 = vsel %vm1105_vm15, %v1107_v51, %v1103_v50 }
 0x882   : > { %v571_v62 = vpop.f32.mrf.mxu0 }
 0x883   : > { %v572_v1 = vadd.f32 %v3050_v63, %v571_v62 }
 0x885   : > { %v1159_v52 = vpop.permute.xlu2 %1158 }
 0x886   : > { %v1161_v54 = vmul.f32 %v1159_v52, %v1108_v53 }
 0x888   : > { %1163 = vrot.lane.b32.xlu0 %v1161_v54, %s2625_s30 }
 0x8fa   : > { %v3040_v55 = vpop.permute.xlu0 %1163 }
 0x8fb   : > { %1969 = vst.msk [vmem:[%s2844_s4 + $0x8] sm:$0xff] %vm584_vm2, %v3040_v55  ;;  %1970 = vmatmul.msk.f32.vlgmr.msra.gmra.mxu3 %vm584_vm2, %v3040_v55 }
 0x97e   : > { %v1189_v2 = vpop.f32.mrf.mxu3 }
 0x97f   : > { %v3053_v3 = vadd.f32 %v1189_v2, %v572_v1 }
 0x981   : > { %1292 = vrot.lane.b32.xlu1 %v3053_v3, %s2623_s21  ;;  %v1197_v4 = vmul.f32 %v3053_v3, %v3053_v3  ;;  %v1193_v5 = vsel %vm584_vm2, %v3053_v3, 0.0 }
 0x983   : > { %1299 = vrot.lane.b32.xlu2 %v1197_v4, %s2623_s21  ;;  %v1198_v8 = vsel %vm584_vm2, %v1197_v4, 0.0 }
 0x989   : > { %1240 = vrot.lane.b32.xlu1 %v3053_v3, %s2622_s24 }
 0x9b3   : > { %1194 = vadd.xlane.f32.xlu1 %v1193_v5 }
 0x9dd   : > { %v1300_v6 = vpop.permute.xlu2 %1299 }
 0x9de   : > { %v1302_v7 = vsel %vm584_vm2, %v1300_v6, 0.0 }
 0x9df   : > { %1303 = vadd.xlane.f32.xlu2 %v1302_v7 }
 0x9e7   : > { %1199 = vadd.xlane.f32.xlu2 %v1198_v8 }
 0x9f3   : > { %v1293_v9 = vpop.permute.xlu1 %1292 }
 0x9f4   : > { %v1295_v11 = vsel %vm584_vm2, %v1293_v9, 0.0 }
 0x9f5   : > { %1296 = vadd.xlane.f32.xlu0 %v1295_v11 }
 0x9fb   : > { %v1241_v12 = vpop.permute.xlu1 %1240 }
 0x9fc   : > { %v1243_v13 = vsel %vm584_vm2, %v1241_v12, 0.0 }
 0x9fd   : > { %1244 = vadd.xlane.f32.xlu2 %v1243_v13 }
 0xa09   : > { %1248 = vrot.lane.b32.xlu0 %v1197_v4, %s2622_s24 }
 0xa26   : > { %v1195_v34 = vpop.xlane.xlu1 %1194 }
 0xa27   : > { %v1196_v38 = vmul.f32 %v1195_v34, %v2888_v39 }
 0xa29   : > { %v1202_v46 = vmul.f32 %v1196_v38, %v1196_v38  ;;  %v1205_v1 = vsub.f32 %v3053_v3, %v1196_v38 }
 0xa52   : > { %v1304_v19 = vpop.xlane.xlu2 %1303 }
 0xa53   : > { %v1305_v24 = vmul.f32 %v1304_v19, %v2888_v39 }
 0xa5a   : > { %v1200_v36 = vpop.xlane.xlu2 %1199 }
 0xa5b   : > { %v1201_v42 = vmul.f32 %v1200_v36, %v2888_v39 }
 0xa5d   : > { %v1203_v47 = vsub.f32 %v1201_v42, %v1202_v46 }
 0xa5f   : > { %v1204_v0 = vmax.f32 %v1203_v47, 0.0 }
 0xa61   : > { %v1206_v49 = vadd.f32 1e-05, %v1204_v0 }
 0xa63   : > { %vm1213_vm5 = vweird.f32 %v1206_v49 }
 0xa68   : > { %v1297_v22 = vpop.xlane.xlu0 %1296 }
 0xa69   : > { %v1298_v23 = vmul.f32 %v1297_v22, %v2888_v39 }
 0xa6b   : > { %v1306_v25 = vmul.f32 %v1298_v23, %v1298_v23  ;;  %v1309_v17 = vsub.f32 %v3053_v3, %v1298_v23 }
 0xa6d   : > { %v1307_v27 = vsub.f32 %v1305_v24, %v1306_v25 }
 0xa6f   : > { %v1308_v29 = vmax.f32 %v1307_v27, 0.0 }
 0xa70   : > { %v1245_v19 = vpop.xlane.xlu2 %1244 }
 0xa71   : > { %v1310_v14 = vadd.f32 1e-05, %v1308_v29 }
 0xa73   : > { %2195 = vrsqrt.f32 %v1310_v14  ;;  %vm1317_vm0 = vweird.f32 %v1310_v14 }
 0xa79   : > { %v2196_v30 = vpop.eup %2195 }
 0xa7a   : > { %v1312_v31 = vmul.f32 %v2196_v30, %v1310_v14  ;;  %vm1318_vm1 = vweird.f32 %v2196_v30 }
 0xa7b   : > { %v1249_v32 = vpop.permute.xlu0 %1248  ;;  %vm1319_vm3 = vmor %vm1317_vm0, %vm1318_vm1 }
 0xa7c   : > { %v1313_v15 = vmul.f32 %v2196_v30, %v1312_v31  ;;  %v1251_v33 = vsel %vm584_vm2, %v1249_v32, 0.0  ;;  %v1246_v32 = vmul.f32 %v1245_v19, %v2888_v39 }
 0xa7d   : > { %1252 = vadd.xlane.f32.xlu1 %v1251_v33 }
 0xa7e   : > { %v1314_v35 = vmul.f32 0.5, %v1313_v15  ;;  %v1255_v33 = vmul.f32 %v1246_v32, %v1246_v32 }
 0xa80   : > { %v1315_v37 = vsub.f32 1.5, %v1314_v35 }
 0xa82   : > { %v1316_v40 = vmul.f32 %v2196_v30, %v1315_v37 }
 0xa84   : > { %v1320_v43 = vsel %vm1319_vm3, %v2196_v30, %v1316_v40 }
 0xa85   : > { %v1321_v10 = vmul.f32 %v1320_v43, %v1309_v17 }
 0xa87   : > { %v1322_v48 = vmul.f32 %v1321_v10, %v2895_v60  ;;  %v1258_v10 = vsub.f32 %v3053_v3, %v1246_v32 }
 0xa89   : > { %v1323_v26 = vadd.f32 %v1322_v48, %v2897_v61 }
 0xa8b   : > { %2197 = vtanh.f32 %v1323_v26 }
 0xa8c   : > { %2199 = vrsqrt.f32 %v1206_v49 }
 0xa91   : > { %v2198_v44 = vpop.eup %2197 }
 0xa92   : > { %1378 = vrot.lane.b32.xlu2 %v2198_v44, %s2623_s21  ;;  %v2200_v50 = vpop.eup %2199 }
 0xa93   : > { %v1208_v51 = vmul.f32 %v2200_v50, %v1206_v49  ;;  %vm1214_vm4 = vweird.f32 %v2200_v50 }
 0xa94   : > { %vm1215_vm6 = vmor %vm1213_vm5, %vm1214_vm4 }
 0xa95   : > { %v1209_v52 = vmul.f32 %v2200_v50, %v1208_v51 }
 0xa97   : > { %v1210_v53 = vmul.f32 0.5, %v1209_v52 }
 0xa99   : > { %v1211_v54 = vsub.f32 1.5, %v1210_v53 }
 0xa9a   : > { %1332 = vrot.lane.b32.xlu2 %v1197_v4, %s2625_s30 }
 0xa9b   : > { %v1212_v45 = vmul.f32 %v2200_v50, %v1211_v54 }
 0xa9d   : > { %v1216_v62 = vsel %vm1215_vm6, %v2200_v50, %v1212_v45 }
 0xa9e   : > { %v1217_v2 = vmul.f32 %v1216_v62, %v1205_v1 }
 0xaa0   : > { %v1218_v5 = vmul.f32 %v1217_v2, %v2907_v18 }
 0xaa2   : > { %v1219_v6 = vadd.f32 %v1218_v5, %v2910_v20 }
 0xaa4   : > { %v1971_v7 = vmul.f32 -1.442695, %v1219_v6 }
 0xaa6   : > { %2201 = vpow2.f32 %v1971_v7 }
 0xaac   : > { %v2202_v8 = vpop.eup %2201 }
 0xaad   : > { %v1223_v4 = vadd.f32 1.0, %v2202_v8 }
 0xaaf   : > { %2203 = vrcp.f32 %v1223_v4  ;;  %v1235_v23 = vand.u32 2147483648, %v1223_v4  ;;  %vm1229_vm8 = vweird.f32 %v1223_v4  ;;  %v1233_v24 = vand.u32 2147483647, %v1223_v4 }
 0xab1   : > { %v1236_v27 = vor.u32 1.1754944e-38, %v1235_v23  ;;  %vm1234_vm10 = vcmp.eq.f32.partialorder %v1233_v24, 8.507059e+37 }
 0xab5   : > { %v2204_v9 = vpop.eup %2203 }
 0xab6   : > { %v1225_v11 = vmul.f32 %v2204_v9, %v1223_v4  ;;  %vm1230_vm7 = vweird.f32 %v2204_v9 }
 0xab7   : > { %vm1231_vm9 = vmor %vm1229_vm8, %vm1230_vm7 }
 0xab8   : > { %v1226_v12 = vsub.f32 1.0, %v1225_v11 }
 0xaba   : > { %v1227_v13 = vmul.f32 %v2204_v9, %v1226_v12 }
 0xabc   : > { %v1228_v22 = vadd.f32 %v2204_v9, %v1227_v13 }
 0xabe   : > { %v1232_v25 = vsel %vm1231_vm9, %v2204_v9, %v1228_v22 }
 0xabf   : > { %v1237_v14 = vsel %vm1234_vm10, %v1236_v27, %v1232_v25 }
 0xaec   : > { %v1379_v29 = vpop.permute.xlu2 %1378 }
 0xaed   : > { %v1381_v30 = vmul.f32 %v1379_v29, %v1237_v14 }
 0xaef   : > { %1383 = vrot.lane.b32.xlu0 %v1381_v30, %s2625_s30 }
 0xaf0   : > { %v1253_v31 = vpop.xlane.xlu1 %1252 }
 0xaf1   : > { %v1254_v15 = vmul.f32 %v1253_v31, %v2888_v39 }
 0xaf3   : > { %v1256_v34 = vsub.f32 %v1254_v15, %v1255_v33 }
 0xaf4   : > { %v1333_v19 = vpop.permute.xlu2 %1332 }
 0xaf5   : > { %v1257_v35 = vmax.f32 %v1256_v34, 0.0  ;;  %v1335_v22 = vsel %vm584_vm2, %v1333_v19, 0.0 }
 0xaf7   : > { %v1259_v36 = vadd.f32 1e-05, %v1257_v35 }
 0xaf9   : > { %2205 = vrsqrt.f32 %v1259_v36  ;;  %vm1266_vm12 = vweird.f32 %v1259_v36 }
 0xaff   : > { %v2206_v37 = vpop.eup %2205 }
 0xb00   : > { %v1261_v38 = vmul.f32 %v2206_v37, %v1259_v36  ;;  %vm1267_vm11 = vweird.f32 %v2206_v37 }
 0xb01   : > { %vm1268_vm13 = vmor %vm1266_vm12, %vm1267_vm11 }
 0xb02   : > { %v1262_v40 = vmul.f32 %v2206_v37, %v1261_v38 }
 0xb04   : > { %v1263_v42 = vmul.f32 0.5, %v1262_v40 }
 0xb06   : > { %v1264_v17 = vsub.f32 1.5, %v1263_v42 }
 0xb08   : > { %v1265_v43 = vmul.f32 %v2206_v37, %v1264_v17 }
 0xb0a   : > { %v1269_v46 = vsel %vm1268_vm13, %v2206_v37, %v1265_v43 }
 0xb0b   : > { %v1270_v47 = vmul.f32 %v1269_v46, %v1258_v10 }
 0xb0d   : > { %v1271_v48 = vmul.f32 %v1270_v47, %v2920_v56 }
 0xb0f   : > { %v1272_v26 = vadd.f32 %v1271_v48, %v2923_v59 }
 0xb11   : > { %v1972_v0 = vmul.f32 -1.442695, %v1272_v26 }
 0xb13   : > { %2207 = vpow2.f32 %v1972_v0 }
 0xb19   : > { %v2208_v49 = vpop.eup %2207 }
 0xb1a   : > { %v1276_v44 = vadd.f32 1.0, %v2208_v49 }
 0xb1c   : > { %2209 = vrcp.f32 %v1276_v44  ;;  %v1288_v45 = vand.u32 2147483648, %v1276_v44  ;;  %vm1282_vm15 = vweird.f32 %v1276_v44  ;;  %v1286_v62 = vand.u32 2147483647, %v1276_v44 }
 0xb1e   : > { %v1289_v2 = vor.u32 1.1754944e-38, %v1288_v45  ;;  %vm1287_vm0 = vcmp.eq.f32.partialorder %v1286_v62, 8.507059e+37 }
 0xb22   : > { %v2210_v50 = vpop.eup %2209 }
 0xb23   : > { %v1278_v51 = vmul.f32 %v2210_v50, %v1276_v44  ;;  %vm1283_vm14 = vweird.f32 %v2210_v50 }
 0xb24   : > { %vm1284_vm1 = vmor %vm1282_vm15, %vm1283_vm14 }
 0xb25   : > { %v1279_v52 = vsub.f32 1.0, %v1278_v51 }
 0xb27   : > { %v1280_v53 = vmul.f32 %v2210_v50, %v1279_v52 }
 0xb29   : > { %v1281_v54 = vadd.f32 %v2210_v50, %v1280_v53 }
 0xb2b   : > { %v1285_v1 = vsel %vm1284_vm1, %v2210_v50, %v1281_v54 }
 0xb2c   : > { %v1290_v5 = vsel %vm1287_vm0, %v1289_v2, %v1285_v1 }
 0xb2d   : > { %v1376_v6 = vmul.f32 %v1290_v5, %v3030_v28 }
 0xb61   : > { %v1384_v7 = vpop.permute.xlu0 %1383 }
 0xb62   : > { %v1386_v8 = vadd.f32 %v1384_v7, %v1376_v6 }
 0xb64   : > { %1388 = vrot.lane.b32.xlu1 %v1386_v8, %s2622_s24  ;;  %v1395_v4 = vmul.f32 %v1386_v8, %v1386_v8 }
 0xb66   : > { %1397 = vrot.lane.b32.xlu0 %v1395_v4, %s2622_s24 }
 0xb6e   : > { %1325 = vrot.lane.b32.xlu0 %v3053_v3, %s2625_s30 }
 0xbd6   : > { %v1389_v9 = vpop.permute.xlu1 %1388 }
 0xbd7   : > { %v1391_v11 = vsel %vm584_vm2, %v1389_v9, 0.0 }
 0xbd8   : > { %1392 = vadd.xlane.f32.xlu0 %v1391_v11  ;;  %v1398_v12 = vpop.permute.xlu0 %1397 }
 0xbd9   : > { %v1400_v13 = vsel %vm584_vm2, %v1398_v12, 0.0 }
 0xbda   : > { %1401 = vadd.xlane.f32.xlu1 %v1400_v13 }
 0xbe0   : > { %1336 = vadd.xlane.f32.xlu0 %v1335_v22  ;;  %v1326_v23 = vpop.permute.xlu0 %1325 }
 0xbe1   : > { %v1328_v24 = vsel %vm584_vm2, %v1326_v23, 0.0 }
 0xbe2   : > { %1329 = vadd.xlane.f32.xlu2 %v1328_v24 }
 0xc4b   : > { %v1393_v25 = vpop.xlane.xlu0 %1392 }
 0xc4c   : > { %v1394_v27 = vmul.f32 %v1393_v25, %v2888_v39 }
 0xc4d   : > { %v1402_v29 = vpop.xlane.xlu1 %1401 }
 0xc4e   : > { %v1404_v14 = vmul.f32 %v1394_v27, %v1394_v27  ;;  %v1403_v30 = vmul.f32 %v1402_v29, %v2888_v39  ;;  %v1407_v40 = vsub.f32 %v1386_v8, %v1394_v27 }
 0xc50   : > { %v1405_v31 = vsub.f32 %v1403_v30, %v1404_v14 }
 0xc52   : > { %v1406_v32 = vmax.f32 %v1405_v31, 0.0 }
 0xc53   : > { %v1337_v26 = vpop.xlane.xlu0 %1336 }
 0xc54   : > { %v1408_v15 = vadd.f32 1e-05, %v1406_v32  ;;  %v1338_v49 = vmul.f32 %v1337_v26, %v2888_v39  ;;  %v575_v32 = vadd.f32 %v3050_v63, %v2971_v41 }
 0xc55   : > { %v1330_v47 = vpop.xlane.xlu2 %1329 }
 0xc56   : > { %2211 = vrsqrt.f32 %v1408_v15  ;;  %vm1415_vm4 = vweird.f32 %v1408_v15  ;;  %v1331_v48 = vmul.f32 %v1330_v47, %v2888_v39 }
 0xc58   : > { %v1339_v0 = vmul.f32 %v1331_v48, %v1331_v48  ;;  %v1342_v5 = vsub.f32 %v3053_v3, %v1331_v48 }
 0xc5a   : > { %v1340_v44 = vsub.f32 %v1338_v49, %v1339_v0 }
 0xc5c   : > { %v2212_v33 = vpop.eup %2211  ;;  %v1341_v50 = vmax.f32 %v1340_v44, 0.0 }
 0xc5d   : > { %v1410_v34 = vmul.f32 %v2212_v33, %v1408_v15  ;;  %vm1416_vm3 = vweird.f32 %v2212_v33 }
 0xc5e   : > { %vm1417_vm5 = vmor %vm1415_vm4, %vm1416_vm3  ;;  %v1343_v51 = vadd.f32 1e-05, %v1341_v50 }
 0xc5f   : > { %v1411_v35 = vmul.f32 %v2212_v33, %v1410_v34 }
 0xc60   : > { %vm1350_vm7 = vweird.f32 %v1343_v51 }
 0xc61   : > { %v1412_v36 = vmul.f32 0.5, %v1411_v35 }
 0xc63   : > { %v1413_v37 = vsub.f32 1.5, %v1412_v36 }
 0xc65   : > { %v1414_v38 = vmul.f32 %v2212_v33, %v1413_v37 }
 0xc67   : > { %v1418_v42 = vsel %vm1417_vm5, %v2212_v33, %v1414_v38 }
 0xc68   : > { %v1419_v17 = vmul.f32 %v1418_v42, %v1407_v40 }
 0xc6a   : > { %v1420_v43 = vmul.f32 %v1419_v17, %v2946_v57 }
 0xc6c   : > { %v3101_v46 = vadd.f32 %v1420_v43, %v2948_v58 }
 0xc6e   : > { %2213 = vtanh.f32 %v3101_v46 }
 0xc6f   : > { %2215 = vrsqrt.f32 %v1343_v51 }
 0xc74   : > { %v2214_v10 = vpop.eup %2213 }
 0xc75   : > { %1424 = vrot.lane.b32.xlu1 %v2214_v10, %s2623_s21  ;;  %v2216_v52 = vpop.eup %2215 }
 0xc76   : > { %v1345_v53 = vmul.f32 %v2216_v52, %v1343_v51  ;;  %vm1351_vm6 = vweird.f32 %v2216_v52 }
 0xc77   : > { %vm1352_vm8 = vmor %vm1350_vm7, %vm1351_vm6 }
 0xc78   : > { %v1346_v54 = vmul.f32 %v2216_v52, %v1345_v53 }
 0xc7a   : > { %v1347_v45 = vmul.f32 0.5, %v1346_v54 }
 0xc7c   : > { %v1348_v62 = vsub.f32 1.5, %v1347_v45 }
 0xc7e   : > { %v1349_v1 = vmul.f32 %v2216_v52, %v1348_v62 }
 0xc80   : > { %v1353_v2 = vsel %vm1352_vm8, %v2216_v52, %v1349_v1 }
 0xc81   : > { %v1354_v6 = vmul.f32 %v1353_v2, %v1342_v5 }
 0xc83   : > { %v1355_v7 = vmul.f32 %v1354_v6, %v2957_v16 }
 0xc85   : > { %v1356_v8 = vadd.f32 %v1355_v7, %v2960_v21 }
 0xc87   : > { %v1973_v4 = vmul.f32 -1.442695, %v1356_v8 }
 0xc89   : > { %2217 = vpow2.f32 %v1973_v4 }
 0xc8f   : > { %v2218_v9 = vpop.eup %2217 }
 0xc90   : > { %v1360_v11 = vadd.f32 1.0, %v2218_v9 }
 0xc92   : > { %2219 = vrcp.f32 %v1360_v11  ;;  %v1372_v24 = vand.u32 2147483648, %v1360_v11  ;;  %vm1366_vm10 = vweird.f32 %v1360_v11  ;;  %v1370_v3 = vand.u32 2147483647, %v1360_v11 }
 0xc94   : > { %v1373_v27 = vor.u32 1.1754944e-38, %v1372_v24  ;;  %vm1371_vm12 = vcmp.eq.f32.partialorder %v1370_v3, 8.507059e+37 }
 0xc98   : > { %v2220_v12 = vpop.eup %2219 }
 0xc99   : > { %v1362_v13 = vmul.f32 %v2220_v12, %v1360_v11  ;;  %vm1367_vm9 = vweird.f32 %v2220_v12 }
 0xc9a   : > { %vm1368_vm11 = vmor %vm1366_vm10, %vm1367_vm9 }
 0xc9b   : > { %v1363_v19 = vsub.f32 1.0, %v1362_v13 }
 0xc9d   : > { %v1364_v22 = vmul.f32 %v2220_v12, %v1363_v19 }
 0xc9f   : > { %v1365_v23 = vadd.f32 %v2220_v12, %v1364_v22 }
 0xca1   : > { %v1369_v25 = vsel %vm1368_vm11, %v2220_v12, %v1365_v23 }
 0xca2   : > { %v1374_v14 = vsel %vm1371_vm12, %v1373_v27, %v1369_v25 }
 0xce7   : > { %v1425_v29 = vpop.permute.xlu1 %1424 }
 0xce8   : > { %v1427_v30 = vmul.f32 %v1425_v29, %v1374_v14 }
 0xcea   : > { %1429 = vrot.lane.b32.xlu2 %v1427_v30, %s2625_s30 }
 0xd44   : > { %v1430_v31 = vpop.permute.xlu2 %1429 }
 0xd45   : > { %1974 = vst.msk [vmem:[%s2844_s4 + $0x10] sm:$0xff] %vm584_vm2, %v1430_v31  ;;  %1975 = vmatmul.msk.f32.vlgmr.msrb.gmra.mxu1 %vm584_vm2, %v1430_v31 }
 0xdc2   : > { %v1455_v15 = vpop.f32.mrf.mxu1 }
 0xdc3   : > { %v3116_v33 = vadd.f32 %v1455_v15, %v575_v32 }
 0xdc5   : > { %1558 = vrot.lane.b32.xlu0 %v3116_v33, %s2623_s21  ;;  %v1463_v34 = vmul.f32 %v3116_v33, %v3116_v33  ;;  %v1459_v41 = vsel %vm584_vm2, %v3116_v33, 0.0 }
 0xdc7   : > { %1565 = vrot.lane.b32.xlu1 %v1463_v34, %s2623_s21  ;;  %v1464_v35 = vsel %vm584_vm2, %v1463_v34, 0.0 }
 0xdc8   : > { %1465 = vadd.xlane.f32.xlu2 %v1464_v35 }
 0xdcf   : > { %1506 = vrot.lane.b32.xlu1 %v3116_v33, %s2622_s24 }
 0xdef   : > { %1460 = vadd.xlane.f32.xlu0 %v1459_v41 }
 0xe37   : > { %v1559_v63 = vpop.permute.xlu0 %1558 }
 0xe38   : > { %v1561_v36 = vsel %vm584_vm2, %v1559_v63, 0.0 }
 0xe39   : > { %v1566_v37 = vpop.permute.xlu1 %1565  ;;  %1562 = vadd.xlane.f32.xlu0 %v1561_v36 }
 0xe3a   : > { %v1568_v38 = vsel %vm584_vm2, %v1566_v37, 0.0 }
 0xe3b   : > { %1569 = vadd.xlane.f32.xlu2 %v1568_v38  ;;  %v1466_v43 = vpop.xlane.xlu2 %1465 }
 0xe3c   : > { %v1467_v23 = vmul.f32 %v1466_v43, %v2888_v39 }
 0xe41   : > { %v1507_v40 = vpop.permute.xlu1 %1506 }
 0xe42   : > { %v1509_v42 = vsel %vm584_vm2, %v1507_v40, 0.0 }
 0xe43   : > { %1510 = vadd.xlane.f32.xlu1 %v1509_v42 }
 0xe4d   : > { %1514 = vrot.lane.b32.xlu0 %v1463_v34, %s2622_s24 }
 0xe5c   : > { %1591 = vrot.lane.b32.xlu1 %v3116_v33, %s2625_s30 }
 0xe62   : > { %v1461_v17 = vpop.xlane.xlu0 %1460 }
 0xe63   : > { %v1462_v19 = vmul.f32 %v1461_v17, %v2888_v39 }
 0xe65   : > { %v1468_v22 = vmul.f32 %v1462_v19, %v1462_v19  ;;  %v1471_v32 = vsub.f32 %v3116_v33, %v1462_v19 }
 0xe67   : > { %v1469_v24 = vsub.f32 %v1467_v23, %v1468_v22 }
 0xe69   : > { %v1470_v3 = vmax.f32 %v1469_v24, 0.0 }
 0xeac   : > { %v1563_v10 = vpop.xlane.xlu0 %1562 }
 0xead   : > { %v1564_v47 = vmul.f32 %v1563_v10, %v2888_v39 }
 0xeae   : > { %v1570_v48 = vpop.xlane.xlu2 %1569 }
 0xeaf   : > { %v1572_v26 = vmul.f32 %v1564_v47, %v1564_v47  ;;  %v1571_v0 = vmul.f32 %v1570_v48, %v2888_v39  ;;  %v1575_v6 = vsub.f32 %v3116_v33, %v1564_v47 }
 0xeb1   : > { %v1573_v49 = vsub.f32 %v1571_v0, %v1572_v26 }
 0xeb3   : > { %v1574_v44 = vmax.f32 %v1573_v49, 0.0 }
 0xeb5   : > { %v1576_v50 = vadd.f32 1e-05, %v1574_v44 }
 0xeb6   : > { %v1511_v5 = vpop.xlane.xlu1 %1510 }
 0xeb7   : > { %2221 = vrsqrt.f32 %v1576_v50  ;;  %vm1583_vm14 = vweird.f32 %v1576_v50  ;;  %v1512_v37 = vmul.f32 %v1511_v5, %v2888_v39 }
 0xeb9   : > { %v1521_v42 = vmul.f32 %v1512_v37, %v1512_v37 }
 0xebd   : > { %v2222_v51 = vpop.eup %2221 }
 0xebe   : > { %v1578_v52 = vmul.f32 %v2222_v51, %v1576_v50  ;;  %vm1584_vm13 = vweird.f32 %v2222_v51 }
 0xebf   : > { %v1515_v53 = vpop.permute.xlu0 %1514  ;;  %vm1585_vm15 = vmor %vm1583_vm14, %vm1584_vm13 }
 0xec0   : > { %v1579_v54 = vmul.f32 %v2222_v51, %v1578_v52  ;;  %v1517_v45 = vsel %vm584_vm2, %v1515_v53, 0.0 }
 0xec1   : > { %1518 = vadd.xlane.f32.xlu2 %v1517_v45 }
 0xec2   : > { %v1580_v62 = vmul.f32 0.5, %v1579_v54 }
 0xec4   : > { %v1581_v1 = vsub.f32 1.5, %v1580_v62 }
 0xec6   : > { %v1582_v2 = vmul.f32 %v2222_v51, %v1581_v1 }
 0xec8   : > { %v1586_v7 = vsel %vm1585_vm15, %v2222_v51, %v1582_v2 }
 0xec9   : > { %v1587_v8 = vmul.f32 %v1586_v7, %v1575_v6 }
 0xecb   : > { %v1588_v4 = vmul.f32 %v1587_v8, %v2895_v60  ;;  %v1472_v60 = vadd.f32 1e-05, %v1470_v3 }
 0xecd   : > { %v1589_v9 = vadd.f32 %v1588_v4, %v2897_v61  ;;  %vm1479_vm0 = vweird.f32 %v1472_v60  ;;  %v1524_v4 = vsub.f32 %v3116_v33, %v1512_v37 }
 0xece   : > { %v1592_v11 = vpop.permute.xlu1 %1591 }
 0xecf   : > { %v1594_v12 = vsel %vm584_vm2, %v1592_v11, 0.0  ;;  %2223 = vtanh.f32 %v1589_v9 }
 0xed0   : > { %1595 = vadd.xlane.f32.xlu2 %v1594_v12  ;;  %2225 = vrsqrt.f32 %v1472_v60 }
 0xed5   : > { %v2224_v13 = vpop.eup %2223 }
 0xed6   : > { %1644 = vrot.lane.b32.xlu1 %v2224_v13, %s2623_s21  ;;  %v2226_v61 = vpop.eup %2225 }
 0xed7   : > { %v1474_v25 = vmul.f32 %v2226_v61, %v1472_v60  ;;  %vm1480_vm1 = vweird.f32 %v2226_v61 }
 0xed8   : > { %vm1481_vm3 = vmor %vm1479_vm0, %vm1480_vm1 }
 0xed9   : > { %v1475_v27 = vmul.f32 %v2226_v61, %v1474_v25 }
 0xedb   : > { %v1476_v29 = vmul.f32 0.5, %v1475_v27 }
 0xedd   : > { %v1477_v14 = vsub.f32 1.5, %v1476_v29 }
 0xedf   : > { %v1478_v30 = vmul.f32 %v2226_v61, %v1477_v14 }
 0xee1   : > { %v1482_v31 = vsel %vm1481_vm3, %v2226_v61, %v1478_v30 }
 0xee2   : > { %v1483_v15 = vmul.f32 %v1482_v31, %v1471_v32 }
 0xee4   : > { %v1484_v35 = vmul.f32 %v1483_v15, %v2907_v18 }
 0xee6   : > { %v1485_v41 = vadd.f32 %v1484_v35, %v2910_v20 }
 0xee8   : > { %1598 = vrot.lane.b32.xlu2 %v1463_v34, %s2625_s30  ;;  %v1976_v34 = vmul.f32 -1.442695, %v1485_v41 }
 0xeea   : > { %2227 = vpow2.f32 %v1976_v34 }
 0xef0   : > { %v2228_v63 = vpop.eup %2227 }
 0xef1   : > { %v1489_v36 = vadd.f32 1.0, %v2228_v63 }
 0xef3   : > { %2229 = vrcp.f32 %v1489_v36  ;;  %v1501_v0 = vand.u32 2147483648, %v1489_v36  ;;  %vm1495_vm5 = vweird.f32 %v1489_v36  ;;  %v1499_v50 = vand.u32 2147483647, %v1489_v36 }
 0xef5   : > { %v1502_v54 = vor.u32 1.1754944e-38, %v1501_v0  ;;  %vm1500_vm7 = vcmp.eq.f32.partialorder %v1499_v50, 8.507059e+37 }
 0xef9   : > { %v2230_v38 = vpop.eup %2229 }
 0xefa   : > { %v1491_v43 = vmul.f32 %v2230_v38, %v1489_v36  ;;  %vm1496_vm4 = vweird.f32 %v2230_v38 }
 0xefb   : > { %vm1497_vm6 = vmor %vm1495_vm5, %vm1496_vm4 }
 0xefc   : > { %v1492_v48 = vsub.f32 1.0, %v1491_v43 }
 0xefe   : > { %v1493_v18 = vmul.f32 %v2230_v38, %v1492_v48 }
 0xf00   : > { %v1494_v20 = vadd.f32 %v2230_v38, %v1493_v18 }
 0xf02   : > { %v1498_v52 = vsel %vm1497_vm6, %v2230_v38, %v1494_v20 }
 0xf03   : > { %v1503_v62 = vsel %vm1500_vm7, %v1502_v54, %v1498_v52 }
 0xf34   : > { %v1519_v40 = vpop.xlane.xlu2 %1518 }
 0xf35   : > { %v1520_v17 = vmul.f32 %v1519_v40, %v2888_v39 }
 0xf37   : > { %v1522_v10 = vsub.f32 %v1520_v17, %v1521_v42 }
 0xf39   : > { %v1523_v47 = vmax.f32 %v1522_v10, 0.0 }
 0xf3b   : > { %v1525_v26 = vadd.f32 1e-05, %v1523_v47 }
 0xf3d   : > { %2231 = vrsqrt.f32 %v1525_v26  ;;  %vm1532_vm9 = vweird.f32 %v1525_v26 }
 0xf43   : > { %v2232_v49 = vpop.eup %2231  ;;  %v3150_v44 = vpop.xlane.xlu2 %1595 }
 0xf44   : > { %v1527_v51 = vmul.f32 %v2232_v49, %v1525_v26  ;;  %vm1533_vm8 = vweird.f32 %v2232_v49 }
 0xf45   : > { %vm1534_vm10 = vmor %vm1532_vm9, %vm1533_vm8 }
 0xf46   : > { %v1528_v53 = vmul.f32 %v2232_v49, %v1527_v51 }
 0xf48   : > { %v1529_v45 = vmul.f32 0.5, %v1528_v53  ;;  %v1645_v1 = vpop.permute.xlu1 %1644 }
 0xf49   : > { %v1647_v2 = vmul.f32 %v1645_v1, %v1503_v62 }
 0xf4a   : > { %v1530_v5 = vsub.f32 1.5, %v1529_v45  ;;  %v1597_v45 = vmul.f32 %v3150_v44, %v2888_v39 }
 0xf4b   : > { %1649 = vrot.lane.b32.xlu1 %v1647_v2, %s2625_s30  ;;  %v1599_v6 = vpop.permute.xlu2 %1598 }
 0xf4c   : > { %v1531_v7 = vmul.f32 %v2232_v49, %v1530_v5  ;;  %v1601_v8 = vsel %vm584_vm2, %v1599_v6, 0.0  ;;  %v1605_v1 = vmul.f32 %v1597_v45, %v1597_v45 }
 0xf4d   : > { %1602 = vadd.xlane.f32.xlu0 %v1601_v8 }
 0xf4e   : > { %v1535_v9 = vsel %vm1534_vm10, %v2232_v49, %v1531_v7 }
 0xf4f   : > { %v1536_v11 = vmul.f32 %v1535_v9, %v1524_v4 }
 0xf51   : > { %v1537_v12 = vmul.f32 %v1536_v11, %v2920_v56 }
 0xf53   : > { %v1538_v13 = vadd.f32 %v1537_v12, %v2923_v59  ;;  %v1608_v12 = vsub.f32 %v3116_v33, %v1597_v45 }
 0xf55   : > { %v1977_v19 = vmul.f32 -1.442695, %v1538_v13 }
 0xf57   : > { %2233 = vpow2.f32 %v1977_v19 }
 0xf5d   : > { %v2234_v22 = vpop.eup %2233 }
 0xf5e   : > { %v1542_v23 = vadd.f32 1.0, %v2234_v22 }
 0xf60   : > { %2235 = vrcp.f32 %v1542_v23  ;;  %v1554_v27 = vand.u32 2147483648, %v1542_v23  ;;  %vm1548_vm12 = vweird.f32 %v1542_v23  ;;  %v1552_v29 = vand.u32 2147483647, %v1542_v23 }
 0xf62   : > { %v1555_v30 = vor.u32 1.1754944e-38, %v1554_v27  ;;  %vm1553_vm14 = vcmp.eq.f32.partialorder %v1552_v29, 8.507059e+37 }
 0xf66   : > { %v2236_v24 = vpop.eup %2235 }
 0xf67   : > { %v1544_v3 = vmul.f32 %v2236_v24, %v1542_v23  ;;  %vm1549_vm11 = vweird.f32 %v2236_v24 }
 0xf68   : > { %vm1550_vm13 = vmor %vm1548_vm12, %vm1549_vm11 }
 0xf69   : > { %v1545_v60 = vsub.f32 1.0, %v1544_v3 }
 0xf6b   : > { %v1546_v61 = vmul.f32 %v2236_v24, %v1545_v60 }
 0xf6d   : > { %v1547_v25 = vadd.f32 %v2236_v24, %v1546_v61 }
 0xf6f   : > { %v1551_v14 = vsel %vm1550_vm13, %v2236_v24, %v1547_v25 }
 0xf70   : > { %v1556_v56 = vsel %vm1553_vm14, %v1555_v30, %v1551_v14 }
 0xf71   : > { %v1642_v59 = vmul.f32 %v1556_v56, %v3101_v46 }
 0xfbd   : > { %v1650_v31 = vpop.permute.xlu1 %1649 }
 0xfbe   : > { %v1652_v32 = vadd.f32 %v1650_v31, %v1642_v59 }
 0xfc0   : > { %1654 = vrot.lane.b32.xlu2 %v1652_v32, %s2622_s24  ;;  %v1661_v15 = vmul.f32 %v1652_v32, %v1652_v32  ;;  %v1603_v54 = vpop.xlane.xlu0 %1602 }
 0xfc1   : > { %v1604_v62 = vmul.f32 %v1603_v54, %v2888_v39 }
 0xfc3   : > { %v1606_v2 = vsub.f32 %v1604_v62, %v1605_v1 }
 0xfc5   : > { %v1607_v5 = vmax.f32 %v1606_v2, 0.0 }
 0xfc7   : > { %v1609_v6 = vadd.f32 1e-05, %v1607_v5 }
 0xfc8   : > { %1663 = vrot.lane.b32.xlu2 %v1661_v15, %s2622_s24 }
 0xfc9   : > { %vm1616_vm4 = vweird.f32 %v1609_v6 }
0x101a   : > { %v1655_v35 = vpop.permute.xlu2 %1654 }
0x101b   : > { %v1657_v41 = vsel %vm584_vm2, %v1655_v35, 0.0 }
0x101c   : > { %1658 = vadd.xlane.f32.xlu1 %v1657_v41 }
0x1022   : > { %v1664_v34 = vpop.permute.xlu2 %1663 }
0x1023   : > { %v1666_v63 = vsel %vm584_vm2, %v1664_v34, 0.0 }
0x1024   : > { %1667 = vadd.xlane.f32.xlu2 %v1666_v63 }
0x108f   : > { %v1659_v36 = vpop.xlane.xlu1 %1658 }
0x1090   : > { %v1660_v37 = vmul.f32 %v1659_v36, %v2888_v39 }
0x1092   : > { %v1670_v46 = vmul.f32 %v1660_v37, %v1660_v37  ;;  %v1673_v0 = vsub.f32 %v1652_v32, %v1660_v37 }
0x1097   : > { %v1668_v38 = vpop.xlane.xlu2 %1667 }
0x1098   : > { %v1669_v40 = vmul.f32 %v1668_v38, %v2888_v39 }
0x109a   : > { %v1671_v42 = vsub.f32 %v1669_v40, %v1670_v46 }
0x109c   : > { %v1672_v17 = vmax.f32 %v1671_v42, 0.0 }
0x109e   : > { %v1674_v43 = vadd.f32 1e-05, %v1672_v17 }
0x10a0   : > { %2237 = vrsqrt.f32 %v1674_v43  ;;  %vm1681_vm1 = vweird.f32 %v1674_v43 }
0x10a6   : > { %v2238_v10 = vpop.eup %2237 }
0x10a7   : > { %v1676_v47 = vmul.f32 %v2238_v10, %v1674_v43  ;;  %vm1682_vm15 = vweird.f32 %v2238_v10 }
0x10a8   : > { %vm1683_vm0 = vmor %vm1681_vm1, %vm1682_vm15 }
0x10a9   : > { %v1677_v48 = vmul.f32 %v2238_v10, %v1676_v47 }
0x10ab   : > { %v1678_v26 = vmul.f32 0.5, %v1677_v48 }
0x10ad   : > { %v1679_v18 = vsub.f32 1.5, %v1678_v26 }
0x10af   : > { %v1680_v20 = vmul.f32 %v2238_v10, %v1679_v18 }
0x10b1   : > { %v1684_v49 = vsel %vm1683_vm0, %v2238_v10, %v1680_v20 }
0x10b2   : > { %v1685_v50 = vmul.f32 %v1684_v49, %v1673_v0 }
0x10b4   : > { %v1686_v51 = vmul.f32 %v1685_v50, %v2946_v57 }
0x10b6   : > { %v1687_v52 = vadd.f32 %v1686_v51, %v2948_v58 }
0x10b8   : > { %2239 = vtanh.f32 %v1687_v52 }
0x10b9   : > { %2241 = vrsqrt.f32 %v1609_v6 }
0x10be   : > { %v2240_v53 = vpop.eup %2239 }
0x10bf   : > { %1690 = vrot.lane.b32.xlu0 %v2240_v53, %s2623_s21  ;;  %v2242_v7 = vpop.eup %2241 }
0x10c0   : > { %v1611_v8 = vmul.f32 %v2242_v7, %v1609_v6  ;;  %vm1617_vm3 = vweird.f32 %v2242_v7 }
0x10c1   : > { %vm1618_vm5 = vmor %vm1616_vm4, %vm1617_vm3 }
0x10c2   : > { %v1612_v57 = vmul.f32 %v2242_v7, %v1611_v8 }
0x10c4   : > { %v1613_v4 = vmul.f32 0.5, %v1612_v57 }
0x10c6   : > { %v1614_v58 = vsub.f32 1.5, %v1613_v4 }
0x10c8   : > { %v1615_v9 = vmul.f32 %v2242_v7, %v1614_v58 }
0x10ca   : > { %v1619_v11 = vsel %vm1618_vm5, %v2242_v7, %v1615_v9 }
0x10cb   : > { %v1620_v44 = vmul.f32 %v1619_v11, %v1608_v12 }
0x10cd   : > { %v1621_v39 = vmul.f32 %v1620_v44, %v2957_v16 }
0x10cf   : > { %v1622_v13 = vadd.f32 %v1621_v39, %v2960_v21 }
0x10d1   : > { %v1978_v19 = vmul.f32 -1.442695, %v1622_v13 }
0x10d3   : > { %2243 = vpow2.f32 %v1978_v19 }
0x10d9   : > { %v2244_v22 = vpop.eup %2243 }
0x10da   : > { %v1626_v23 = vadd.f32 1.0, %v2244_v22 }
0x10dc   : > { %2245 = vrcp.f32 %v1626_v23  ;;  %v1638_v27 = vand.u32 2147483648, %v1626_v23  ;;  %vm1632_vm7 = vweird.f32 %v1626_v23  ;;  %v1636_v33 = vand.u32 2147483647, %v1626_v23 }
0x10de   : > { %v1639_v16 = vor.u32 1.1754944e-38, %v1638_v27  ;;  %vm1637_vm9 = vcmp.eq.f32.partialorder %v1636_v33, 8.507059e+37 }
0x10e2   : > { %v2246_v24 = vpop.eup %2245 }
0x10e3   : > { %v1628_v3 = vmul.f32 %v2246_v24, %v1626_v23  ;;  %vm1633_vm6 = vweird.f32 %v2246_v24 }
0x10e4   : > { %vm1634_vm8 = vmor %vm1632_vm7, %vm1633_vm6 }
0x10e5   : > { %v1629_v60 = vsub.f32 1.0, %v1628_v3 }
0x10e7   : > { %v1630_v61 = vmul.f32 %v2246_v24, %v1629_v60 }
0x10e9   : > { %v1631_v25 = vadd.f32 %v2246_v24, %v1630_v61 }
0x10eb   : > { %v1635_v29 = vsel %vm1634_vm8, %v2246_v24, %v1631_v25 }
0x10ec   : > { %v1640_v21 = vsel %vm1637_vm9, %v1639_v16, %v1635_v29 }
0x1131   : > { %v1691_v14 = vpop.permute.xlu0 %1690 }
0x1132   : > { %v1693_v30 = vmul.f32 %v1691_v14, %v1640_v21 }
0x1134   : > { %1695 = vrot.lane.b32.xlu0 %v1693_v30, %s2625_s30 }
0x113c   : > { %1702 = vrot.lane.b32.xlu0 %v1687_v52, %s2622_s24 }
0x11a6   : > { %v1696_v56 = vpop.permute.xlu0 %1695 }
0x11a7   : > { %1979 = vst.msk [vmem:[%s2844_s4 + $0x18] sm:$0xff] %vm584_vm2, %v1696_v56 }
0x11a8   : > { %1700 = vst.msk [vmem:[#allocation2] sm:$0xff] %vm584_vm2, %v1696_v56 }
0x11ab   : > { %1709 = sbr.rel (%p1980_p1) target bundleno = 4644 (0x1224), region = 88 }
0x11ae   : > { %v1703_v59 = vpop.permute.xlu0 %1702 }
0x11af   : > { %1705 = vst.msk [vmem:[#allocation3] sm:$0xff] %vm584_vm2, %v1703_v59 }
0x11b0   : > { %1710 = vst.msk [vmem:[#allocation18] sm:$0xff] %vm584_vm2, %v3040_v55  ;;  %1712 = vrot.lane.b32.xlu0 %v3030_v28, %s2626_s25 }
0x1222   : > { %v1713_v31 = vpop.permute.xlu0 %1712 }
0x1223   : > { %1715 = vst.msk [vmem:[#allocation20] sm:$0xff] %vm584_vm2, %v1713_v31 }
0x1224 PF: > { %s2627_s19 = smov [#allocation18]   ;;  %s1749_s22 = sshll.u32 %s3245_s9, 4  ;;  %s1750_s22 = int_to_ptr.hbm [resolvable:$true] %s1749_s22 }
0x1225   : > { %s1747_s29 = sshll.u32 %s2627_s19, 4  ;;  %s1991_s6 = sshll.u32 %s2604_s16, 5  ;;  %s1748_s29 = int_to_ptr.vmem [resolvable:$true] %s1747_s29 }
0x1226   : > { %2022 = dma.vmem_to_hbm [thread:$0]  (%p2787_p10), %s1748_s29, 128, %s1750_s22, [#allocation19]  }
0x1227   : > { %s1729_s24 = scalar_lea.hbm %s3244_s8, %s1991_s6  ;;  %s1730_s21 = sshll.u32 %s2844_s4, 4  ;;  %s1731_s21 = int_to_ptr.vmem [resolvable:$true] %s1730_s21 }
0x1228   : > { %s1732_s30 = sshll.u32 %s1729_s24, 4  ;;  %s1717_s11 = scalar_lea.sflag [#allocation7], %s2822_s26  ;;  %s1733_s30 = int_to_ptr.hbm [resolvable:$true] %s1732_s30 }
0x1229   : > { %s2500_s23 = sshra.s32 %s1733_s30, 4  ;;  %s2506_s16 = scalar_lea.hbm %s3244_s8, 96  ;;  %s2501_s23 = int_to_ptr.hbm [resolvable:$true] %s2500_s23 }
0x122a   : > { %s2502_s25 = scalar_lea.hbm %s2501_s23, 32  ;;  %p2507_p11 = scmp.lt.s32.totalorder %s2501_s23, %s3244_s8 }
0x122b   : > { %p2503_p7 = scmp.ne.s32.totalorder %s2501_s23, %s2502_s25  ;;  %p2508_p12 = scmp.lt.s32.totalorder %s2506_s16, %s2502_s25 }
0x122d   : > { %p2504_p8 = pnand %p2503_p7, %p2799_p13  ;;  %p2509_p0 = por %p2508_p12, %p2507_p11 }
0x122f   : > { %p2505_p9 = pneg %p2504_p8 }
0x1231   : > { %p2510_p2 = pnand %p2509_p0, %p2505_p9 }
0x1233   : > { %2513 = shalt.err (!%p2510_p2)
}
0x1234   : > { %s2628_s26 = smov 128   ;;  %s2629_s4 = smov 8  }
0x1235   : > { %2020 = dma.vmem_to_hbm [thread:$0]  (%p2799_p13), %s1731_s21, 512, %s1733_s30, %s1717_s11, %s2628_s26, %s2628_s26, %s2629_s4  }
0x1236   : > { %s2630_s22 = smov [#allocation20]   ;;  %s1763_s24 = sshll.u32 %s3246_s10, 4  ;;  %s1764_s24 = int_to_ptr.hbm [resolvable:$true] %s1763_s24 }
0x1237   : > { %s1761_s6 = sshll.u32 %s2630_s22, 4  ;;  %s1762_s6 = int_to_ptr.vmem [resolvable:$true] %s1761_s6 }
0x1238   : > { %2024 = dma.vmem_to_hbm [thread:$0]  (%p2787_p10), %s1762_s6, 128, %s1764_s24, [#allocation19]  }
0x1239   : > { %2583 = dma.done.wait (%p2787_p10), [#allocation19], 256  }
0x123a   : > { %2585 = vsyncadd (%p2787_p10), [#allocation19], 4294967040 }
0x123b PF: > { %p2074_p13 = scmp.ge.s32.totalorder %s2612_s18, 2  ;;  %s1785_s1 = sand.u32 1, %s2592_s13  }
0x123c   : > { %s1786_s21 = scalar_lea.sflag [#allocation7], %s1785_s1 }
0x123d   : > { %p2054_p5 = pnand %p2074_p13, %p2806_p4 }
0x123f   : > { %p2055_p6 = pneg %p2054_p5 }
0x1241   : > { %2587 = dma.done.wait (%p2055_p6), %s1786_s21, 512  }
0x1242   : > { %2589 = vsyncadd (%p2055_p6), %s1786_s21, 4294966784  ;;  %s31_s18 = sadd.s32 1, %s2612_s18   ;;  %s3275_s27 = sld [smem:[#allocation27_spill]] }
0x1243   : > { %p28_p3 = scmp.ge.s32.totalorder %s31_s18, 5   ;;  %s3276_s13 = smov %s2596_s14 }
0x1244   : > { %s3277_s14 = smov %s2600_s15  ;;  %s3278_s15 = smov %s2804_s28 }
0x1245   : > { %s3279_s16 = smov %s2608_s17  ;;  %30 = sbr.rel (!%p28_p3) target bundleno = 17 (0x11), region = 155 }
0x1248   : > { %s3280_s17 = smov %s3275_s27 }
0x124a   :  { %1792 = vsyncpa [#allocation6], 1 }
0x124b   :  { %1794 = vsyncpa [#allocation6 + $0x1], 1 }
0x124c   :  { %1795 = vsyncpa [#allocation9], 1 }
0x124d   :  { %1796 = vsyncpa [#allocation12], 1 }
0x124e   :  { %1797 = vsyncpa [#allocation15], 1 }
0x124f   :  { %1798 = vsyncpa [#allocation7], 1 }
0x1250   :  { %1800 = vsyncpa [#allocation7 + $0x1], 1 }
0x1251   :  { %1801 = vsyncpa [#allocation19], 1 }

// kernel: tpu_custom_call.1
= control target key start
LH: loop header
LB: loop body
LE: loop exit
PB: predicated region body
PF: predicated region fallthrough
CT: control target
= control target key end

     0   :  { %s3236_s0 = inlined_call_operand.hbm [shape: f32[12,8,16], index: 0, kind: input, shape index: {}]   ;;  %s3237_s1 = inlined_call_operand.hbm [shape: f32[8,32], index: 1, kind: input, shape index: {}]   ;;  %s3238_s2 = inlined_call_operand.hbm [shape: f32[8,32], index: 2, kind: input, shape index: {}]   ;;  %s3239_s3 = inlined_call_operand.hbm [shape: f32[16,128], index: 3, kind: input, shape index: {}]   ;;  %s3240_s4 = inlined_call_operand.hbm [shape: f32[32,128], index: 4, kind: input, shape index: {}]   ;;  %s3241_s5 = inlined_call_operand.vmem [shape: f32[1,128], index: 5, kind: input, shape index: {}]   ;;  %s3242_s6 = inlined_call_operand.hbm [shape: f32[5,32], index: 6, kind: input, shape index: {}]   ;;  %s3243_s7 = inlined_call_operand.hbm [shape: f32[5,32], index: 7, kind: input, shape index: {}]   ;;  %s3244_s8 = inlined_call_operand.hbm [shape: f32[12,8,32], index: 8, kind: output, shape index: {0}]   ;;  %s3245_s9 = inlined_call_operand.hbm [shape: f32[8,32], index: 9, kind: output, shape index: {1}]   ;;  %s3246_s10 = inlined_call_operand.hbm [shape: f32[8,32], index: 10, kind: output, shape index: {2}]  }
   0x1   :  { %3252 = sst [smem:[#allocation28_spill]] %s3237_s1 }
   0x2   :  { %3253 = sst [smem:[#allocation29_spill]] %s3238_s2 }
   0x3   :  { %3254 = sst [smem:[#allocation30_spill]] %s3239_s3 }
   0x4   :  { %3255 = sst [smem:[#allocation31_spill]] %s3240_s4 }
   0x5   :  { %3256 = sst [smem:[#allocation32_spill]] %s3242_s6 }
   0x6   :  { %3257 = sst [smem:[#allocation33_spill]] %s3243_s7 }
   0x7   :  { %16 = vsyncpa [#allocation6], 0 }
   0x8   :  { %18 = vsyncpa [#allocation6 + $0x1], 0 }
   0x9   :  { %19 = vsyncpa [#allocation9], 0 }
   0xa   :  { %20 = vsyncpa [#allocation12], 0 }
   0xb   :  { %21 = vsyncpa [#allocation15], 0 }
   0xc   :  { %22 = vsyncpa [#allocation7], 0 }
   0xd   :  { %24 = vsyncpa [#allocation7 + $0x1], 0 }
   0xe   :  { %25 = vsyncpa [#allocation19], 0  ;;  %s2686_s13 = smov 0   ;;  %s2688_s14 = smov 0  }
   0xf   :  { %s2690_s15 = smov 0   ;;  %s2692_s16 = smov 0  }
  0x10   :  { %s2694_s17 = smov 0   ;;  %s2696_s18 = smov 0  }
  0x11 LB: > { %s3247_s19 = sadd.s32 4294967295, %s2612_s18   ;;  %p1936_p0 = scmp.ge.s32.totalorder %s2612_s18, 1  ;;  %s2612_s18 = sphi %s2696_s18, %s31_s18   ;;  %s2608_s17 = sphi %s2694_s17, %s3280_s17   ;;  %s2604_s16 = sphi %s2692_s16, %s3279_s16   ;;  %s2600_s15 = sphi %s2690_s15, %s3278_s15   ;;  %s2596_s14 = sphi %s2688_s14, %s3277_s14   ;;  %s2592_s13 = sphi %s2686_s13, %s3276_s13  }
  0x12   : > { %p2720_p1 = scmp.eq.s32.totalorder %s3247_s19, 0  ;;  %p313_p2 = scmp.lt.s32.totalorder %s2612_s18, 4 }
  0x13   : > { %s3259_s1 = sld [smem:[#allocation28_spill]]  ;;  %s2614_s25 = smov [#allocation8]  }
  0x14   : > { %p2728_p3 = pnand %p1936_p0, %p313_p2  ;;  %s329_s26 = sshll.u32 %s2614_s25, 4  ;;  %s330_s26 = int_to_ptr.vmem [resolvable:$true] %s329_s26 }
  0x15   : > { %s3261_s3 = sld [smem:[#allocation30_spill]]  ;;  %s2615_s11 = smov [#allocation11]  }
  0x16   : > { %p2030_p4 = pneg %p2728_p3  ;;  %s354_s12 = sshll.u32 %s2615_s11, 4  ;;  %s355_s12 = int_to_ptr.vmem [resolvable:$true] %s354_s12 }
  0x17   : > { %s3248_s21 = smov 128   ;;  %s3250_s22 = smov 8  }
  0x18   : > { %p2739_p5 = pnand %p2030_p4, %p2720_p1  ;;  %s3263_s6 = sld [smem:[#allocation32_spill]] }
  0x19   : > { %s327_s23 = sshll.u32 %s3259_s1, 4  ;;  %s2618_s19 = smov [#allocation14]   ;;  %s328_s23 = int_to_ptr.hbm [resolvable:$true] %s327_s23 }
  0x1a   : > { %2033 = dma.hbm_to_vmem [thread:$0]  (!%p2739_p5), %s328_s23, 128, %s330_s26, [#allocation9]  }
  0x1b   : > { %s352_s29 = sshll.u32 %s3261_s3, 4  ;;  %s386_s1 = sshll.u32 %s2618_s19, 4  ;;  %s353_s29 = int_to_ptr.hbm [resolvable:$true] %s352_s29  ;;  %s387_s1 = int_to_ptr.vmem [resolvable:$true] %s386_s1 }
  0x1c   : > { %2039 = dma.hbm_to_vmem [thread:$0]  (!%p2739_p5), %s353_s29, 256, %s355_s12, [#allocation12], %s3248_s21, %s3248_s21, %s3250_s22  }
  0x1d   : > { %s3264_s2 = sld [smem:[#allocation29_spill]]  ;;  %s2619_s3 = smov [#allocation10]  }
  0x1e   : > { %s384_s28 = sshll.u32 %s3263_s6, 4  ;;  %s343_s29 = sshll.u32 %s2619_s3, 4  ;;  %s385_s28 = int_to_ptr.hbm [resolvable:$true] %s384_s28  ;;  %s344_s29 = int_to_ptr.vmem [resolvable:$true] %s343_s29 }
  0x1f   : > { %2045 = dma.hbm_to_vmem [thread:$0]  (!%p2739_p5), %s385_s28, 128, %s387_s1, [#allocation15]  }
  0x20   : > { %s3265_s4 = sld [smem:[#allocation31_spill]]  ;;  %s2620_s28 = smov [#allocation13]  }
  0x21   : > { %s3266_s7 = sld [smem:[#allocation33_spill]]  ;;  %s368_s3 = sshll.u32 %s2620_s28, 4  ;;  %s369_s3 = int_to_ptr.vmem [resolvable:$true] %s368_s3 }
  0x22   : > { %s3267_s21 = smov 128   ;;  %s2621_s11 = smov [#allocation16]  }
  0x23   : > { %s341_s26 = sshll.u32 %s3264_s2, 4  ;;  %s398_s23 = sshll.u32 %s2621_s11, 4  ;;  %s342_s26 = int_to_ptr.hbm [resolvable:$true] %s341_s26  ;;  %s399_s23 = int_to_ptr.vmem [resolvable:$true] %s398_s23 }
  0x24   : > { %2036 = dma.hbm_to_vmem [thread:$0]  (!%p2739_p5), %s342_s26, 128, %s344_s29, [#allocation9]  }
  0x25   : > { %s40_s26 = sadd.s32 1, %s2608_s17  ;;  %s1935_s29 = sadd.s32 4294967294, %s2612_s18  }
  0x26   : > { %s366_s25 = sshll.u32 %s3265_s4, 4  ;;  %p41_p6 = scmp.ge.s32.totalorder %s40_s26, 3  ;;  %s367_s25 = int_to_ptr.hbm [resolvable:$true] %s366_s25 }
  0x27   : > { %s396_s1 = sshll.u32 %s3266_s7, 4  ;;  %s52_s12 = sadd.s32 1, %s2600_s15  ;;  %s397_s1 = int_to_ptr.hbm [resolvable:$true] %s396_s1 }
  0x28   : > { %2042 = dma.hbm_to_vmem [thread:$0]  (!%p2739_p5), %s367_s25, 512, %s369_s3, [#allocation12], %s3267_s21, %s3267_s21, %s3250_s22  }
  0x29   : > { %2048 = dma.hbm_to_vmem [thread:$0]  (!%p2739_p5), %s397_s1, 128, %s399_s23, [#allocation15]  }
  0x2a   : > { %p59_p7 = scmp.ne.s32.totalorder %s2600_s15, %s2596_s14  ;;  %s3282_s26 = smov (%p41_p6, %s40_s26), 0 }
  0x2b   : > { %3268 = sst [smem:[#allocation27_spill]] %s3282_s26  ;;  %p60_p8 = scmp.eq.s32.totalorder %s2612_s18, 0 }
  0x2c   : > { %p65_p9 = scmp.ne.s32.totalorder %s2596_s14, %s2592_s13  ;;  %s47_s25 = ssub.s32 %s2608_s17, %s3282_s26 }
  0x2d   : > { %s3269_s19 = sadd.s32 4294967295, %s2612_s18   ;;  %p50_p11 = scmp.eq.s32.totalorder %s47_s25, 0 }
  0x2e   : > { %p2787_p10 = scmp.eq.s32.totalorder %s3269_s19, 2  ;;  %p2793_p12 = por %p2720_p1, %p65_p9 }
  0x2f   : > { %p254_p0 = scmp.eq.s32.totalorder %s1935_s29, 2  ;;  %p61_p2 = por %p60_p8, %p59_p7 }
  0x30   : > { %p2799_p13 = por %p2787_p10, %p59_p7  ;;  %s409_s11 = sand.u32 1, %s2600_s15  }
  0x31   : > { %s2804_s28 = scalar_select %p50_p11, %s2600_s15, %s52_s12  }
  0x32   : > { %p2806_p4 = por %p254_p0, %p65_p9  ;;  %s1990_s23 = sshll.u32 %s2608_s17, 5 }
  0x33   : > { %p2063_p5 = scmp.lt.s32.totalorder %s2612_s18, 3  ;;  %s1944_s25 = sshll.u32 %s409_s11, 5 }
  0x34   : > { %s419_s2 = scalar_lea.hbm %s3236_s0, %s1990_s23  ;;  %s413_s6 = scalar_lea.vmem [#allocation5], %s1944_s25 }
  0x35   : > { %s420_s4 = sshll.u32 %s419_s2, 4  ;;  %s422_s7 = sshll.u32 %s413_s6, 4  ;;  %s421_s4 = int_to_ptr.hbm [resolvable:$true] %s420_s4  ;;  %s423_s7 = int_to_ptr.vmem [resolvable:$true] %s422_s7 }
  0x36   : > { %p2050_p6 = pnand %p2063_p5, %p61_p2  ;;  %s410_s29 = scalar_lea.sflag [#allocation6], %s409_s11 }
  0x37   : > { %s3274_s12 = smov 8   ;;  %434 = sbr.rel (%p2728_p3) target bundleno = 4667 (0x123b), region = 52 }
  0x38   : > { %2052 = dma.hbm_to_vmem [thread:$0]  (!%p2050_p6), %s421_s4, 512, %s423_s7, %s410_s29, %s3267_s21, %s3267_s21, %s3274_s12  }
  0x39   : > { %s2822_s26 = sand.u32 (!%p2728_p3), 1, %s2596_s14  }
  0x3a   : > { %s1948_s2 = sshll.u32 (!%p2728_p3), %s2822_s26, 5  ;;  %s437_s22 = scalar_lea.sflag (!%p2728_p3), [#allocation6], %s2822_s26 }
  0x3b   : > { %s2826_s6 = scalar_lea.vmem (!%p2728_p3), [#allocation5], %s1948_s2 }
  0x3c   : > { %2567 = dma.done.wait (%p2793_p12), %s437_s22, 512  }
  0x3d   : > { %2569 = vsyncadd (%p2793_p12), %s437_s22, 4294966784 }
  0x3e   : > { %2571 = dma.done.wait (%p2720_p1), [#allocation9], 256  }
  0x3f   : > { %2573 = vsyncadd (%p2720_p1), [#allocation9], 4294967040 }
  0x40   : > { %2575 = dma.done.wait (%p2720_p1), [#allocation12], 768  }
  0x41   : > { %2577 = vsyncadd (%p2720_p1), [#allocation12], 4294966528 }
  0x42   : > { %2579 = dma.done.wait (%p2720_p1), [#allocation15], 256  }
  0x43   : > { %2581 = vsyncadd (%p2720_p1), [#allocation15], 4294967040  ;;  %s2844_s4 = scalar_lea.vmem [#allocation17], %s1948_s2  ;;  %p1956_p3 = scmp.ne.s32.totalorder %s2604_s16, 0 }
  0x45   : > { %513 = sbr.rel (%p1956_p3) target bundleno = 77 (0x4d), region = 84 }
  0x4a   : > { %v514_v0 = vld [vmem:[#allocation8] sm:$0xff]  ;;  %vm515_vm0 = vcmask 261120   ;;  %v517_v1 = vld [vmem:[#allocation10] sm:$0xff] }
  0x4b   : > { %516 = vst.msk [vmem:[#allocation2] sm:$0xff] %vm515_vm0, %v514_v0 }
  0x4c   : > { %518 = vst.msk [vmem:[#allocation3] sm:$0xff] %vm515_vm0, %v517_v1 }
  0x4d PF: > { %v522_v2 = vld [vmem:[#allocation13 + $0x18] sm:$0xff]  ;;  %v521_v4 = vld [vmem:[#allocation13 + $0x10] sm:$0xff]  ;;  %v525_v6 = vld [vmem:[%s2826_s6] sm:$0xff]  ;;  %vm535_vm1 = vcmask 130048   ;;  %vm584_vm2 = vcmask 261120   ;;  %s2622_s24 = smov 96  }
  0x4e   : > { %v530_v3 = vld [vmem:[#allocation11 + $0x8] sm:$0xff]  ;;  %600 = vmatpush.msra.mxu1 %v522_v2  ;;  %v529_v5 = vld [vmem:[#allocation11] sm:$0xff]  ;;  %v520_v7 = vld [vmem:[#allocation13 + $0x8] sm:$0xff]  ;;  %1184 = vmatpush.msra.mxu3 %v522_v2  ;;  %s2623_s21 = smov 64   ;;  %v2624_v30 = vmov 32.0   ;;  %s2625_s30 = smov 32  }
  0x4f   : > { %562 = vmatpush.msra.mxu0 %v530_v3  ;;  %1992 = vmatpush.msra.mxu2 %v530_v3  ;;  %v519_v8 = vld [vmem:[#allocation13] sm:$0xff]  ;;  %v2853_v10 = vld [vmem:[%s3241_s5] ss:$0 sm:$0xff]  ;;  %v2881_v26 = vld [vmem:[#allocation16] sm:$0x1f]  ;;  %2141 = vrcp.f32 %v2624_v30  ;;  %p1980_p1 = scmp.ne.s32.totalorder %s2604_s16, 2 }
  0x50   : > { %601 = vmatpush.msra.mxu1 %v521_v4  ;;  %1185 = vmatpush.msra.mxu3 %v521_v4  ;;  %v2872_v17 = vld [vmem:[#allocation14] sm:$0x1f]  ;;  %v763_v27 = vperm.slane %v2881_v26, 2  ;;  %v702_v38 = vperm.slane %v2881_v26, 1  ;;  %s2626_s25 = smov (!%p1980_p1), 96  }
  0x51   : > { %563 = vmatpush.msra.mxu0 %v529_v5  ;;  %1993 = vmatpush.msra.mxu2 %v529_v5  ;;  %v757_v18 = vperm.slane %v2872_v17, 2 }
  0x52   : > { %1957 = vmatmul.msk.f32.vlgmr.msra.gmra.mxu0 %vm535_vm1, %v525_v6  ;;  %602 = vmatpush.msra.mxu1 %v520_v7  ;;  %v581_v9 = vld [vmem:[#allocation2] sm:$0xff] }
  0x53   : > { %918 = vmatpush.msrb.mxu2 %v522_v2  ;;  %1186 = vmatpush.msra.mxu3 %v520_v7 }
  0x54   : > { %603 = vmatpush.msra.mxu1 %v519_v8 }
  0x55   : > { %919 = vmatpush.msrb.mxu2 %v521_v4  ;;  %1961 = vmatmul.msk.f32.vlgmr.msra.gmra.mxu1 %vm584_vm2, %v581_v9  ;;  %v2142_v31 = vpop.eup %2141 }
  0x56   : > { %1450 = vmatpush.msrb.mxu1 %v522_v2  ;;  %1187 = vmatpush.msra.mxu3 %v519_v8  ;;  %v613_v32 = vmul.f32 32.0, %v2142_v31  ;;  %vm617_vm3 = vweird.f32 %v2142_v31 }
  0x57   : > { %920 = vmatpush.msrb.mxu2 %v520_v7 }
  0x58   : > { %1451 = vmatpush.msrb.mxu1 %v521_v4  ;;  %v614_v33 = vsub.f32 1.0, %v613_v32  ;;  %v696_v4 = vperm.slane %v2872_v17, 1 }
  0x59   : > { %921 = vmatpush.msrb.mxu2 %v519_v8 }
  0x5a   : > { %1452 = vmatpush.msrb.mxu1 %v520_v7  ;;  %v615_v35 = vmul.f32 %v2142_v31, %v614_v33  ;;  %v582_v7 = vld [vmem:[#allocation3] sm:$0xff] }
  0x5c   : > { %1453 = vmatpush.msrb.mxu1 %v519_v8  ;;  %v616_v36 = vadd.f32 %v2142_v31, %v615_v35 }
  0x5e   : > { %v2888_v39 = vsel %vm617_vm3, %v2142_v31, %v616_v36 }
  0xcf   : > { %v565_v11 = vpop.f32.mrf.mxu0 }
  0xd0   : > { %v566_v12 = vadd.f32 %v2853_v10, %v565_v11 }
  0xd2   : > { %v605_v13 = vpop.f32.mrf.mxu1 }
  0xd3   : > { %v2856_v14 = vadd.f32 %v605_v13, %v566_v12 }
  0xd5   : > { %665 = vrot.lane.b32.xlu2 %v2856_v14, %s2622_s24  ;;  %727 = vrot.lane.b32.xlu0 %v2856_v14, %s2623_s21  ;;  %v2864_v15 = vmul.f32 %v2856_v14, %v2856_v14  ;;  %v609_v19 = vsel %vm584_vm2, %v2856_v14, 0.0 }
  0xd7   : > { %v621_v16 = vsel %vm584_vm2, %v2864_v15, 0.0 }
  0xd8   : > { %622 = vadd.xlane.f32.xlu1 %v621_v16 }
  0xdd   : > { %734 = vrot.lane.b32.xlu0 %v2864_v15, %s2623_s21 }
  0xe5   : > { %673 = vrot.lane.b32.xlu0 %v2864_v15, %s2622_s24 }
  0xed   : > { %759 = vrot.lane.b32.xlu0 %v757_v18, %s2623_s21  ;;  %v2907_v18 = vperm.slane %v2872_v17, 0 }
  0xfe   : > { %610 = vadd.xlane.f32.xlu2 %v609_v19 }
 0x12f   : > { %v666_v20 = vpop.permute.xlu2 %665 }
 0x130   : > { %v668_v21 = vsel %vm584_vm2, %v666_v20, 0.0  ;;  %v2910_v20 = vperm.slane %v2881_v26, 0 }
 0x131   : > { %669 = vadd.xlane.f32.xlu0 %v668_v21 }
 0x145   : > { %704 = vrot.lane.b32.xlu0 %v702_v38, %s2625_s30 }
 0x147   : > { %v728_v22 = vpop.permute.xlu0 %727 }
 0x148   : > { %v730_v23 = vsel %vm584_vm2, %v728_v22, 0.0 }
 0x149   : > { %731 = vadd.xlane.f32.xlu1 %v730_v23 }
 0x14b   : > { %v623_v34 = vpop.xlane.xlu1 %622 }
 0x14c   : > { %v624_v58 = vmul.f32 %v623_v34, %v2888_v39 }
 0x14f   : > { %v735_v24 = vpop.permute.xlu0 %734 }
 0x150   : > { %v737_v25 = vsel %vm584_vm2, %v735_v24, 0.0 }
 0x151   : > { %738 = vadd.xlane.f32.xlu1 %v737_v25 }
 0x157   : > { %v674_v28 = vpop.permute.xlu0 %673 }
 0x158   : > { %v676_v29 = vsel %vm584_vm2, %v674_v28, 0.0 }
 0x15f   : > { %v2895_v60 = vpop.permute.xlu0 %759 }
 0x16a   : > { %765 = vrot.lane.b32.xlu1 %v763_v27, %s2623_s21 }
 0x171   : > { %v611_v49 = vpop.xlane.xlu2 %610 }
 0x172   : > { %v619_v52 = vmul.f32 %v2888_v39, %v611_v49 }
 0x174   : > { %v625_v55 = vmul.f32 %v619_v52, %v619_v52  ;;  %v628_v16 = vsub.f32 %v2856_v14, %v619_v52 }
 0x176   : > { %v626_v62 = vsub.f32 %v624_v58, %v625_v55 }
 0x178   : > { %v627_v1 = vmax.f32 %v626_v62, 0.0 }
 0x17a   : > { %v629_v2 = vadd.f32 1e-05, %v627_v1 }
 0x17c   : > { %vm636_vm8 = vweird.f32 %v629_v2 }
 0x194   : > { %677 = vadd.xlane.f32.xlu1 %v676_v29 }
 0x1a4   : > { %v670_v28 = vpop.xlane.xlu0 %669 }
 0x1a5   : > { %v671_v31 = vmul.f32 %v670_v28, %v2888_v39 }
 0x1a7   : > { %v680_v34 = vmul.f32 %v671_v31, %v671_v31  ;;  %v683_v55 = vsub.f32 %v2856_v14, %v671_v31 }
 0x1bc   : > { %v732_v37 = vpop.xlane.xlu1 %731 }
 0x1bd   : > { %v733_v40 = vmul.f32 %v732_v37, %v2888_v39 }
 0x1bf   : > { %v741_v42 = vmul.f32 %v733_v40, %v733_v40  ;;  %v744_v56 = vsub.f32 %v2856_v14, %v733_v40 }
 0x1c4   : > { %v739_v41 = vpop.xlane.xlu1 %738 }
 0x1c5   : > { %v740_v43 = vmul.f32 %v739_v41, %v2888_v39 }
 0x1c7   : > { %v742_v44 = vsub.f32 %v740_v43, %v741_v42 }
 0x1c9   : > { %v743_v45 = vmax.f32 %v742_v44, 0.0 }
 0x1cb   : > { %v745_v46 = vadd.f32 1e-05, %v743_v45 }
 0x1cd   : > { %2143 = vrsqrt.f32 %v745_v46  ;;  %vm752_vm5 = vweird.f32 %v745_v46 }
 0x1d3   : > { %v2144_v47 = vpop.eup %2143 }
 0x1d4   : > { %v747_v48 = vmul.f32 %v2144_v47, %v745_v46  ;;  %vm753_vm4 = vweird.f32 %v2144_v47 }
 0x1d5   : > { %vm754_vm6 = vmor %vm752_vm5, %vm753_vm4 }
 0x1d6   : > { %v748_v50 = vmul.f32 %v2144_v47, %v747_v48 }
 0x1d8   : > { %v749_v51 = vmul.f32 0.5, %v748_v50 }
 0x1da   : > { %v750_v53 = vsub.f32 1.5, %v749_v51 }
 0x1dc   : > { %v751_v54 = vmul.f32 %v2144_v47, %v750_v53  ;;  %v2897_v61 = vpop.permute.xlu1 %765 }
 0x1de   : > { %v755_v57 = vsel %vm754_vm6, %v2144_v47, %v751_v54 }
 0x1df   : > { %v756_v59 = vmul.f32 %v755_v57, %v744_v56 }
 0x1e1   : > { %v762_v63 = vmul.f32 %v2895_v60, %v756_v59  ;;  %v2923_v59 = vpop.permute.xlu0 %704 }
 0x1e3   : > { %v768_v0 = vadd.f32 %v2897_v61, %v762_v63 }
 0x1e5   : > { %2145 = vtanh.f32 %v768_v0 }
 0x1e6   : > { %2147 = vrsqrt.f32 %v629_v2 }
 0x1eb   : > { %v2146_v3 = vpop.eup %2145 }
 0x1ec   : > { %837 = vrot.lane.b32.xlu2 %v2146_v3, %s2623_s21  ;;  %v2148_v5 = vpop.eup %2147 }
 0x1ed   : > { %v631_v6 = vmul.f32 %v2148_v5, %v629_v2  ;;  %vm637_vm7 = vweird.f32 %v2148_v5 }
 0x1ee   : > { %vm638_vm9 = vmor %vm636_vm8, %vm637_vm7 }
 0x1ef   : > { %v632_v8 = vmul.f32 %v2148_v5, %v631_v6 }
 0x1f1   : > { %v633_v9 = vmul.f32 0.5, %v632_v8 }
 0x1f3   : > { %v634_v11 = vsub.f32 1.5, %v633_v9 }
 0x1f4   : > { %698 = vrot.lane.b32.xlu2 %v696_v4, %s2625_s30 }
 0x1f5   : > { %v635_v12 = vmul.f32 %v2148_v5, %v634_v11 }
 0x1f7   : > { %v639_v13 = vsel %vm638_vm9, %v2148_v5, %v635_v12 }
 0x1f8   : > { %v640_v19 = vmul.f32 %v639_v13, %v628_v16 }
 0x1fa   : > { %v642_v21 = vmul.f32 %v2907_v18, %v640_v19 }
 0x1fc   : > { %832 = vrot.lane.b32.xlu2 %v582_v7, %s2625_s30  ;;  %v644_v22 = vadd.f32 %v2910_v20, %v642_v21 }
 0x1fe   : > { %v1962_v23 = vmul.f32 -1.442695, %v644_v22 }
 0x200   : > { %2149 = vpow2.f32 %v1962_v23 }
 0x206   : > { %v2150_v24 = vpop.eup %2149 }
 0x207   : > { %v648_v25 = vadd.f32 1.0, %v2150_v24  ;;  %v678_v30 = vpop.xlane.xlu1 %677 }
 0x208   : > { %v679_v33 = vmul.f32 %v678_v30, %v2888_v39 }
 0x209   : > { %2151 = vrcp.f32 %v648_v25  ;;  %v660_v40 = vand.u32 2147483648, %v648_v25  ;;  %vm654_vm11 = vweird.f32 %v648_v25  ;;  %v658_v41 = vand.u32 2147483647, %v648_v25 }
 0x20a   : > { %v681_v36 = vsub.f32 %v679_v33, %v680_v34  ;;  %v806_v33 = vperm.slane %v2881_v26, 3  ;;  %v885_v34 = vperm.slane %v2881_v26, 4 }
 0x20b   : > { %v661_v44 = vor.u32 1.1754944e-38, %v660_v40  ;;  %vm659_vm13 = vcmp.eq.f32.partialorder %v658_v41, 8.507059e+37 }
 0x20c   : > { %v682_v38 = vmax.f32 %v681_v36, 0.0 }
 0x20e   : > { %v684_v43 = vadd.f32 1e-05, %v682_v38 }
 0x20f   : > { %v2152_v27 = vpop.eup %2151 }
 0x210   : > { %v650_v29 = vmul.f32 %v2152_v27, %v648_v25  ;;  %vm655_vm10 = vweird.f32 %v2152_v27  ;;  %2153 = vrsqrt.f32 %v684_v43  ;;  %vm691_vm15 = vweird.f32 %v684_v43 }
 0x211   : > { %vm656_vm12 = vmor %vm654_vm11, %vm655_vm10  ;;  %v800_v25 = vperm.slane %v2872_v17, 3 }
 0x212   : > { %v651_v32 = vsub.f32 1.0, %v650_v29 }
 0x214   : > { %v652_v35 = vmul.f32 %v2152_v27, %v651_v32 }
 0x216   : > { %v653_v37 = vadd.f32 %v2152_v27, %v652_v35  ;;  %v2154_v48 = vpop.eup %2153 }
 0x217   : > { %v686_v49 = vmul.f32 %v2154_v48, %v684_v43  ;;  %vm692_vm14 = vweird.f32 %v2154_v48 }
 0x218   : > { %v657_v42 = vsel %vm656_vm12, %v2152_v27, %v653_v37  ;;  %vm693_vm0 = vmor %vm691_vm15, %vm692_vm14 }
 0x219   : > { %v662_v45 = vsel %vm659_vm13, %v661_v44, %v657_v42  ;;  %v687_v50 = vmul.f32 %v2154_v48, %v686_v49 }
 0x21b   : > { %v688_v51 = vmul.f32 0.5, %v687_v50 }
 0x21d   : > { %v689_v52 = vsub.f32 1.5, %v688_v51 }
 0x21f   : > { %v690_v53 = vmul.f32 %v2154_v48, %v689_v52 }
 0x221   : > { %v694_v54 = vsel %vm693_vm0, %v2154_v48, %v690_v53 }
 0x222   : > { %v695_v57 = vmul.f32 %v694_v54, %v683_v55 }
 0x246   : > { %v838_v46 = vpop.permute.xlu2 %837 }
 0x247   : > { %v840_v47 = vmul.f32 %v838_v46, %v662_v45 }
 0x249   : > { %842 = vrot.lane.b32.xlu2 %v840_v47, %s2625_s30 }
 0x24e   : > { %v2920_v56 = vpop.permute.xlu2 %698 }
 0x24f   : > { %v701_v58 = vmul.f32 %v2920_v56, %v695_v57 }
 0x251   : > { %770 = vrot.lane.b32.xlu2 %v2856_v14, %s2625_s30  ;;  %v707_v62 = vadd.f32 %v2923_v59, %v701_v58 }
 0x253   : > { %v1963_v63 = vmul.f32 -1.442695, %v707_v62 }
 0x255   : > { %2155 = vpow2.f32 %v1963_v63 }
 0x256   : > { %v833_v9 = vpop.permute.xlu2 %832 }
 0x25b   : > { %v2156_v0 = vpop.eup %2155 }
 0x25c   : > { %v711_v1 = vadd.f32 1.0, %v2156_v0 }
 0x25e   : > { %2157 = vrcp.f32 %v711_v1  ;;  %v723_v7 = vand.u32 2147483648, %v711_v1  ;;  %vm717_vm4 = vweird.f32 %v711_v1  ;;  %v721_v8 = vand.u32 2147483647, %v711_v1 }
 0x260   : > { %v724_v12 = vor.u32 1.1754944e-38, %v723_v7  ;;  %vm722_vm6 = vcmp.eq.f32.partialorder %v721_v8, 8.507059e+37 }
 0x264   : > { %v2158_v2 = vpop.eup %2157 }
 0x265   : > { %v713_v3 = vmul.f32 %v2158_v2, %v711_v1  ;;  %vm718_vm3 = vweird.f32 %v2158_v2 }
 0x266   : > { %vm719_vm5 = vmor %vm717_vm4, %vm718_vm3 }
 0x267   : > { %v714_v4 = vsub.f32 1.0, %v713_v3 }
 0x269   : > { %v715_v5 = vmul.f32 %v2158_v2, %v714_v4 }
 0x26b   : > { %v716_v6 = vadd.f32 %v2158_v2, %v715_v5 }
 0x26d   : > { %v720_v11 = vsel %vm719_vm5, %v2158_v2, %v716_v6 }
 0x26e   : > { %v725_v13 = vsel %vm722_vm6, %v724_v12, %v720_v11 }
 0x26f   : > { %v835_v16 = vmul.f32 %v833_v9, %v725_v13 }
 0x2a3   : > { %v843_v19 = vpop.permute.xlu2 %842 }
 0x2a4   : > { %v845_v21 = vadd.f32 %v843_v19, %v835_v16 }
 0x2a6   : > { %847 = vrot.lane.b32.xlu1 %v845_v21, %s2622_s24  ;;  %v854_v22 = vmul.f32 %v845_v21, %v845_v21 }
 0x2a8   : > { %856 = vrot.lane.b32.xlu0 %v854_v22, %s2622_s24 }
 0x2ab   : > { %v771_v23 = vpop.permute.xlu2 %770 }
 0x2ac   : > { %v773_v24 = vsel %vm584_vm2, %v771_v23, 0.0 }
 0x2b0   : > { %777 = vrot.lane.b32.xlu0 %v2864_v15, %s2625_s30  ;;  %v879_v15 = vperm.slane %v2872_v17, 4 }
 0x2d0   : > { %774 = vadd.xlane.f32.xlu1 %v773_v24 }
 0x2e9   : > { %802 = vrot.lane.b32.xlu1 %v800_v25, %s2622_s24 }
 0x318   : > { %v848_v31 = vpop.permute.xlu1 %847 }
 0x319   : > { %v850_v32 = vsel %vm584_vm2, %v848_v31, 0.0 }
 0x31a   : > { %v857_v27 = vpop.permute.xlu0 %856 }
 0x31b   : > { %v859_v28 = vsel %vm584_vm2, %v857_v27, 0.0  ;;  %v528_v27 = vld [vmem:[%s2826_s6 + $0x18] sm:$0xff] }
 0x31c   : > { %860 = vadd.xlane.f32.xlu0 %v859_v28  ;;  %1960 = vmatmul.msk.f32.vlgmr.msra.gmra.mxu2 %vm535_vm1, %v528_v27 }
 0x322   : > { %v778_v29 = vpop.permute.xlu0 %777 }
 0x323   : > { %v780_v30 = vsel %vm584_vm2, %v778_v29, 0.0 }
 0x324   : > { %781 = vadd.xlane.f32.xlu2 %v780_v30 }
 0x32c   : > { %851 = vadd.xlane.f32.xlu2 %v850_v32 }
 0x330   : > { %881 = vrot.lane.b32.xlu0 %v879_v15, %s2625_s30 }
 0x338   : > { %808 = vrot.lane.b32.xlu0 %v806_v33, %s2622_s24 }
 0x343   : > { %v775_v47 = vpop.xlane.xlu1 %774 }
 0x344   : > { %887 = vrot.lane.b32.xlu2 %v885_v34, %s2625_s30  ;;  %v776_v49 = vmul.f32 %v775_v47, %v2888_v39 }
 0x346   : > { %v784_v54 = vmul.f32 %v776_v49, %v776_v49  ;;  %v787_v12 = vsub.f32 %v2856_v14, %v776_v49 }
 0x35b   : > { %v2957_v16 = vpop.permute.xlu1 %802 }
 0x38f   : > { %v861_v36 = vpop.xlane.xlu0 %860 }
 0x390   : > { %v862_v40 = vmul.f32 %v861_v36, %v2888_v39 }
 0x397   : > { %v782_v35 = vpop.xlane.xlu2 %781 }
 0x398   : > { %v783_v51 = vmul.f32 %v782_v35, %v2888_v39 }
 0x39a   : > { %v785_v62 = vsub.f32 %v783_v51, %v784_v54 }
 0x39c   : > { %v786_v1 = vmax.f32 %v785_v62, 0.0 }
 0x39e   : > { %v788_v2 = vadd.f32 1e-05, %v786_v1 }
 0x39f   : > { %v852_v37 = vpop.xlane.xlu2 %851 }
 0x3a0   : > { %v853_v38 = vmul.f32 %v852_v37, %v2888_v39  ;;  %vm795_vm11 = vweird.f32 %v788_v2 }
 0x3a2   : > { %v863_v41 = vmul.f32 %v853_v38, %v853_v38  ;;  %v866_v52 = vsub.f32 %v845_v21, %v853_v38  ;;  %v2946_v57 = vpop.permute.xlu0 %881  ;;  %v526_v38 = vld [vmem:[%s2826_s6 + $0x8] sm:$0xff] }
 0x3a3   : > { %1958 = vmatmul.msk.f32.gmra.mxu0 %vm535_vm1, %v526_v38 }
 0x3a4   : > { %v864_v42 = vsub.f32 %v862_v40, %v863_v41  ;;  %v2971_v41 = vpop.f32.mrf.mxu2 }
 0x3a6   : > { %v865_v17 = vmax.f32 %v864_v42, 0.0 }
 0x3a7   : > { %v2948_v58 = vpop.permute.xlu2 %887 }
 0x3a8   : > { %v867_v43 = vadd.f32 1e-05, %v865_v17 }
 0x3aa   : > { %2159 = vrsqrt.f32 %v867_v43  ;;  %vm874_vm8 = vweird.f32 %v867_v43  ;;  %v2960_v21 = vpop.permute.xlu0 %808 }
 0x3b0   : > { %v2160_v44 = vpop.eup %2159 }
 0x3b1   : > { %v869_v45 = vmul.f32 %v2160_v44, %v867_v43  ;;  %vm875_vm7 = vweird.f32 %v2160_v44 }
 0x3b2   : > { %vm876_vm9 = vmor %vm874_vm8, %vm875_vm7 }
 0x3b3   : > { %v870_v46 = vmul.f32 %v2160_v44, %v869_v45 }
 0x3b5   : > { %v871_v48 = vmul.f32 0.5, %v870_v46 }
 0x3b7   : > { %v872_v26 = vsub.f32 1.5, %v871_v48 }
 0x3b9   : > { %v873_v50 = vmul.f32 %v2160_v44, %v872_v26 }
 0x3bb   : > { %v877_v53 = vsel %vm876_vm9, %v2160_v44, %v873_v50 }
 0x3bc   : > { %v878_v55 = vmul.f32 %v877_v53, %v866_v52 }
 0x3be   : > { %v884_v63 = vmul.f32 %v2946_v57, %v878_v55 }
 0x3c0   : > { %v2952_v0 = vadd.f32 %v2948_v58, %v884_v63 }
 0x3c2   : > { %2161 = vtanh.f32 %v2952_v0 }
 0x3c3   : > { %2163 = vrsqrt.f32 %v788_v2 }
 0x3c8   : > { %v2162_v3 = vpop.eup %2161 }
 0x3c9   : > { %893 = vrot.lane.b32.xlu2 %v2162_v3, %s2623_s21  ;;  %v2164_v4 = vpop.eup %2163 }
 0x3ca   : > { %v790_v5 = vmul.f32 %v2164_v4, %v788_v2  ;;  %vm796_vm10 = vweird.f32 %v2164_v4 }
 0x3cb   : > { %vm797_vm12 = vmor %vm795_vm11, %vm796_vm10 }
 0x3cc   : > { %v791_v6 = vmul.f32 %v2164_v4, %v790_v5 }
 0x3ce   : > { %v792_v7 = vmul.f32 0.5, %v791_v6 }
 0x3d0   : > { %v793_v8 = vsub.f32 1.5, %v792_v7 }
 0x3d2   : > { %v794_v9 = vmul.f32 %v2164_v4, %v793_v8 }
 0x3d4   : > { %v798_v11 = vsel %vm797_vm12, %v2164_v4, %v794_v9 }
 0x3d5   : > { %v799_v13 = vmul.f32 %v798_v11, %v787_v12 }
 0x3d7   : > { %v805_v19 = vmul.f32 %v2957_v16, %v799_v13 }
 0x3d9   : > { %v811_v22 = vadd.f32 %v2960_v21, %v805_v19 }
 0x3db   : > { %v1964_v23 = vmul.f32 -1.442695, %v811_v22 }
 0x3dd   : > { %2165 = vpow2.f32 %v1964_v23 }
 0x3e3   : > { %v2166_v24 = vpop.eup %2165 }
 0x3e4   : > { %v815_v25 = vadd.f32 1.0, %v2166_v24 }
 0x3e6   : > { %2167 = vrcp.f32 %v815_v25  ;;  %v827_v32 = vand.u32 2147483648, %v815_v25  ;;  %vm821_vm14 = vweird.f32 %v815_v25  ;;  %v825_v15 = vand.u32 2147483647, %v815_v25 }
 0x3e8   : > { %v828_v34 = vor.u32 1.1754944e-38, %v827_v32  ;;  %vm826_vm0 = vcmp.eq.f32.partialorder %v825_v15, 8.507059e+37 }
 0x3ec   : > { %v2168_v28 = vpop.eup %2167 }
 0x3ed   : > { %v817_v29 = vmul.f32 %v2168_v28, %v815_v25  ;;  %vm822_vm13 = vweird.f32 %v2168_v28 }
 0x3ee   : > { %vm823_vm15 = vmor %vm821_vm14, %vm822_vm13 }
 0x3ef   : > { %v818_v14 = vsub.f32 1.0, %v817_v29 }
 0x3f1   : > { %v819_v30 = vmul.f32 %v2168_v28, %v818_v14 }
 0x3f3   : > { %v820_v31 = vadd.f32 %v2168_v28, %v819_v30 }
 0x3f5   : > { %v824_v33 = vsel %vm823_vm15, %v2168_v28, %v820_v31 }
 0x3f6   : > { %v829_v35 = vsel %vm826_vm0, %v828_v34, %v824_v33 }
 0x420   : > { %v568_v42 = vpop.f32.mrf.mxu0 }
 0x421   : > { %v569_v17 = vadd.f32 %v2853_v10, %v568_v42 }
 0x423   : > { %v894_v36 = vpop.permute.xlu2 %893 }
 0x424   : > { %v896_v37 = vmul.f32 %v894_v36, %v829_v35 }
 0x426   : > { %898 = vrot.lane.b32.xlu0 %v896_v37, %s2625_s30 }
 0x498   : > { %v899_v40 = vpop.permute.xlu0 %898 }
 0x499   : > { %901 = vst.msk [vmem:[%s2844_s4] sm:$0xff] %vm584_vm2, %v899_v40  ;;  %1965 = vmatmul.msk.f32.vlgmr.msrb.gmra.mxu2 %vm584_vm2, %v899_v40 }
 0x51c   : > { %v923_v43 = vpop.f32.mrf.mxu2 }
 0x51d   : > { %v2974_v44 = vadd.f32 %v923_v43, %v569_v17 }
 0x51f   : > { %1026 = vrot.lane.b32.xlu1 %v2974_v44, %s2623_s21  ;;  %v2980_v45 = vmul.f32 %v2974_v44, %v2974_v44  ;;  %v927_v46 = vsel %vm584_vm2, %v2974_v44, 0.0 }
 0x521   : > { %1033 = vrot.lane.b32.xlu2 %v2980_v45, %s2623_s21  ;;  %v932_v48 = vsel %vm584_vm2, %v2980_v45, 0.0 }
 0x529   : > { %974 = vrot.lane.b32.xlu2 %v2974_v44, %s2622_s24 }
 0x552   : > { %928 = vadd.xlane.f32.xlu2 %v927_v46 }
 0x57b   : > { %v1034_v10 = vpop.permute.xlu2 %1033 }
 0x57c   : > { %v1036_v47 = vsel %vm584_vm2, %v1034_v10, 0.0 }
 0x57d   : > { %1037 = vadd.xlane.f32.xlu1 %v1036_v47 }
 0x583   : > { %v975_v26 = vpop.permute.xlu2 %974 }
 0x584   : > { %v977_v49 = vsel %vm584_vm2, %v975_v26, 0.0 }
 0x585   : > { %933 = vadd.xlane.f32.xlu1 %v932_v48 }
 0x58d   : > { %978 = vadd.xlane.f32.xlu1 %v977_v49 }
 0x591   : > { %v1027_v50 = vpop.permute.xlu1 %1026 }
 0x592   : > { %v1029_v51 = vsel %vm584_vm2, %v1027_v50, 0.0 }
 0x593   : > { %1030 = vadd.xlane.f32.xlu0 %v1029_v51 }
 0x5a7   : > { %982 = vrot.lane.b32.xlu0 %v2980_v45, %s2622_s24 }
 0x5c5   : > { %v929_v25 = vpop.xlane.xlu2 %928 }
 0x5c6   : > { %v930_v28 = vmul.f32 %v929_v25, %v2888_v39 }
 0x5c8   : > { %v936_v14 = vmul.f32 %v930_v28, %v930_v28  ;;  %v939_v40 = vsub.f32 %v2974_v44, %v930_v28 }
 0x5f0   : > { %v1038_v52 = vpop.xlane.xlu1 %1037 }
 0x5f1   : > { %v1039_v55 = vmul.f32 %v1038_v52, %v2888_v39 }
 0x5f8   : > { %v934_v27 = vpop.xlane.xlu1 %933 }
 0x5f9   : > { %v935_v29 = vmul.f32 %v934_v27, %v2888_v39 }
 0x5fb   : > { %v937_v30 = vsub.f32 %v935_v29, %v936_v14 }
 0x5fd   : > { %v938_v31 = vmax.f32 %v937_v30, 0.0 }
 0x5ff   : > { %v940_v32 = vadd.f32 1e-05, %v938_v31 }
 0x600   : > { %v979_v51 = vpop.xlane.xlu1 %978 }
 0x601   : > { %vm947_vm7 = vweird.f32 %v940_v32 }
 0x606   : > { %v1031_v53 = vpop.xlane.xlu0 %1030 }
 0x607   : > { %v1032_v54 = vmul.f32 %v1031_v53, %v2888_v39 }
 0x609   : > { %v1040_v62 = vmul.f32 %v1032_v54, %v1032_v54  ;;  %v1043_v12 = vsub.f32 %v2974_v44, %v1032_v54 }
 0x60b   : > { %v1041_v63 = vsub.f32 %v1039_v55, %v1040_v62 }
 0x60d   : > { %v1042_v1 = vmax.f32 %v1041_v63, 0.0 }
 0x60f   : > { %v1044_v2 = vadd.f32 1e-05, %v1042_v1 }
 0x611   : > { %2169 = vrsqrt.f32 %v1044_v2  ;;  %vm1051_vm4 = vweird.f32 %v1044_v2 }
 0x617   : > { %v2170_v3 = vpop.eup %2169 }
 0x618   : > { %v1046_v4 = vmul.f32 %v2170_v3, %v1044_v2  ;;  %vm1052_vm3 = vweird.f32 %v2170_v3 }
 0x619   : > { %v983_v5 = vpop.permute.xlu0 %982  ;;  %vm1053_vm5 = vmor %vm1051_vm4, %vm1052_vm3 }
 0x61a   : > { %v1047_v6 = vmul.f32 %v2170_v3, %v1046_v4  ;;  %v985_v7 = vsel %vm584_vm2, %v983_v5, 0.0  ;;  %v980_v4 = vmul.f32 %v979_v51, %v2888_v39 }
 0x61b   : > { %986 = vadd.xlane.f32.xlu2 %v985_v7 }
 0x61c   : > { %v1048_v8 = vmul.f32 0.5, %v1047_v6  ;;  %v989_v6 = vmul.f32 %v980_v4, %v980_v4  ;;  %v992_v25 = vsub.f32 %v2974_v44, %v980_v4 }
 0x61e   : > { %v1049_v9 = vsub.f32 1.5, %v1048_v8 }
 0x620   : > { %v1050_v11 = vmul.f32 %v2170_v3, %v1049_v9 }
 0x622   : > { %v1054_v13 = vsel %vm1053_vm5, %v2170_v3, %v1050_v11 }
 0x623   : > { %v1055_v19 = vmul.f32 %v1054_v13, %v1043_v12 }
 0x625   : > { %v1056_v22 = vmul.f32 %v1055_v19, %v2895_v60 }
 0x627   : > { %v1057_v23 = vadd.f32 %v1056_v22, %v2897_v61 }
 0x629   : > { %2171 = vtanh.f32 %v1057_v23 }
 0x62a   : > { %2173 = vrsqrt.f32 %v940_v32 }
 0x62f   : > { %v2172_v24 = vpop.eup %2171 }
 0x630   : > { %1112 = vrot.lane.b32.xlu1 %v2172_v24, %s2623_s21  ;;  %v2174_v15 = vpop.eup %2173 }
 0x631   : > { %v942_v33 = vmul.f32 %v2174_v15, %v940_v32  ;;  %vm948_vm6 = vweird.f32 %v2174_v15 }
 0x632   : > { %vm949_vm8 = vmor %vm947_vm7, %vm948_vm6 }
 0x633   : > { %v943_v34 = vmul.f32 %v2174_v15, %v942_v33 }
 0x635   : > { %v944_v35 = vmul.f32 0.5, %v943_v34 }
 0x637   : > { %v945_v36 = vsub.f32 1.5, %v944_v35 }
 0x639   : > { %v946_v37 = vmul.f32 %v2174_v15, %v945_v36 }
 0x63b   : > { %v950_v38 = vsel %vm949_vm8, %v2174_v15, %v946_v37 }
 0x63c   : > { %v951_v42 = vmul.f32 %v950_v38, %v939_v40 }
 0x63e   : > { %v952_v17 = vmul.f32 %v951_v42, %v2907_v18 }
 0x640   : > { %v953_v43 = vadd.f32 %v952_v17, %v2910_v20 }
 0x642   : > { %v1966_v46 = vmul.f32 -1.442695, %v953_v43 }
 0x644   : > { %2175 = vpow2.f32 %v1966_v46 }
 0x64a   : > { %v2176_v10 = vpop.eup %2175 }
 0x64b   : > { %v957_v47 = vadd.f32 1.0, %v2176_v10 }
 0x64d   : > { %2177 = vrcp.f32 %v957_v47  ;;  %v969_v53 = vand.u32 2147483648, %v957_v47  ;;  %vm963_vm10 = vweird.f32 %v957_v47  ;;  %v967_v54 = vand.u32 2147483647, %v957_v47 }
 0x64f   : > { %v970_v62 = vor.u32 1.1754944e-38, %v969_v53  ;;  %vm968_vm12 = vcmp.eq.f32.partialorder %v967_v54, 8.507059e+37 }
 0x653   : > { %v2178_v48 = vpop.eup %2177 }
 0x654   : > { %v959_v26 = vmul.f32 %v2178_v48, %v957_v47  ;;  %vm964_vm9 = vweird.f32 %v2178_v48 }
 0x655   : > { %vm965_vm11 = vmor %vm963_vm10, %vm964_vm9 }
 0x656   : > { %v960_v49 = vsub.f32 1.0, %v959_v26 }
 0x658   : > { %v961_v50 = vmul.f32 %v2178_v48, %v960_v49 }
 0x65a   : > { %v962_v52 = vadd.f32 %v2178_v48, %v961_v50 }
 0x65c   : > { %v966_v55 = vsel %vm965_vm11, %v2178_v48, %v962_v52 }
 0x65d   : > { %v971_v1 = vsel %vm968_vm12, %v970_v62, %v966_v55 }
 0x68e   : > { %v987_v3 = vpop.xlane.xlu2 %986 }
 0x68f   : > { %v988_v5 = vmul.f32 %v987_v3, %v2888_v39 }
 0x691   : > { %v990_v7 = vsub.f32 %v988_v5, %v989_v6 }
 0x693   : > { %v991_v8 = vmax.f32 %v990_v7, 0.0 }
 0x695   : > { %v993_v9 = vadd.f32 1e-05, %v991_v8 }
 0x697   : > { %2179 = vrsqrt.f32 %v993_v9  ;;  %vm1000_vm14 = vweird.f32 %v993_v9 }
 0x69d   : > { %v2180_v11 = vpop.eup %2179 }
 0x69e   : > { %v995_v12 = vmul.f32 %v2180_v11, %v993_v9  ;;  %vm1001_vm13 = vweird.f32 %v2180_v11 }
 0x69f   : > { %vm1002_vm15 = vmor %vm1000_vm14, %vm1001_vm13 }
 0x6a0   : > { %v996_v13 = vmul.f32 %v2180_v11, %v995_v12 }
 0x6a2   : > { %v1113_v63 = vpop.permute.xlu1 %1112  ;;  %v997_v19 = vmul.f32 0.5, %v996_v13 }
 0x6a3   : > { %v1115_v2 = vmul.f32 %v1113_v63, %v971_v1 }
 0x6a4   : > { %v998_v22 = vsub.f32 1.5, %v997_v19 }
 0x6a5   : > { %1117 = vrot.lane.b32.xlu0 %v1115_v2, %s2625_s30 }
 0x6a6   : > { %v999_v23 = vmul.f32 %v2180_v11, %v998_v22 }
 0x6a8   : > { %v1003_v24 = vsel %vm1002_vm15, %v2180_v11, %v999_v23 }
 0x6a9   : > { %v1004_v27 = vmul.f32 %v1003_v24, %v992_v25 }
 0x6ab   : > { %v1005_v28 = vmul.f32 %v1004_v27, %v2920_v56 }
 0x6ad   : > { %v1006_v29 = vadd.f32 %v1005_v28, %v2923_v59 }
 0x6af   : > { %v1967_v14 = vmul.f32 -1.442695, %v1006_v29 }
 0x6b1   : > { %2181 = vpow2.f32 %v1967_v14 }
 0x6b7   : > { %v2182_v30 = vpop.eup %2181 }
 0x6b8   : > { %v1010_v31 = vadd.f32 1.0, %v2182_v30 }
 0x6ba   : > { %2183 = vrcp.f32 %v1010_v31  ;;  %v1022_v36 = vand.u32 2147483648, %v1010_v31  ;;  %vm1016_vm3 = vweird.f32 %v1010_v31  ;;  %v1020_v37 = vand.u32 2147483647, %v1010_v31 }
 0x6bc   : > { %v1023_v40 = vor.u32 1.1754944e-38, %v1022_v36  ;;  %vm1021_vm5 = vcmp.eq.f32.partialorder %v1020_v37, 8.507059e+37 }
 0x6c0   : > { %v2184_v32 = vpop.eup %2183 }
 0x6c1   : > { %v1012_v15 = vmul.f32 %v2184_v32, %v1010_v31  ;;  %vm1017_vm0 = vweird.f32 %v2184_v32 }
 0x6c2   : > { %vm1018_vm4 = vmor %vm1016_vm3, %vm1017_vm0 }
 0x6c3   : > { %v1013_v33 = vsub.f32 1.0, %v1012_v15 }
 0x6c5   : > { %v1014_v34 = vmul.f32 %v2184_v32, %v1013_v33 }
 0x6c7   : > { %v1015_v35 = vadd.f32 %v2184_v32, %v1014_v34 }
 0x6c9   : > { %v1019_v38 = vsel %vm1018_vm4, %v2184_v32, %v1015_v35 }
 0x6ca   : > { %v1024_v42 = vsel %vm1021_vm5, %v1023_v40, %v1019_v38 }
 0x6cb   : > { %v1110_v17 = vmul.f32 %v1024_v42, %v2952_v0 }
 0x717   : > { %v1118_v43 = vpop.permute.xlu0 %1117 }
 0x718   : > { %v1120_v46 = vadd.f32 %v1118_v43, %v1110_v17 }
 0x71a   : > { %1122 = vrot.lane.b32.xlu2 %v1120_v46, %s2622_s24  ;;  %v1129_v10 = vmul.f32 %v1120_v46, %v1120_v46 }
 0x71c   : > { %1131 = vrot.lane.b32.xlu0 %v1129_v10, %s2622_s24 }
 0x724   : > { %1059 = vrot.lane.b32.xlu0 %v2974_v44, %s2625_s30 }
 0x72c   : > { %1066 = vrot.lane.b32.xlu0 %v2980_v45, %s2625_s30 }
 0x774   : > { %v1123_v47 = vpop.permute.xlu2 %1122 }
 0x775   : > { %v1125_v48 = vsel %vm584_vm2, %v1123_v47, 0.0 }
 0x776   : > { %1126 = vadd.xlane.f32.xlu1 %v1125_v48 }
 0x78e   : > { %v1132_v26 = vpop.permute.xlu0 %1131 }
 0x78f   : > { %v1134_v0 = vsel %vm584_vm2, %v1132_v26, 0.0 }
 0x790   : > { %1135 = vadd.xlane.f32.xlu2 %v1134_v0 }
 0x796   : > { %v1060_v49 = vpop.permute.xlu0 %1059 }
 0x797   : > { %v1062_v50 = vsel %vm584_vm2, %v1060_v49, 0.0 }
 0x798   : > { %1063 = vadd.xlane.f32.xlu0 %v1062_v50 }
 0x79e   : > { %v1067_v51 = vpop.permute.xlu0 %1066 }
 0x79f   : > { %v1069_v52 = vsel %vm584_vm2, %v1067_v51, 0.0 }
 0x7a0   : > { %1070 = vadd.xlane.f32.xlu1 %v1069_v52 }
 0x7e9   : > { %v1127_v53 = vpop.xlane.xlu1 %1126 }
 0x7ea   : > { %v1128_v54 = vmul.f32 %v1127_v53, %v2888_v39 }
 0x7ec   : > { %v1138_v55 = vmul.f32 %v1128_v54, %v1128_v54  ;;  %v1141_v13 = vsub.f32 %v1120_v46, %v1128_v54 }
 0x803   : > { %v1136_v45 = vpop.xlane.xlu2 %1135 }
 0x804   : > { %v1137_v62 = vmul.f32 %v1136_v45, %v2888_v39  ;;  %v527_v45 = vld [vmem:[%s2826_s6 + $0x10] sm:$0xff] }
 0x805   : > { %1959 = vmatmul.msk.f32.gmra.mxu0 %vm535_vm1, %v527_v45 }
 0x806   : > { %v1139_v63 = vsub.f32 %v1137_v62, %v1138_v55 }
 0x808   : > { %v1140_v1 = vmax.f32 %v1139_v63, 0.0  ;;  %v3050_v63 = vld [vmem:[%s3241_s5] ss:$0 sm:$0xff] }
 0x80a   : > { %v1142_v2 = vadd.f32 1e-05, %v1140_v1 }
 0x80b   : > { %v1064_v7 = vpop.xlane.xlu0 %1063 }
 0x80c   : > { %2185 = vrsqrt.f32 %v1142_v2  ;;  %v1065_v11 = vmul.f32 %v1064_v7, %v2888_v39  ;;  %vm1149_vm7 = vweird.f32 %v1142_v2 }
 0x80e   : > { %v1073_v24 = vmul.f32 %v1065_v11, %v1065_v11  ;;  %v1076_v37 = vsub.f32 %v2974_v44, %v1065_v11 }
 0x812   : > { %v2186_v3 = vpop.eup %2185 }
 0x813   : > { %v1144_v4 = vmul.f32 %v2186_v3, %v1142_v2  ;;  %vm1150_vm6 = vweird.f32 %v2186_v3  ;;  %v1071_v9 = vpop.xlane.xlu1 %1070 }
 0x814   : > { %vm1151_vm8 = vmor %vm1149_vm7, %vm1150_vm6  ;;  %v1072_v19 = vmul.f32 %v1071_v9, %v2888_v39 }
 0x815   : > { %v1145_v5 = vmul.f32 %v2186_v3, %v1144_v4 }
 0x816   : > { %v1074_v27 = vsub.f32 %v1072_v19, %v1073_v24 }
 0x817   : > { %v1146_v6 = vmul.f32 0.5, %v1145_v5 }
 0x818   : > { %v1075_v29 = vmax.f32 %v1074_v27, 0.0 }
 0x819   : > { %v1147_v8 = vsub.f32 1.5, %v1146_v6 }
 0x81a   : > { %v1077_v14 = vadd.f32 1e-05, %v1075_v29 }
 0x81b   : > { %v1148_v12 = vmul.f32 %v2186_v3, %v1147_v8 }
 0x81c   : > { %vm1084_vm10 = vweird.f32 %v1077_v14 }
 0x81d   : > { %v1152_v22 = vsel %vm1151_vm8, %v2186_v3, %v1148_v12 }
 0x81e   : > { %v1153_v23 = vmul.f32 %v1152_v22, %v1141_v13 }
 0x820   : > { %v1154_v25 = vmul.f32 %v1153_v23, %v2946_v57 }
 0x822   : > { %v3030_v28 = vadd.f32 %v1154_v25, %v2948_v58 }
 0x824   : > { %2187 = vtanh.f32 %v3030_v28 }
 0x825   : > { %2189 = vrsqrt.f32 %v1077_v14 }
 0x82a   : > { %v2188_v30 = vpop.eup %2187 }
 0x82b   : > { %1158 = vrot.lane.b32.xlu2 %v2188_v30, %s2623_s21  ;;  %v2190_v31 = vpop.eup %2189 }
 0x82c   : > { %v1079_v32 = vmul.f32 %v2190_v31, %v1077_v14  ;;  %vm1085_vm9 = vweird.f32 %v2190_v31 }
 0x82d   : > { %vm1086_vm11 = vmor %vm1084_vm10, %vm1085_vm9 }
 0x82e   : > { %v1080_v15 = vmul.f32 %v2190_v31, %v1079_v32 }
 0x830   : > { %v1081_v33 = vmul.f32 0.5, %v1080_v15 }
 0x832   : > { %v1082_v34 = vsub.f32 1.5, %v1081_v33 }
 0x834   : > { %v1083_v35 = vmul.f32 %v2190_v31, %v1082_v34 }
 0x836   : > { %v1087_v36 = vsel %vm1086_vm11, %v2190_v31, %v1083_v35 }
 0x837   : > { %v1088_v38 = vmul.f32 %v1087_v36, %v1076_v37 }
 0x839   : > { %v1089_v40 = vmul.f32 %v1088_v38, %v2957_v16 }
 0x83b   : > { %v1090_v42 = vadd.f32 %v1089_v40, %v2960_v21 }
 0x83d   : > { %v1968_v17 = vmul.f32 -1.442695, %v1090_v42 }
 0x83f   : > { %2191 = vpow2.f32 %v1968_v17 }
 0x845   : > { %v2192_v43 = vpop.eup %2191 }
 0x846   : > { %v1094_v46 = vadd.f32 1.0, %v2192_v43 }
 0x848   : > { %2193 = vrcp.f32 %v1094_v46  ;;  %v1106_v49 = vand.u32 2147483648, %v1094_v46  ;;  %vm1100_vm13 = vweird.f32 %v1094_v46  ;;  %v1104_v44 = vand.u32 2147483647, %v1094_v46 }
 0x84a   : > { %v1107_v51 = vor.u32 1.1754944e-38, %v1106_v49  ;;  %vm1105_vm15 = vcmp.eq.f32.partialorder %v1104_v44, 8.507059e+37 }
 0x84e   : > { %v2194_v10 = vpop.eup %2193 }
 0x84f   : > { %v1096_v47 = vmul.f32 %v2194_v10, %v1094_v46  ;;  %vm1101_vm12 = vweird.f32 %v2194_v10 }
 0x850   : > { %vm1102_vm14 = vmor %vm1100_vm13, %vm1101_vm12 }
 0x851   : > { %v1097_v48 = vsub.f32 1.0, %v1096_v47 }
 0x853   : > { %v1098_v26 = vmul.f32 %v2194_v10, %v1097_v48 }
 0x855   : > { %v1099_v0 = vadd.f32 %v2194_v10, %v1098_v26 }
 0x857   : > { %v1103_v50 = vsel %vm1102_vm14, %v2194_v10, %v1099_v0 }
 0x858   : > { %v1108_v53 = vsel %vm1105_vm15, %v1107_v51, %v1103_v50 }
 0x882   : > { %v571_v62 = vpop.f32.mrf.mxu0 }
 0x883   : > { %v572_v1 = vadd.f32 %v3050_v63, %v571_v62 }
 0x885   : > { %v1159_v52 = vpop.permute.xlu2 %1158 }
 0x886   : > { %v1161_v54 = vmul.f32 %v1159_v52, %v1108_v53 }
 0x888   : > { %1163 = vrot.lane.b32.xlu0 %v1161_v54, %s2625_s30 }
 0x8fa   : > { %v3040_v55 = vpop.permute.xlu0 %1163 }
 0x8fb   : > { %1969 = vst.msk [vmem:[%s2844_s4 + $0x8] sm:$0xff] %vm584_vm2, %v3040_v55  ;;  %1970 = vmatmul.msk.f32.vlgmr.msra.gmra.mxu3 %vm584_vm2, %v3040_v55 }
 0x97e   : > { %v1189_v2 = vpop.f32.mrf.mxu3 }
 0x97f   : > { %v3053_v3 = vadd.f32 %v1189_v2, %v572_v1 }
 0x981   : > { %1292 = vrot.lane.b32.xlu1 %v3053_v3, %s2623_s21  ;;  %v1197_v4 = vmul.f32 %v3053_v3, %v3053_v3  ;;  %v1193_v5 = vsel %vm584_vm2, %v3053_v3, 0.0 }
 0x983   : > { %1299 = vrot.lane.b32.xlu2 %v1197_v4, %s2623_s21  ;;  %v1198_v8 = vsel %vm584_vm2, %v1197_v4, 0.0 }
 0x989   : > { %1240 = vrot.lane.b32.xlu1 %v3053_v3, %s2622_s24 }
 0x9b3   : > { %1194 = vadd.xlane.f32.xlu1 %v1193_v5 }
 0x9dd   : > { %v1300_v6 = vpop.permute.xlu2 %1299 }
 0x9de   : > { %v1302_v7 = vsel %vm584_vm2, %v1300_v6, 0.0 }
 0x9df   : > { %1303 = vadd.xlane.f32.xlu2 %v1302_v7 }
 0x9e7   : > { %1199 = vadd.xlane.f32.xlu2 %v1198_v8 }
 0x9f3   : > { %v1293_v9 = vpop.permute.xlu1 %1292 }
 0x9f4   : > { %v1295_v11 = vsel %vm584_vm2, %v1293_v9, 0.0 }
 0x9f5   : > { %1296 = vadd.xlane.f32.xlu0 %v1295_v11 }
 0x9fb   : > { %v1241_v12 = vpop.permute.xlu1 %1240 }
 0x9fc   : > { %v1243_v13 = vsel %vm584_vm2, %v1241_v12, 0.0 }
 0x9fd   : > { %1244 = vadd.xlane.f32.xlu2 %v1243_v13 }
 0xa09   : > { %1248 = vrot.lane.b32.xlu0 %v1197_v4, %s2622_s24 }
 0xa26   : > { %v1195_v34 = vpop.xlane.xlu1 %1194 }
 0xa27   : > { %v1196_v38 = vmul.f32 %v1195_v34, %v2888_v39 }
 0xa29   : > { %v1202_v46 = vmul.f32 %v1196_v38, %v1196_v38  ;;  %v1205_v1 = vsub.f32 %v3053_v3, %v1196_v38 }
 0xa52   : > { %v1304_v19 = vpop.xlane.xlu2 %1303 }
 0xa53   : > { %v1305_v24 = vmul.f32 %v1304_v19, %v2888_v39 }
 0xa5a   : > { %v1200_v36 = vpop.xlane.xlu2 %1199 }
 0xa5b   : > { %v1201_v42 = vmul.f32 %v1200_v36, %v2888_v39 }
 0xa5d   : > { %v1203_v47 = vsub.f32 %v1201_v42, %v1202_v46 }
 0xa5f   : > { %v1204_v0 = vmax.f32 %v1203_v47, 0.0 }
 0xa61   : > { %v1206_v49 = vadd.f32 1e-05, %v1204_v0 }
 0xa63   : > { %vm1213_vm5 = vweird.f32 %v1206_v49 }
 0xa68   : > { %v1297_v22 = vpop.xlane.xlu0 %1296 }
 0xa69   : > { %v1298_v23 = vmul.f32 %v1297_v22, %v2888_v39 }
 0xa6b   : > { %v1306_v25 = vmul.f32 %v1298_v23, %v1298_v23  ;;  %v1309_v17 = vsub.f32 %v3053_v3, %v1298_v23 }
 0xa6d   : > { %v1307_v27 = vsub.f32 %v1305_v24, %v1306_v25 }
 0xa6f   : > { %v1308_v29 = vmax.f32 %v1307_v27, 0.0 }
 0xa70   : > { %v1245_v19 = vpop.xlane.xlu2 %1244 }
 0xa71   : > { %v1310_v14 = vadd.f32 1e-05, %v1308_v29 }
 0xa73   : > { %2195 = vrsqrt.f32 %v1310_v14  ;;  %vm1317_vm0 = vweird.f32 %v1310_v14 }
 0xa79   : > { %v2196_v30 = vpop.eup %2195 }
 0xa7a   : > { %v1312_v31 = vmul.f32 %v2196_v30, %v1310_v14  ;;  %vm1318_vm1 = vweird.f32 %v2196_v30 }
 0xa7b   : > { %v1249_v32 = vpop.permute.xlu0 %1248  ;;  %vm1319_vm3 = vmor %vm1317_vm0, %vm1318_vm1 }
 0xa7c   : > { %v1313_v15 = vmul.f32 %v2196_v30, %v1312_v31  ;;  %v1251_v33 = vsel %vm584_vm2, %v1249_v32, 0.0  ;;  %v1246_v32 = vmul.f32 %v1245_v19, %v2888_v39 }
 0xa7d   : > { %1252 = vadd.xlane.f32.xlu1 %v1251_v33 }
 0xa7e   : > { %v1314_v35 = vmul.f32 0.5, %v1313_v15  ;;  %v1255_v33 = vmul.f32 %v1246_v32, %v1246_v32 }
 0xa80   : > { %v1315_v37 = vsub.f32 1.5, %v1314_v35 }
 0xa82   : > { %v1316_v40 = vmul.f32 %v2196_v30, %v1315_v37 }
 0xa84   : > { %v1320_v43 = vsel %vm1319_vm3, %v2196_v30, %v1316_v40 }
 0xa85   : > { %v1321_v10 = vmul.f32 %v1320_v43, %v1309_v17 }
 0xa87   : > { %v1322_v48 = vmul.f32 %v1321_v10, %v2895_v60  ;;  %v1258_v10 = vsub.f32 %v3053_v3, %v1246_v32 }
 0xa89   : > { %v1323_v26 = vadd.f32 %v1322_v48, %v2897_v61 }
 0xa8b   : > { %2197 = vtanh.f32 %v1323_v26 }
 0xa8c   : > { %2199 = vrsqrt.f32 %v1206_v49 }
 0xa91   : > { %v2198_v44 = vpop.eup %2197 }
 0xa92   : > { %1378 = vrot.lane.b32.xlu2 %v2198_v44, %s2623_s21  ;;  %v2200_v50 = vpop.eup %2199 }
 0xa93   : > { %v1208_v51 = vmul.f32 %v2200_v50, %v1206_v49  ;;  %vm1214_vm4 = vweird.f32 %v2200_v50 }
 0xa94   : > { %vm1215_vm6 = vmor %vm1213_vm5, %vm1214_vm4 }
 0xa95   : > { %v1209_v52 = vmul.f32 %v2200_v50, %v1208_v51 }
 0xa97   : > { %v1210_v53 = vmul.f32 0.5, %v1209_v52 }
 0xa99   : > { %v1211_v54 = vsub.f32 1.5, %v1210_v53 }
 0xa9a   : > { %1332 = vrot.lane.b32.xlu2 %v1197_v4, %s2625_s30 }
 0xa9b   : > { %v1212_v45 = vmul.f32 %v2200_v50, %v1211_v54 }
 0xa9d   : > { %v1216_v62 = vsel %vm1215_vm6, %v2200_v50, %v1212_v45 }
 0xa9e   : > { %v1217_v2 = vmul.f32 %v1216_v62, %v1205_v1 }
 0xaa0   : > { %v1218_v5 = vmul.f32 %v1217_v2, %v2907_v18 }
 0xaa2   : > { %v1219_v6 = vadd.f32 %v1218_v5, %v2910_v20 }
 0xaa4   : > { %v1971_v7 = vmul.f32 -1.442695, %v1219_v6 }
 0xaa6   : > { %2201 = vpow2.f32 %v1971_v7 }
 0xaac   : > { %v2202_v8 = vpop.eup %2201 }
 0xaad   : > { %v1223_v4 = vadd.f32 1.0, %v2202_v8 }
 0xaaf   : > { %2203 = vrcp.f32 %v1223_v4  ;;  %v1235_v23 = vand.u32 2147483648, %v1223_v4  ;;  %vm1229_vm8 = vweird.f32 %v1223_v4  ;;  %v1233_v24 = vand.u32 2147483647, %v1223_v4 }
 0xab1   : > { %v1236_v27 = vor.u32 1.1754944e-38, %v1235_v23  ;;  %vm1234_vm10 = vcmp.eq.f32.partialorder %v1233_v24, 8.507059e+37 }
 0xab5   : > { %v2204_v9 = vpop.eup %2203 }
 0xab6   : > { %v1225_v11 = vmul.f32 %v2204_v9, %v1223_v4  ;;  %vm1230_vm7 = vweird.f32 %v2204_v9 }
 0xab7   : > { %vm1231_vm9 = vmor %vm1229_vm8, %vm1230_vm7 }
 0xab8   : > { %v1226_v12 = vsub.f32 1.0, %v1225_v11 }
 0xaba   : > { %v1227_v13 = vmul.f32 %v2204_v9, %v1226_v12 }
 0xabc   : > { %v1228_v22 = vadd.f32 %v2204_v9, %v1227_v13 }
 0xabe   : > { %v1232_v25 = vsel %vm1231_vm9, %v2204_v9, %v1228_v22 }
 0xabf   : > { %v1237_v14 = vsel %vm1234_vm10, %v1236_v27, %v1232_v25 }
 0xaec   : > { %v1379_v29 = vpop.permute.xlu2 %1378 }
 0xaed   : > { %v1381_v30 = vmul.f32 %v1379_v29, %v1237_v14 }
 0xaef   : > { %1383 = vrot.lane.b32.xlu0 %v1381_v30, %s2625_s30 }
 0xaf0   : > { %v1253_v31 = vpop.xlane.xlu1 %1252 }
 0xaf1   : > { %v1254_v15 = vmul.f32 %v1253_v31, %v2888_v39 }
 0xaf3   : > { %v1256_v34 = vsub.f32 %v1254_v15, %v1255_v33 }
 0xaf4   : > { %v1333_v19 = vpop.permute.xlu2 %1332 }
 0xaf5   : > { %v1257_v35 = vmax.f32 %v1256_v34, 0.0  ;;  %v1335_v22 = vsel %vm584_vm2, %v1333_v19, 0.0 }
 0xaf7   : > { %v1259_v36 = vadd.f32 1e-05, %v1257_v35 }
 0xaf9   : > { %2205 = vrsqrt.f32 %v1259_v36  ;;  %vm1266_vm12 = vweird.f32 %v1259_v36 }
 0xaff   : > { %v2206_v37 = vpop.eup %2205 }
 0xb00   : > { %v1261_v38 = vmul.f32 %v2206_v37, %v1259_v36  ;;  %vm1267_vm11 = vweird.f32 %v2206_v37 }
 0xb01   : > { %vm1268_vm13 = vmor %vm1266_vm12, %vm1267_vm11 }
 0xb02   : > { %v1262_v40 = vmul.f32 %v2206_v37, %v1261_v38 }
 0xb04   : > { %v1263_v42 = vmul.f32 0.5, %v1262_v40 }
 0xb06   : > { %v1264_v17 = vsub.f32 1.5, %v1263_v42 }
 0xb08   : > { %v1265_v43 = vmul.f32 %v2206_v37, %v1264_v17 }
 0xb0a   : > { %v1269_v46 = vsel %vm1268_vm13, %v2206_v37, %v1265_v43 }
 0xb0b   : > { %v1270_v47 = vmul.f32 %v1269_v46, %v1258_v10 }
 0xb0d   : > { %v1271_v48 = vmul.f32 %v1270_v47, %v2920_v56 }
 0xb0f   : > { %v1272_v26 = vadd.f32 %v1271_v48, %v2923_v59 }
 0xb11   : > { %v1972_v0 = vmul.f32 -1.442695, %v1272_v26 }
 0xb13   : > { %2207 = vpow2.f32 %v1972_v0 }
 0xb19   : > { %v2208_v49 = vpop.eup %2207 }
 0xb1a   : > { %v1276_v44 = vadd.f32 1.0, %v2208_v49 }
 0xb1c   : > { %2209 = vrcp.f32 %v1276_v44  ;;  %v1288_v45 = vand.u32 2147483648, %v1276_v44  ;;  %vm1282_vm15 = vweird.f32 %v1276_v44  ;;  %v1286_v62 = vand.u32 2147483647, %v1276_v44 }
 0xb1e   : > { %v1289_v2 = vor.u32 1.1754944e-38, %v1288_v45  ;;  %vm1287_vm0 = vcmp.eq.f32.partialorder %v1286_v62, 8.507059e+37 }
 0xb22   : > { %v2210_v50 = vpop.eup %2209 }
 0xb23   : > { %v1278_v51 = vmul.f32 %v2210_v50, %v1276_v44  ;;  %vm1283_vm14 = vweird.f32 %v2210_v50 }
 0xb24   : > { %vm1284_vm1 = vmor %vm1282_vm15, %vm1283_vm14 }
 0xb25   : > { %v1279_v52 = vsub.f32 1.0, %v1278_v51 }
 0xb27   : > { %v1280_v53 = vmul.f32 %v2210_v50, %v1279_v52 }
 0xb29   : > { %v1281_v54 = vadd.f32 %v2210_v50, %v1280_v53 }
 0xb2b   : > { %v1285_v1 = vsel %vm1284_vm1, %v2210_v50, %v1281_v54 }
 0xb2c   : > { %v1290_v5 = vsel %vm1287_vm0, %v1289_v2, %v1285_v1 }
 0xb2d   : > { %v1376_v6 = vmul.f32 %v1290_v5, %v3030_v28 }
 0xb61   : > { %v1384_v7 = vpop.permute.xlu0 %1383 }
 0xb62   : > { %v1386_v8 = vadd.f32 %v1384_v7, %v1376_v6 }
 0xb64   : > { %1388 = vrot.lane.b32.xlu1 %v1386_v8, %s2622_s24  ;;  %v1395_v4 = vmul.f32 %v1386_v8, %v1386_v8 }
 0xb66   : > { %1397 = vrot.lane.b32.xlu0 %v1395_v4, %s2622_s24 }
 0xb6e   : > { %1325 = vrot.lane.b32.xlu0 %v3053_v3, %s2625_s30 }
 0xbd6   : > { %v1389_v9 = vpop.permute.xlu1 %1388 }
 0xbd7   : > { %v1391_v11 = vsel %vm584_vm2, %v1389_v9, 0.0 }
 0xbd8   : > { %1392 = vadd.xlane.f32.xlu0 %v1391_v11  ;;  %v1398_v12 = vpop.permute.xlu0 %1397 }
 0xbd9   : > { %v1400_v13 = vsel %vm584_vm2, %v1398_v12, 0.0 }
 0xbda   : > { %1401 = vadd.xlane.f32.xlu1 %v1400_v13 }
 0xbe0   : > { %1336 = vadd.xlane.f32.xlu0 %v1335_v22  ;;  %v1326_v23 = vpop.permute.xlu0 %1325 }
 0xbe1   : > { %v1328_v24 = vsel %vm584_vm2, %v1326_v23, 0.0 }
 0xbe2   : > { %1329 = vadd.xlane.f32.xlu2 %v1328_v24 }
 0xc4b   : > { %v1393_v25 = vpop.xlane.xlu0 %1392 }
 0xc4c   : > { %v1394_v27 = vmul.f32 %v1393_v25, %v2888_v39 }
 0xc4d   : > { %v1402_v29 = vpop.xlane.xlu1 %1401 }
 0xc4e   : > { %v1404_v14 = vmul.f32 %v1394_v27, %v1394_v27  ;;  %v1403_v30 = vmul.f32 %v1402_v29, %v2888_v39  ;;  %v1407_v40 = vsub.f32 %v1386_v8, %v1394_v27 }
 0xc50   : > { %v1405_v31 = vsub.f32 %v1403_v30, %v1404_v14 }
 0xc52   : > { %v1406_v32 = vmax.f32 %v1405_v31, 0.0 }
 0xc53   : > { %v1337_v26 = vpop.xlane.xlu0 %1336 }
 0xc54   : > { %v1408_v15 = vadd.f32 1e-05, %v1406_v32  ;;  %v1338_v49 = vmul.f32 %v1337_v26, %v2888_v39  ;;  %v575_v32 = vadd.f32 %v3050_v63, %v2971_v41 }
 0xc55   : > { %v1330_v47 = vpop.xlane.xlu2 %1329 }
 0xc56   : > { %2211 = vrsqrt.f32 %v1408_v15  ;;  %vm1415_vm4 = vweird.f32 %v1408_v15  ;;  %v1331_v48 = vmul.f32 %v1330_v47, %v2888_v39 }
 0xc58   : > { %v1339_v0 = vmul.f32 %v1331_v48, %v1331_v48  ;;  %v1342_v5 = vsub.f32 %v3053_v3, %v1331_v48 }
 0xc5a   : > { %v1340_v44 = vsub.f32 %v1338_v49, %v1339_v0 }
 0xc5c   : > { %v2212_v33 = vpop.eup %2211  ;;  %v1341_v50 = vmax.f32 %v1340_v44, 0.0 }
 0xc5d   : > { %v1410_v34 = vmul.f32 %v2212_v33, %v1408_v15  ;;  %vm1416_vm3 = vweird.f32 %v2212_v33 }
 0xc5e   : > { %vm1417_vm5 = vmor %vm1415_vm4, %vm1416_vm3  ;;  %v1343_v51 = vadd.f32 1e-05, %v1341_v50 }
 0xc5f   : > { %v1411_v35 = vmul.f32 %v2212_v33, %v1410_v34 }
 0xc60   : > { %vm1350_vm7 = vweird.f32 %v1343_v51 }
 0xc61   : > { %v1412_v36 = vmul.f32 0.5, %v1411_v35 }
 0xc63   : > { %v1413_v37 = vsub.f32 1.5, %v1412_v36 }
 0xc65   : > { %v1414_v38 = vmul.f32 %v2212_v33, %v1413_v37 }
 0xc67   : > { %v1418_v42 = vsel %vm1417_vm5, %v2212_v33, %v1414_v38 }
 0xc68   : > { %v1419_v17 = vmul.f32 %v1418_v42, %v1407_v40 }
 0xc6a   : > { %v1420_v43 = vmul.f32 %v1419_v17, %v2946_v57 }
 0xc6c   : > { %v3101_v46 = vadd.f32 %v1420_v43, %v2948_v58 }
 0xc6e   : > { %2213 = vtanh.f32 %v3101_v46 }
 0xc6f   : > { %2215 = vrsqrt.f32 %v1343_v51 }
 0xc74   : > { %v2214_v10 = vpop.eup %2213 }
 0xc75   : > { %1424 = vrot.lane.b32.xlu1 %v2214_v10, %s2623_s21  ;;  %v2216_v52 = vpop.eup %2215 }
 0xc76   : > { %v1345_v53 = vmul.f32 %v2216_v52, %v1343_v51  ;;  %vm1351_vm6 = vweird.f32 %v2216_v52 }
 0xc77   : > { %vm1352_vm8 = vmor %vm1350_vm7, %vm1351_vm6 }
 0xc78   : > { %v1346_v54 = vmul.f32 %v2216_v52, %v1345_v53 }
 0xc7a   : > { %v1347_v45 = vmul.f32 0.5, %v1346_v54 }
 0xc7c   : > { %v1348_v62 = vsub.f32 1.5, %v1347_v45 }
 0xc7e   : > { %v1349_v1 = vmul.f32 %v2216_v52, %v1348_v62 }
 0xc80   : > { %v1353_v2 = vsel %vm1352_vm8, %v2216_v52, %v1349_v1 }
 0xc81   : > { %v1354_v6 = vmul.f32 %v1353_v2, %v1342_v5 }
 0xc83   : > { %v1355_v7 = vmul.f32 %v1354_v6, %v2957_v16 }
 0xc85   : > { %v1356_v8 = vadd.f32 %v1355_v7, %v2960_v21 }
 0xc87   : > { %v1973_v4 = vmul.f32 -1.442695, %v1356_v8 }
 0xc89   : > { %2217 = vpow2.f32 %v1973_v4 }
 0xc8f   : > { %v2218_v9 = vpop.eup %2217 }
 0xc90   : > { %v1360_v11 = vadd.f32 1.0, %v2218_v9 }
 0xc92   : > { %2219 = vrcp.f32 %v1360_v11  ;;  %v1372_v24 = vand.u32 2147483648, %v1360_v11  ;;  %vm1366_vm10 = vweird.f32 %v1360_v11  ;;  %v1370_v3 = vand.u32 2147483647, %v1360_v11 }
 0xc94   : > { %v1373_v27 = vor.u32 1.1754944e-38, %v1372_v24  ;;  %vm1371_vm12 = vcmp.eq.f32.partialorder %v1370_v3, 8.507059e+37 }
 0xc98   : > { %v2220_v12 = vpop.eup %2219 }
 0xc99   : > { %v1362_v13 = vmul.f32 %v2220_v12, %v1360_v11  ;;  %vm1367_vm9 = vweird.f32 %v2220_v12 }
 0xc9a   : > { %vm1368_vm11 = vmor %vm1366_vm10, %vm1367_vm9 }
 0xc9b   : > { %v1363_v19 = vsub.f32 1.0, %v1362_v13 }
 0xc9d   : > { %v1364_v22 = vmul.f32 %v2220_v12, %v1363_v19 }
 0xc9f   : > { %v1365_v23 = vadd.f32 %v2220_v12, %v1364_v22 }
 0xca1   : > { %v1369_v25 = vsel %vm1368_vm11, %v2220_v12, %v1365_v23 }
 0xca2   : > { %v1374_v14 = vsel %vm1371_vm12, %v1373_v27, %v1369_v25 }
 0xce7   : > { %v1425_v29 = vpop.permute.xlu1 %1424 }
 0xce8   : > { %v1427_v30 = vmul.f32 %v1425_v29, %v1374_v14 }
 0xcea   : > { %1429 = vrot.lane.b32.xlu2 %v1427_v30, %s2625_s30 }
 0xd44   : > { %v1430_v31 = vpop.permute.xlu2 %1429 }
 0xd45   : > { %1974 = vst.msk [vmem:[%s2844_s4 + $0x10] sm:$0xff] %vm584_vm2, %v1430_v31  ;;  %1975 = vmatmul.msk.f32.vlgmr.msrb.gmra.mxu1 %vm584_vm2, %v1430_v31 }
 0xdc2   : > { %v1455_v15 = vpop.f32.mrf.mxu1 }
 0xdc3   : > { %v3116_v33 = vadd.f32 %v1455_v15, %v575_v32 }
 0xdc5   : > { %1558 = vrot.lane.b32.xlu0 %v3116_v33, %s2623_s21  ;;  %v1463_v34 = vmul.f32 %v3116_v33, %v3116_v33  ;;  %v1459_v41 = vsel %vm584_vm2, %v3116_v33, 0.0 }
 0xdc7   : > { %1565 = vrot.lane.b32.xlu1 %v1463_v34, %s2623_s21  ;;  %v1464_v35 = vsel %vm584_vm2, %v1463_v34, 0.0 }
 0xdc8   : > { %1465 = vadd.xlane.f32.xlu2 %v1464_v35 }
 0xdcf   : > { %1506 = vrot.lane.b32.xlu1 %v3116_v33, %s2622_s24 }
 0xdef   : > { %1460 = vadd.xlane.f32.xlu0 %v1459_v41 }
 0xe37   : > { %v1559_v63 = vpop.permute.xlu0 %1558 }
 0xe38   : > { %v1561_v36 = vsel %vm584_vm2, %v1559_v63, 0.0 }
 0xe39   : > { %v1566_v37 = vpop.permute.xlu1 %1565  ;;  %1562 = vadd.xlane.f32.xlu0 %v1561_v36 }
 0xe3a   : > { %v1568_v38 = vsel %vm584_vm2, %v1566_v37, 0.0 }
 0xe3b   : > { %1569 = vadd.xlane.f32.xlu2 %v1568_v38  ;;  %v1466_v43 = vpop.xlane.xlu2 %1465 }
 0xe3c   : > { %v1467_v23 = vmul.f32 %v1466_v43, %v2888_v39 }
 0xe41   : > { %v1507_v40 = vpop.permute.xlu1 %1506 }
 0xe42   : > { %v1509_v42 = vsel %vm584_vm2, %v1507_v40, 0.0 }
 0xe43   : > { %1510 = vadd.xlane.f32.xlu1 %v1509_v42 }
 0xe4d   : > { %1514 = vrot.lane.b32.xlu0 %v1463_v34, %s2622_s24 }
 0xe5c   : > { %1591 = vrot.lane.b32.xlu1 %v3116_v33, %s2625_s30 }
 0xe62   : > { %v1461_v17 = vpop.xlane.xlu0 %1460 }
 0xe63   : > { %v1462_v19 = vmul.f32 %v1461_v17, %v2888_v39 }
 0xe65   : > { %v1468_v22 = vmul.f32 %v1462_v19, %v1462_v19  ;;  %v1471_v32 = vsub.f32 %v3116_v33, %v1462_v19 }
 0xe67   : > { %v1469_v24 = vsub.f32 %v1467_v23, %v1468_v22 }
 0xe69   : > { %v1470_v3 = vmax.f32 %v1469_v24, 0.0 }
 0xeac   : > { %v1563_v10 = vpop.xlane.xlu0 %1562 }
 0xead   : > { %v1564_v47 = vmul.f32 %v1563_v10, %v2888_v39 }
 0xeae   : > { %v1570_v48 = vpop.xlane.xlu2 %1569 }
 0xeaf   : > { %v1572_v26 = vmul.f32 %v1564_v47, %v1564_v47  ;;  %v1571_v0 = vmul.f32 %v1570_v48, %v2888_v39  ;;  %v1575_v6 = vsub.f32 %v3116_v33, %v1564_v47 }
 0xeb1   : > { %v1573_v49 = vsub.f32 %v1571_v0, %v1572_v26 }
 0xeb3   : > { %v1574_v44 = vmax.f32 %v1573_v49, 0.0 }
 0xeb5   : > { %v1576_v50 = vadd.f32 1e-05, %v1574_v44 }
 0xeb6   : > { %v1511_v5 = vpop.xlane.xlu1 %1510 }
 0xeb7   : > { %2221 = vrsqrt.f32 %v1576_v50  ;;  %vm1583_vm14 = vweird.f32 %v1576_v50  ;;  %v1512_v37 = vmul.f32 %v1511_v5, %v2888_v39 }
 0xeb9   : > { %v1521_v42 = vmul.f32 %v1512_v37, %v1512_v37 }
 0xebd   : > { %v2222_v51 = vpop.eup %2221 }
 0xebe   : > { %v1578_v52 = vmul.f32 %v2222_v51, %v1576_v50  ;;  %vm1584_vm13 = vweird.f32 %v2222_v51 }
 0xebf   : > { %v1515_v53 = vpop.permute.xlu0 %1514  ;;  %vm1585_vm15 = vmor %vm1583_vm14, %vm1584_vm13 }
 0xec0   : > { %v1579_v54 = vmul.f32 %v2222_v51, %v1578_v52  ;;  %v1517_v45 = vsel %vm584_vm2, %v1515_v53, 0.0 }
 0xec1   : > { %1518 = vadd.xlane.f32.xlu2 %v1517_v45 }
 0xec2   : > { %v1580_v62 = vmul.f32 0.5, %v1579_v54 }
 0xec4   : > { %v1581_v1 = vsub.f32 1.5, %v1580_v62 }
 0xec6   : > { %v1582_v2 = vmul.f32 %v2222_v51, %v1581_v1 }
 0xec8   : > { %v1586_v7 = vsel %vm1585_vm15, %v2222_v51, %v1582_v2 }
 0xec9   : > { %v1587_v8 = vmul.f32 %v1586_v7, %v1575_v6 }
 0xecb   : > { %v1588_v4 = vmul.f32 %v1587_v8, %v2895_v60  ;;  %v1472_v60 = vadd.f32 1e-05, %v1470_v3 }
 0xecd   : > { %v1589_v9 = vadd.f32 %v1588_v4, %v2897_v61  ;;  %vm1479_vm0 = vweird.f32 %v1472_v60  ;;  %v1524_v4 = vsub.f32 %v3116_v33, %v1512_v37 }
 0xece   : > { %v1592_v11 = vpop.permute.xlu1 %1591 }
 0xecf   : > { %v1594_v12 = vsel %vm584_vm2, %v1592_v11, 0.0  ;;  %2223 = vtanh.f32 %v1589_v9 }
 0xed0   : > { %1595 = vadd.xlane.f32.xlu2 %v1594_v12  ;;  %2225 = vrsqrt.f32 %v1472_v60 }
 0xed5   : > { %v2224_v13 = vpop.eup %2223 }
 0xed6   : > { %1644 = vrot.lane.b32.xlu1 %v2224_v13, %s2623_s21  ;;  %v2226_v61 = vpop.eup %2225 }
 0xed7   : > { %v1474_v25 = vmul.f32 %v2226_v61, %v1472_v60  ;;  %vm1480_vm1 = vweird.f32 %v2226_v61 }
 0xed8   : > { %vm1481_vm3 = vmor %vm1479_vm0, %vm1480_vm1 }
 0xed9   : > { %v1475_v27 = vmul.f32 %v2226_v61, %v1474_v25 }
 0xedb   : > { %v1476_v29 = vmul.f32 0.5, %v1475_v27 }
 0xedd   : > { %v1477_v14 = vsub.f32 1.5, %v1476_v29 }
 0xedf   : > { %v1478_v30 = vmul.f32 %v2226_v61, %v1477_v14 }
 0xee1   : > { %v1482_v31 = vsel %vm1481_vm3, %v2226_v61, %v1478_v30 }
 0xee2   : > { %v1483_v15 = vmul.f32 %v1482_v31, %v1471_v32 }
 0xee4   : > { %v1484_v35 = vmul.f32 %v1483_v15, %v2907_v18 }
 0xee6   : > { %v1485_v41 = vadd.f32 %v1484_v35, %v2910_v20 }
 0xee8   : > { %1598 = vrot.lane.b32.xlu2 %v1463_v34, %s2625_s30  ;;  %v1976_v34 = vmul.f32 -1.442695, %v1485_v41 }
 0xeea   : > { %2227 = vpow2.f32 %v1976_v34 }
 0xef0   : > { %v2228_v63 = vpop.eup %2227 }
 0xef1   : > { %v1489_v36 = vadd.f32 1.0, %v2228_v63 }
 0xef3   : > { %2229 = vrcp.f32 %v1489_v36  ;;  %v1501_v0 = vand.u32 2147483648, %v1489_v36  ;;  %vm1495_vm5 = vweird.f32 %v1489_v36  ;;  %v1499_v50 = vand.u32 2147483647, %v1489_v36 }
 0xef5   : > { %v1502_v54 = vor.u32 1.1754944e-38, %v1501_v0  ;;  %vm1500_vm7 = vcmp.eq.f32.partialorder %v1499_v50, 8.507059e+37 }
 0xef9   : > { %v2230_v38 = vpop.eup %2229 }
 0xefa   : > { %v1491_v43 = vmul.f32 %v2230_v38, %v1489_v36  ;;  %vm1496_vm4 = vweird.f32 %v2230_v38 }
 0xefb   : > { %vm1497_vm6 = vmor %vm1495_vm5, %vm1496_vm4 }
 0xefc   : > { %v1492_v48 = vsub.f32 1.0, %v1491_v43 }
 0xefe   : > { %v1493_v18 = vmul.f32 %v2230_v38, %v1492_v48 }
 0xf00   : > { %v1494_v20 = vadd.f32 %v2230_v38, %v1493_v18 }
 0xf02   : > { %v1498_v52 = vsel %vm1497_vm6, %v2230_v38, %v1494_v20 }
 0xf03   : > { %v1503_v62 = vsel %vm1500_vm7, %v1502_v54, %v1498_v52 }
 0xf34   : > { %v1519_v40 = vpop.xlane.xlu2 %1518 }
 0xf35   : > { %v1520_v17 = vmul.f32 %v1519_v40, %v2888_v39 }
 0xf37   : > { %v1522_v10 = vsub.f32 %v1520_v17, %v1521_v42 }
 0xf39   : > { %v1523_v47 = vmax.f32 %v1522_v10, 0.0 }
 0xf3b   : > { %v1525_v26 = vadd.f32 1e-05, %v1523_v47 }
 0xf3d   : > { %2231 = vrsqrt.f32 %v1525_v26  ;;  %vm1532_vm9 = vweird.f32 %v1525_v26 }
 0xf43   : > { %v2232_v49 = vpop.eup %2231  ;;  %v3150_v44 = vpop.xlane.xlu2 %1595 }
 0xf44   : > { %v1527_v51 = vmul.f32 %v2232_v49, %v1525_v26  ;;  %vm1533_vm8 = vweird.f32 %v2232_v49 }
 0xf45   : > { %vm1534_vm10 = vmor %vm1532_vm9, %vm1533_vm8 }
 0xf46   : > { %v1528_v53 = vmul.f32 %v2232_v49, %v1527_v51 }
 0xf48   : > { %v1529_v45 = vmul.f32 0.5, %v1528_v53  ;;  %v1645_v1 = vpop.permute.xlu1 %1644 }
 0xf49   : > { %v1647_v2 = vmul.f32 %v1645_v1, %v1503_v62 }
 0xf4a   : > { %v1530_v5 = vsub.f32 1.5, %v1529_v45  ;;  %v1597_v45 = vmul.f32 %v3150_v44, %v2888_v39 }
 0xf4b   : > { %1649 = vrot.lane.b32.xlu1 %v1647_v2, %s2625_s30  ;;  %v1599_v6 = vpop.permute.xlu2 %1598 }
 0xf4c   : > { %v1531_v7 = vmul.f32 %v2232_v49, %v1530_v5  ;;  %v1601_v8 = vsel %vm584_vm2, %v1599_v6, 0.0  ;;  %v1605_v1 = vmul.f32 %v1597_v45, %v1597_v45 }
 0xf4d   : > { %1602 = vadd.xlane.f32.xlu0 %v1601_v8 }
 0xf4e   : > { %v1535_v9 = vsel %vm1534_vm10, %v2232_v49, %v1531_v7 }
 0xf4f   : > { %v1536_v11 = vmul.f32 %v1535_v9, %v1524_v4 }
 0xf51   : > { %v1537_v12 = vmul.f32 %v1536_v11, %v2920_v56 }
 0xf53   : > { %v1538_v13 = vadd.f32 %v1537_v12, %v2923_v59  ;;  %v1608_v12 = vsub.f32 %v3116_v33, %v1597_v45 }
 0xf55   : > { %v1977_v19 = vmul.f32 -1.442695, %v1538_v13 }
 0xf57   : > { %2233 = vpow2.f32 %v1977_v19 }
 0xf5d   : > { %v2234_v22 = vpop.eup %2233 }
 0xf5e   : > { %v1542_v23 = vadd.f32 1.0, %v2234_v22 }
 0xf60   : > { %2235 = vrcp.f32 %v1542_v23  ;;  %v1554_v27 = vand.u32 2147483648, %v1542_v23  ;;  %vm1548_vm12 = vweird.f32 %v1542_v23  ;;  %v1552_v29 = vand.u32 2147483647, %v1542_v23 }
 0xf62   : > { %v1555_v30 = vor.u32 1.1754944e-38, %v1554_v27  ;;  %vm1553_vm14 = vcmp.eq.f32.partialorder %v1552_v29, 8.507059e+37 }
 0xf66   : > { %v2236_v24 = vpop.eup %2235 }
 0xf67   : > { %v1544_v3 = vmul.f32 %v2236_v24, %v1542_v23  ;;  %vm1549_vm11 = vweird.f32 %v2236_v24 }
 0xf68   : > { %vm1550_vm13 = vmor %vm1548_vm12, %vm1549_vm11 }
 0xf69   : > { %v1545_v60 = vsub.f32 1.0, %v1544_v3 }
 0xf6b   : > { %v1546_v61 = vmul.f32 %v2236_v24, %v1545_v60 }
 0xf6d   : > { %v1547_v25 = vadd.f32 %v2236_v24, %v1546_v61 }
 0xf6f   : > { %v1551_v14 = vsel %vm1550_vm13, %v2236_v24, %v1547_v25 }
 0xf70   : > { %v1556_v56 = vsel %vm1553_vm14, %v1555_v30, %v1551_v14 }
 0xf71   : > { %v1642_v59 = vmul.f32 %v1556_v56, %v3101_v46 }
 0xfbd   : > { %v1650_v31 = vpop.permute.xlu1 %1649 }
 0xfbe   : > { %v1652_v32 = vadd.f32 %v1650_v31, %v1642_v59 }
 0xfc0   : > { %1654 = vrot.lane.b32.xlu2 %v1652_v32, %s2622_s24  ;;  %v1661_v15 = vmul.f32 %v1652_v32, %v1652_v32  ;;  %v1603_v54 = vpop.xlane.xlu0 %1602 }
 0xfc1   : > { %v1604_v62 = vmul.f32 %v1603_v54, %v2888_v39 }
 0xfc3   : > { %v1606_v2 = vsub.f32 %v1604_v62, %v1605_v1 }
 0xfc5   : > { %v1607_v5 = vmax.f32 %v1606_v2, 0.0 }
 0xfc7   : > { %v1609_v6 = vadd.f32 1e-05, %v1607_v5 }
 0xfc8   : > { %1663 = vrot.lane.b32.xlu2 %v1661_v15, %s2622_s24 }
 0xfc9   : > { %vm1616_vm4 = vweird.f32 %v1609_v6 }
0x101a   : > { %v1655_v35 = vpop.permute.xlu2 %1654 }
0x101b   : > { %v1657_v41 = vsel %vm584_vm2, %v1655_v35, 0.0 }
0x101c   : > { %1658 = vadd.xlane.f32.xlu1 %v1657_v41 }
0x1022   : > { %v1664_v34 = vpop.permute.xlu2 %1663 }
0x1023   : > { %v1666_v63 = vsel %vm584_vm2, %v1664_v34, 0.0 }
0x1024   : > { %1667 = vadd.xlane.f32.xlu2 %v1666_v63 }
0x108f   : > { %v1659_v36 = vpop.xlane.xlu1 %1658 }
0x1090   : > { %v1660_v37 = vmul.f32 %v1659_v36, %v2888_v39 }
0x1092   : > { %v1670_v46 = vmul.f32 %v1660_v37, %v1660_v37  ;;  %v1673_v0 = vsub.f32 %v1652_v32, %v1660_v37 }
0x1097   : > { %v1668_v38 = vpop.xlane.xlu2 %1667 }
0x1098   : > { %v1669_v40 = vmul.f32 %v1668_v38, %v2888_v39 }
0x109a   : > { %v1671_v42 = vsub.f32 %v1669_v40, %v1670_v46 }
0x109c   : > { %v1672_v17 = vmax.f32 %v1671_v42, 0.0 }
0x109e   : > { %v1674_v43 = vadd.f32 1e-05, %v1672_v17 }
0x10a0   : > { %2237 = vrsqrt.f32 %v1674_v43  ;;  %vm1681_vm1 = vweird.f32 %v1674_v43 }
0x10a6   : > { %v2238_v10 = vpop.eup %2237 }
0x10a7   : > { %v1676_v47 = vmul.f32 %v2238_v10, %v1674_v43  ;;  %vm1682_vm15 = vweird.f32 %v2238_v10 }
0x10a8   : > { %vm1683_vm0 = vmor %vm1681_vm1, %vm1682_vm15 }
0x10a9   : > { %v1677_v48 = vmul.f32 %v2238_v10, %v1676_v47 }
0x10ab   : > { %v1678_v26 = vmul.f32 0.5, %v1677_v48 }
0x10ad   : > { %v1679_v18 = vsub.f32 1.5, %v1678_v26 }
0x10af   : > { %v1680_v20 = vmul.f32 %v2238_v10, %v1679_v18 }
0x10b1   : > { %v1684_v49 = vsel %vm1683_vm0, %v2238_v10, %v1680_v20 }
0x10b2   : > { %v1685_v50 = vmul.f32 %v1684_v49, %v1673_v0 }
0x10b4   : > { %v1686_v51 = vmul.f32 %v1685_v50, %v2946_v57 }
0x10b6   : > { %v1687_v52 = vadd.f32 %v1686_v51, %v2948_v58 }
0x10b8   : > { %2239 = vtanh.f32 %v1687_v52 }
0x10b9   : > { %2241 = vrsqrt.f32 %v1609_v6 }
0x10be   : > { %v2240_v53 = vpop.eup %2239 }
0x10bf   : > { %1690 = vrot.lane.b32.xlu0 %v2240_v53, %s2623_s21  ;;  %v2242_v7 = vpop.eup %2241 }
0x10c0   : > { %v1611_v8 = vmul.f32 %v2242_v7, %v1609_v6  ;;  %vm1617_vm3 = vweird.f32 %v2242_v7 }
0x10c1   : > { %vm1618_vm5 = vmor %vm1616_vm4, %vm1617_vm3 }
0x10c2   : > { %v1612_v57 = vmul.f32 %v2242_v7, %v1611_v8 }
0x10c4   : > { %v1613_v4 = vmul.f32 0.5, %v1612_v57 }
0x10c6   : > { %v1614_v58 = vsub.f32 1.5, %v1613_v4 }
0x10c8   : > { %v1615_v9 = vmul.f32 %v2242_v7, %v1614_v58 }
0x10ca   : > { %v1619_v11 = vsel %vm1618_vm5, %v2242_v7, %v1615_v9 }
0x10cb   : > { %v1620_v44 = vmul.f32 %v1619_v11, %v1608_v12 }
0x10cd   : > { %v1621_v39 = vmul.f32 %v1620_v44, %v2957_v16 }
0x10cf   : > { %v1622_v13 = vadd.f32 %v1621_v39, %v2960_v21 }
0x10d1   : > { %v1978_v19 = vmul.f32 -1.442695, %v1622_v13 }
0x10d3   : > { %2243 = vpow2.f32 %v1978_v19 }
0x10d9   : > { %v2244_v22 = vpop.eup %2243 }
0x10da   : > { %v1626_v23 = vadd.f32 1.0, %v2244_v22 }
0x10dc   : > { %2245 = vrcp.f32 %v1626_v23  ;;  %v1638_v27 = vand.u32 2147483648, %v1626_v23  ;;  %vm1632_vm7 = vweird.f32 %v1626_v23  ;;  %v1636_v33 = vand.u32 2147483647, %v1626_v23 }
0x10de   : > { %v1639_v16 = vor.u32 1.1754944e-38, %v1638_v27  ;;  %vm1637_vm9 = vcmp.eq.f32.partialorder %v1636_v33, 8.507059e+37 }
0x10e2   : > { %v2246_v24 = vpop.eup %2245 }
0x10e3   : > { %v1628_v3 = vmul.f32 %v2246_v24, %v1626_v23  ;;  %vm1633_vm6 = vweird.f32 %v2246_v24 }
0x10e4   : > { %vm1634_vm8 = vmor %vm1632_vm7, %vm1633_vm6 }
0x10e5   : > { %v1629_v60 = vsub.f32 1.0, %v1628_v3 }
0x10e7   : > { %v1630_v61 = vmul.f32 %v2246_v24, %v1629_v60 }
0x10e9   : > { %v1631_v25 = vadd.f32 %v2246_v24, %v1630_v61 }
0x10eb   : > { %v1635_v29 = vsel %vm1634_vm8, %v2246_v24, %v1631_v25 }
0x10ec   : > { %v1640_v21 = vsel %vm1637_vm9, %v1639_v16, %v1635_v29 }
0x1131   : > { %v1691_v14 = vpop.permute.xlu0 %1690 }
0x1132   : > { %v1693_v30 = vmul.f32 %v1691_v14, %v1640_v21 }
0x1134   : > { %1695 = vrot.lane.b32.xlu0 %v1693_v30, %s2625_s30 }
0x113c   : > { %1702 = vrot.lane.b32.xlu0 %v1687_v52, %s2622_s24 }
0x11a6   : > { %v1696_v56 = vpop.permute.xlu0 %1695 }
0x11a7   : > { %1979 = vst.msk [vmem:[%s2844_s4 + $0x18] sm:$0xff] %vm584_vm2, %v1696_v56 }
0x11a8   : > { %1700 = vst.msk [vmem:[#allocation2] sm:$0xff] %vm584_vm2, %v1696_v56 }
0x11ab   : > { %1709 = sbr.rel (%p1980_p1) target bundleno = 4644 (0x1224), region = 88 }
0x11ae   : > { %v1703_v59 = vpop.permute.xlu0 %1702 }
0x11af   : > { %1705 = vst.msk [vmem:[#allocation3] sm:$0xff] %vm584_vm2, %v1703_v59 }
0x11b0   : > { %1710 = vst.msk [vmem:[#allocation18] sm:$0xff] %vm584_vm2, %v3040_v55  ;;  %1712 = vrot.lane.b32.xlu0 %v3030_v28, %s2626_s25 }
0x1222   : > { %v1713_v31 = vpop.permute.xlu0 %1712 }
0x1223   : > { %1715 = vst.msk [vmem:[#allocation20] sm:$0xff] %vm584_vm2, %v1713_v31 }
0x1224 PF: > { %s2627_s19 = smov [#allocation18]   ;;  %s1749_s22 = sshll.u32 %s3245_s9, 4  ;;  %s1750_s22 = int_to_ptr.hbm [resolvable:$true] %s1749_s22 }
0x1225   : > { %s1747_s29 = sshll.u32 %s2627_s19, 4  ;;  %s1991_s6 = sshll.u32 %s2604_s16, 5  ;;  %s1748_s29 = int_to_ptr.vmem [resolvable:$true] %s1747_s29 }
0x1226   : > { %2022 = dma.vmem_to_hbm [thread:$0]  (%p2787_p10), %s1748_s29, 128, %s1750_s22, [#allocation19]  }
0x1227   : > { %s1729_s24 = scalar_lea.hbm %s3244_s8, %s1991_s6  ;;  %s1730_s21 = sshll.u32 %s2844_s4, 4  ;;  %s1731_s21 = int_to_ptr.vmem [resolvable:$true] %s1730_s21 }
0x1228   : > { %s1732_s30 = sshll.u32 %s1729_s24, 4  ;;  %s1717_s11 = scalar_lea.sflag [#allocation7], %s2822_s26  ;;  %s1733_s30 = int_to_ptr.hbm [resolvable:$true] %s1732_s30 }
0x1229   : > { %s2500_s23 = sshra.s32 %s1733_s30, 4  ;;  %s2506_s16 = scalar_lea.hbm %s3244_s8, 96  ;;  %s2501_s23 = int_to_ptr.hbm [resolvable:$true] %s2500_s23 }
0x122a   : > { %s2502_s25 = scalar_lea.hbm %s2501_s23, 32  ;;  %p2507_p11 = scmp.lt.s32.totalorder %s2501_s23, %s3244_s8 }
0x122b   : > { %p2503_p7 = scmp.ne.s32.totalorder %s2501_s23, %s2502_s25  ;;  %p2508_p12 = scmp.lt.s32.totalorder %s2506_s16, %s2502_s25 }
0x122d   : > { %p2504_p8 = pnand %p2503_p7, %p2799_p13  ;;  %p2509_p0 = por %p2508_p12, %p2507_p11 }
0x122f   : > { %p2505_p9 = pneg %p2504_p8 }
0x1231   : > { %p2510_p2 = pnand %p2509_p0, %p2505_p9 }
0x1233   : > { %2513 = shalt.err (!%p2510_p2)
}
0x1234   : > { %s2628_s26 = smov 128   ;;  %s2629_s4 = smov 8  }
0x1235   : > { %2020 = dma.vmem_to_hbm [thread:$0]  (%p2799_p13), %s1731_s21, 512, %s1733_s30, %s1717_s11, %s2628_s26, %s2628_s26, %s2629_s4  }
0x1236   : > { %s2630_s22 = smov [#allocation20]   ;;  %s1763_s24 = sshll.u32 %s3246_s10, 4  ;;  %s1764_s24 = int_to_ptr.hbm [resolvable:$true] %s1763_s24 }
0x1237   : > { %s1761_s6 = sshll.u32 %s2630_s22, 4  ;;  %s1762_s6 = int_to_ptr.vmem [resolvable:$true] %s1761_s6 }
0x1238   : > { %2024 = dma.vmem_to_hbm [thread:$0]  (%p2787_p10), %s1762_s6, 128, %s1764_s24, [#allocation19]  }
0x1239   : > { %2583 = dma.done.wait (%p2787_p10), [#allocation19], 256  }
0x123a   : > { %2585 = vsyncadd (%p2787_p10), [#allocation19], 4294967040 }
0x123b PF: > { %p2074_p13 = scmp.ge.s32.totalorder %s2612_s18, 2  ;;  %s1785_s1 = sand.u32 1, %s2592_s13  }
0x123c   : > { %s1786_s21 = scalar_lea.sflag [#allocation7], %s1785_s1 }
0x123d   : > { %p2054_p5 = pnand %p2074_p13, %p2806_p4 }
0x123f   : > { %p2055_p6 = pneg %p2054_p5 }
0x1241   : > { %2587 = dma.done.wait (%p2055_p6), %s1786_s21, 512  }
0x1242   : > { %2589 = vsyncadd (%p2055_p6), %s1786_s21, 4294966784  ;;  %s31_s18 = sadd.s32 1, %s2612_s18   ;;  %s3275_s27 = sld [smem:[#allocation27_spill]] }
0x1243   : > { %p28_p3 = scmp.ge.s32.totalorder %s31_s18, 5   ;;  %s3276_s13 = smov %s2596_s14 }
0x1244   : > { %s3277_s14 = smov %s2600_s15  ;;  %s3278_s15 = smov %s2804_s28 }
0x1245   : > { %s3279_s16 = smov %s2608_s17  ;;  %30 = sbr.rel (!%p28_p3) target bundleno = 17 (0x11), region = 155 }
0x1248   : > { %s3280_s17 = smov %s3275_s27 }
0x124a   :  { %1792 = vsyncpa [#allocation6], 1 }
0x124b   :  { %1794 = vsyncpa [#allocation6 + $0x1], 1 }
0x124c   :  { %1795 = vsyncpa [#allocation9], 1 }
0x124d   :  { %1796 = vsyncpa [#allocation12], 1 }
0x124e   :  { %1797 = vsyncpa [#allocation15], 1 }
0x124f   :  { %1798 = vsyncpa [#allocation7], 1 }
0x1250   :  { %1800 = vsyncpa [#allocation7 + $0x1], 1 }
0x1251   :  { %1801 = vsyncpa [#allocation19], 1 }

</bundles_post_ra>
